<compile_context>
chip_gen: v6e
topology: v6e:2x2x1
jax: 0.10.0
libtpu: 0.0.40
codegen_flags: <defaults>
</compile_context>

<pallas_src>
import functools

import jax
import jax.numpy as jnp
from jax.experimental import pallas as pl
from jax.experimental.pallas import tpu as pltpu

HEAD_PAD = 128  # prob(4)+value(2) 1x1-conv output channels, zero-padded to a lane-dense width


# ---------------------------------------------------------------------------
# Kernel 1: fused backbone (3x 3x3 conv + ReLU) + both heads' 1x1 convs
# ---------------------------------------------------------------------------
def _backbone_heads_kernel(xp_ref, w1_ref, b1_ref, w2_ref, b2_ref, w3_ref, b3_ref,
                           hdw_ref, hdb_ref, heads_ref, pad1, pad2, *, nb, h, w):
    m = nb * h * w  # rows of the (pixels, channels) activation matrix for this chunk

    def conv3x3_relu(src_ref, w_ref, b_ref):
        # src_ref: (nb, h+2, w+2, cin) zero-padded map; w_ref: (9, cin, cout); b: (1, cout)
        wgt = w_ref[...]
        cin, cout = wgt.shape[1], wgt.shape[2]
        acc = jnp.zeros((m, cout), jnp.float32)
        for k in range(9):                      # 9 taps: static shifted windows in VMEM
            dh, dw = k // 3, k % 3
            patch = src_ref[:, pl.ds(dh, h), pl.ds(dw, w), :]        # (nb, h, w, cin)
            acc = acc + jnp.dot(patch.reshape(m, cin), wgt[k],
                                preferred_element_type=jnp.float32)
        # bias broadcast hoisted out of the tap loop; ReLU on VPU
        return jnp.maximum(acc + b_ref[...], 0.0)                    # (m, cout)

    # conv1 reads the pre-padded input directly
    y1 = conv3x3_relu(xp_ref, w1_ref, b1_ref)                        # (m, 32)
    # re-pad in VMEM scratch for conv2 (zero border, interior = y1)
    pad1[...] = jnp.zeros_like(pad1)
    pad1[:, pl.ds(1, h), pl.ds(1, w), :] = y1.reshape(nb, h, w, 32)

    y2 = conv3x3_relu(pad1, w2_ref, b2_ref)                          # (m, 64)
    pad2[...] = jnp.zeros_like(pad2)
    pad2[:, pl.ds(1, h), pl.ds(1, w), :] = y2.reshape(nb, h, w, 64)

    y3 = conv3x3_relu(pad2, w3_ref, b3_ref)                          # (m, 128)

    # fused prob/value 1x1 convs: columns 0:4 = prob head, 4:6 = value head, rest zero.
    heads = jnp.dot(y3, hdw_ref[...], preferred_element_type=jnp.float32) + hdb_ref[...]
    heads_ref[...] = jnp.maximum(heads, 0.0)                         # lane-dense store


def backbone_heads(xp, conv_w, conv_b, head_w, head_b, *, n, h, w, nb):
    c = xp.shape[-1]
    m_total = n * h * w
    kernel = functools.partial(_backbone_heads_kernel, nb=nb, h=h, w=w)
    return pl.pallas_call(
        kernel,
        out_shape=jax.ShapeDtypeStruct((m_total, HEAD_PAD), jnp.float32),
        grid=(n // nb,),
        in_specs=[
            pl.BlockSpec((nb, h + 2, w + 2, c), lambda b: (b, 0, 0, 0)),   # batch-tiled
            pl.BlockSpec(conv_w[0].shape, lambda b: (0, 0, 0)),            # weights stay
            pl.BlockSpec(conv_b[0].shape, lambda b: (0, 0)),               # resident
            pl.BlockSpec(conv_w[1].shape, lambda b: (0, 0, 0)),
            pl.BlockSpec(conv_b[1].shape, lambda b: (0, 0)),
            pl.BlockSpec(conv_w[2].shape, lambda b: (0, 0, 0)),
            pl.BlockSpec(conv_b[2].shape, lambda b: (0, 0)),
            pl.BlockSpec(head_w.shape, lambda b: (0, 0)),
            pl.BlockSpec(head_b.shape, lambda b: (0, 0)),
        ],
        out_specs=pl.BlockSpec((nb * h * w, HEAD_PAD), lambda b: (b, 0)),
        scratch_shapes=[
            pltpu.VMEM((nb, h + 2, w + 2, 32), jnp.float32),  # padded conv1 output
            pltpu.VMEM((nb, h + 2, w + 2, 64), jnp.float32),  # padded conv2 output
        ],
        compiler_params=pltpu.CompilerParams(dimension_semantics=("parallel",)),
    )(xp, conv_w[0], conv_b[0], conv_w[1], conv_b[1], conv_w[2], conv_b[2],
      head_w, head_b)


# ---------------------------------------------------------------------------
# Kernel 2: fused prob Linear + log_softmax, value Linear->ReLU->Linear->tanh
# ---------------------------------------------------------------------------
def _heads_linear_kernel(pflat_ref, vflat_ref, pw2_ref, pb2_ref, vw2_ref, vb2_ref,
                         vw3_ref, vb3_ref, prob_ref, val_ref):
    # prob head
    logits = jnp.dot(pflat_ref[...], pw2_ref[...],
                     preferred_element_type=jnp.float32) + pb2_ref[...]
    mx = jnp.max(logits, axis=-1, keepdims=True)
    s = logits - mx
    lse = jnp.log(jnp.sum(jnp.exp(s), axis=-1, keepdims=True))
    prob_ref[...] = (s - lse).astype(prob_ref.dtype)

    # value head
    v = jnp.dot(vflat_ref[...], vw2_ref[...],
                preferred_element_type=jnp.float32) + vb2_ref[...]
    v = jnp.maximum(v, 0.0)
    val = jnp.dot(v, vw3_ref[...], preferred_element_type=jnp.float32) + vb3_ref[...]
    val_ref[...] = jnp.tanh(val).astype(val_ref.dtype)


def heads_linear(pflat, vflat, pw2, pb2, vw2, vb2, vw3, vb3):
    n = pflat.shape[0]
    hw_out = pw2.shape[1]
    return pl.pallas_call(
        _heads_linear_kernel,
        out_shape=(jax.ShapeDtypeStruct((n, hw_out), jnp.float32),
                   jax.ShapeDtypeStruct((n, 1), jnp.float32)),
        grid=(1,),  # tiny: the whole batch fits in one VMEM block
        in_specs=[pl.BlockSpec(pflat.shape, lambda i: (0, 0)),
                  pl.BlockSpec(vflat.shape, lambda i: (0, 0)),
                  pl.BlockSpec(pw2.shape, lambda i: (0, 0)),
                  pl.BlockSpec(pb2.shape, lambda i: (0, 0)),
                  pl.BlockSpec(vw2.shape, lambda i: (0, 0)),
                  pl.BlockSpec(vb2.shape, lambda i: (0, 0)),
                  pl.BlockSpec(vw3.shape, lambda i: (0, 0)),
                  pl.BlockSpec(vb3.shape, lambda i: (0, 0))],
        out_specs=[pl.BlockSpec((n, hw_out), lambda i: (0, 0)),
                   pl.BlockSpec((n, 1), lambda i: (0, 0))],
    )(pflat, vflat, pw2, pb2, vw2, vb2, vw3, vb3)


# ---------------------------------------------------------------------------
# Parameter init (torch-equivalent layout) and one-time kernel-ready preparation
# ---------------------------------------------------------------------------
def init_params(key, channel, h, w):
    hw = h * w

    def uniform(k, shape, fan_in):
        scale = 1.0 / jnp.sqrt(jnp.float32(fan_in))
        return jax.random.uniform(k, shape, jnp.float32, -scale, scale)

    def conv3x3(k, cin, cout):
        kw, kb = jax.random.split(k)
        # (9, cin, cout) with tap k = kh*3 + kw  <=>  torch weight[cout, cin, kh, kw]
        return uniform(kw, (9, cin, cout), 9 * cin), uniform(kb, (cout,), 9 * cin)

    def dense(k, fin, fout):
        kw, kb = jax.random.split(k)
        return uniform(kw, (fin, fout), fin), uniform(kb, (fout,), fin)

    ks = jax.random.split(key, 8)
    return {
        "backbone": [conv3x3(ks[0], channel, 32),
                     conv3x3(ks[1], 32, 64),
                     conv3x3(ks[2], 64, 128)],
        "prob": [*dense(ks[3], 128, 4),            # 1x1 conv 128 -> 4
                 *dense(ks[4], 4 * hw, hw)],       # Linear, rows in torch (c,h,w) order
        "value": [*dense(ks[5], 128, 2),           # 1x1 conv 128 -> 2
                  *dense(ks[6], 2 * hw, 64),       # Linear, rows in torch (c,h,w) order
                  *dense(ks[7], 64, 1)],
    }


def prepare_params(raw, h, w):
    """One-time weight preprocessing (applied exactly once, outside the kernels)."""
    hw = h * w
    (w1, b1), (w2, b2), (w3, b3) = raw["backbone"]
    pw1, pb1, pw2, pb2 = raw["prob"]
    vw1, vb1, vw2, vb2, vw3, vb3 = raw["value"]

    # fuse prob/value 1x1 convs into one 128 -> HEAD_PAD matmul (lane-dense output)
    head_w = jnp.zeros((128, HEAD_PAD), jnp.float32)
    head_w = head_w.at[:, :4].set(pw1).at[:, 4:6].set(vw1)
    head_b = jnp.zeros((1, HEAD_PAD), jnp.float32)
    head_b = head_b.at[:, :4].set(pb1[None, :]).at[:, 4:6].set(vb1[None, :])

    # fold the torch NCHW flatten (c-major rows) -> kernel (h,w,c)-major rows permutation
    # into the Linear weights, so the inter-kernel flatten is a plain reshape.
    pw2p = pw2.reshape(4, hw, hw).transpose(1, 0, 2).reshape(hw * 4, hw)
    vw2p = vw2.reshape(2, hw, 64).transpose(1, 0, 2).reshape(hw * 2, 64)

    return {
        "conv_w": [w1, w2, w3],
        "conv_b": [b1.reshape(1, -1), b2.reshape(1, -1), b3.reshape(1, -1)],
        "head_w": head_w, "head_b": head_b,
        "pw2": pw2p, "pb2": pb2.reshape(1, -1),
        "vw2": vw2p, "vb2": vb2.reshape(1, -1),
        "vw3": vw3, "vb3": vb3.reshape(1, -1),
    }


# ---------------------------------------------------------------------------
# Forward pass (2 pallas_calls + tiny layout glue)
# ---------------------------------------------------------------------------
def my_net_forward(params, x_nchw):
    n, c, h, w = x_nchw.shape
    hw = h * w
    nb = n if n <= 8 else 8           # batch-chunk size for kernel 1
    assert n % nb == 0, "batch must be <= 8 or a multiple of 8"
    # NOTE: H, W are nicest when W is a multiple of 8 (sublane-aligned reshapes).

    x = jnp.transpose(x_nchw, (0, 2, 3, 1)).astype(jnp.float32)     # NCHW -> NHWC
    xp = jnp.pad(x, ((0, 0), (1, 1), (1, 1), (0, 0)))               # pad=1 once, in HBM

    heads = backbone_heads(xp, params["conv_w"], params["conv_b"],
                           params["head_w"], params["head_b"],
                           n=n, h=h, w=w, nb=nb)                    # (n*h*w, HEAD_PAD)

    # flatten per batch element; permutation already folded into pw2/vw2 -> pure reshape
    pflat = heads[:, :4].reshape(n, hw * 4)
    vflat = heads[:, 4:6].reshape(n, hw * 2)

    prob_out, value_out = heads_linear(pflat, vflat,
                                       params["pw2"], params["pb2"],
                                       params["vw2"], params["vb2"],
                                       params["vw3"], params["vb3"])
    return prob_out, value_out


# ---------------------------------------------------------------------------
# Independent pure-JAX (XLA) reference for correctness checking
# ---------------------------------------------------------------------------
def reference_forward(raw_params, x_nchw):
    n = x_nchw.shape[0]
    x = x_nchw.astype(jnp.float32)

    def conv(x, w9, b):
        cin, cout = w9.shape[1], w9.shape[2]
        wt = jnp.transpose(w9.reshape(3, 3, cin, cout), (3, 2, 0, 1))   # OIHW
        y = jax.lax.conv_general_dilated(
            x, wt, window_strides=(1, 1), padding="SAME",
            dimension_numbers=("NCHW", "OIHW", "NCHW"))
        return jnp.maximum(y + b.reshape(1, cout, 1, 1), 0.0)

    for (w9, b) in raw_params["backbone"]:
        x = conv(x, w9, b)

    pw1, pb1, pw2, pb2 = raw_params["prob"]
    vw1, vb1, vw2, vb2, vw3, vb3 = raw_params["value"]

    def conv1x1(x, wgt, b):
        y = jnp.einsum("nchw,cd->ndhw", x, wgt) + b.reshape(1, -1, 1, 1)
        return jnp.maximum(y, 0.0)

    p = conv1x1(x, pw1, pb1).reshape(n, -1)          # NCHW flatten (c-major)
    p = jax.nn.log_softmax(p @ pw2 + pb2, axis=-1)
    v = conv1x1(x, vw1, vb1).reshape(n, -1)
    v = jnp.maximum(v @ vw2 + vb2, 0.0)
    v = jnp.tanh(v @ vw3 + vb3)
    return p, v


if __name__ == "__main__":
    BATCH, CHANNEL, H, W = 2, 4, 8, 8

    key = jax.random.PRNGKey(0)
    k_params, k_x = jax.random.split(key)
    raw_params = init_params(k_params, CHANNEL, H, W)
    params = prepare_params(raw_params, H, W)        # one-time weight preprocessing
    x = jax.random.normal(k_x, (BATCH, CHANNEL, H, W), dtype=jnp.float32)

    fwd = jax.jit(my_net_forward)
    prob_out, value_out = fwd(params, x)
    jax.block_until_ready((prob_out, value_out))

    assert prob_out.shape == (BATCH, H * W)
    assert value_out.shape == (BATCH, 1)
    assert bool(jnp.allclose(jnp.sum(jnp.exp(prob_out), axis=-1), 1.0, atol=1e-4))
    assert bool(jnp.all(jnp.abs(value_out) <= 1.0))

    # cross-check against an independent XLA implementation of the same network
    ref_prob, ref_val = reference_forward(raw_params, x)
    assert bool(jnp.allclose(prob_out, ref_prob, atol=1e-3, rtol=1e-3))
    assert bool(jnp.allclose(value_out, ref_val, atol=1e-3, rtol=1e-3))

    print("KERNEL_OK")
</pallas_src>

<mosaic_0001>
module attributes {stable_mosaic.version = 11 : i64} {
  func.func @_backbone_heads_kernel(%arg0: i32, %arg1: memref<2x10x10x4xf32, #tpu.memory_space<vmem>>, %arg2: memref<9x4x32xf32, #tpu.memory_space<vmem>>, %arg3: memref<1x32xf32, #tpu.memory_space<vmem>>, %arg4: memref<9x32x64xf32, #tpu.memory_space<vmem>>, %arg5: memref<1x64xf32, #tpu.memory_space<vmem>>, %arg6: memref<9x64x128xf32, #tpu.memory_space<vmem>>, %arg7: memref<1x128xf32, #tpu.memory_space<vmem>>, %arg8: memref<128x128xf32, #tpu.memory_space<vmem>>, %arg9: memref<1x128xf32, #tpu.memory_space<vmem>>, %arg10: memref<128x128xf32, #tpu.memory_space<vmem>>, %arg11: memref<2x10x10x32xf32, #tpu.memory_space<vmem>>, %arg12: memref<2x10x10x64xf32, #tpu.memory_space<vmem>>) attributes {dimension_semantics = [#tpu.dimension_semantics<parallel>], iteration_bounds = array<i64: 1>, scalar_prefetch = 0 : i64, scratch_operands = 2 : i64, tpu.core_type = #tpu.core_type<tc>, window_params = [{transform_indices = @transform_0, window_bounds = array<i64: 2, 10, 10, 4>}, {pipeline_mode = #tpu.pipeline_mode<synchronous>, transform_indices = @transform_1, window_bounds = array<i64: 9, 4, 32>}, {pipeline_mode = #tpu.pipeline_mode<synchronous>, transform_indices = @transform_2, window_bounds = array<i64: 1, 32>}, {pipeline_mode = #tpu.pipeline_mode<synchronous>, transform_indices = @transform_3, window_bounds = array<i64: 9, 32, 64>}, {pipeline_mode = #tpu.pipeline_mode<synchronous>, transform_indices = @transform_4, window_bounds = array<i64: 1, 64>}, {pipeline_mode = #tpu.pipeline_mode<synchronous>, transform_indices = @transform_5, window_bounds = array<i64: 9, 64, 128>}, {pipeline_mode = #tpu.pipeline_mode<synchronous>, transform_indices = @transform_6, window_bounds = array<i64: 1, 128>}, {pipeline_mode = #tpu.pipeline_mode<synchronous>, transform_indices = @transform_7, window_bounds = array<i64: 128, 128>}, {pipeline_mode = #tpu.pipeline_mode<synchronous>, transform_indices = @transform_8, window_bounds = array<i64: 1, 128>}, {transform_indices = @transform_9, window_bounds = array<i64: 128, 128>}]} {
    %c0 = arith.constant 0 : index
    %c0_0 = arith.constant 0 : index
    %c0_1 = arith.constant 0 : index
    %0 = vector.load %arg2[%c0, %c0_0, %c0_1] : memref<9x4x32xf32, #tpu.memory_space<vmem>>, vector<9x4x32xf32>
    %cst = arith.constant 0.000000e+00 : f32
    %1 = vector.broadcast %cst : f32 to vector<128x32xf32>
    %c0_2 = arith.constant 0 : index
    %c0_3 = arith.constant 0 : index
    %c0_4 = arith.constant 0 : index
    %c0_5 = arith.constant 0 : index
    %2 = vector.load %arg1[%c0_2, %c0_3, %c0_4, %c0_5] : memref<2x10x10x4xf32, #tpu.memory_space<vmem>>, vector<2x8x8x4xf32>
    %3 = vector.shape_cast %2 : vector<2x8x8x4xf32> to vector<128x4xf32>
    %4 = vector.extract_strided_slice %0 {offsets = [0, 0, 0], sizes = [1, 4, 32], strides = [1, 1, 1]} : vector<9x4x32xf32> to vector<1x4x32xf32>
    %5 = vector.shape_cast %4 : vector<1x4x32xf32> to vector<4x32xf32>
    %cst_6 = arith.constant dense<0.000000e+00> : vector<128x32xf32>
    %6 = tpu.matmul %3, %5, %cst_6 {dimension_numbers = #tpu.dot_dimension_numbers<[1], [0], [0], [1], [0, 0, 1, 1], [], []>} : vector<128x4xf32>, vector<4x32xf32>, vector<128x32xf32> -> vector<128x32xf32>
    %7 = arith.addf %1, %6 : vector<128x32xf32>
    %c0_7 = arith.constant 0 : index
    %c0_8 = arith.constant 0 : index
    %c1 = arith.constant 1 : index
    %c0_9 = arith.constant 0 : index
    %8 = vector.load %arg1[%c0_7, %c0_8, %c1, %c0_9] : memref<2x10x10x4xf32, #tpu.memory_space<vmem>>, vector<2x8x8x4xf32>
    %9 = vector.shape_cast %8 : vector<2x8x8x4xf32> to vector<128x4xf32>
    %10 = vector.extract_strided_slice %0 {offsets = [1, 0, 0], sizes = [1, 4, 32], strides = [1, 1, 1]} : vector<9x4x32xf32> to vector<1x4x32xf32>
    %11 = vector.shape_cast %10 : vector<1x4x32xf32> to vector<4x32xf32>
    %cst_10 = arith.constant dense<0.000000e+00> : vector<128x32xf32>
    %12 = tpu.matmul %9, %11, %cst_10 {dimension_numbers = #tpu.dot_dimension_numbers<[1], [0], [0], [1], [0, 0, 1, 1], [], []>} : vector<128x4xf32>, vector<4x32xf32>, vector<128x32xf32> -> vector<128x32xf32>
    %13 = arith.addf %7, %12 : vector<128x32xf32>
    %c0_11 = arith.constant 0 : index
    %c0_12 = arith.constant 0 : index
    %c2 = arith.constant 2 : index
    %c0_13 = arith.constant 0 : index
    %14 = vector.load %arg1[%c0_11, %c0_12, %c2, %c0_13] : memref<2x10x10x4xf32, #tpu.memory_space<vmem>>, vector<2x8x8x4xf32>
    %15 = vector.shape_cast %14 : vector<2x8x8x4xf32> to vector<128x4xf32>
    %16 = vector.extract_strided_slice %0 {offsets = [2, 0, 0], sizes = [1, 4, 32], strides = [1, 1, 1]} : vector<9x4x32xf32> to vector<1x4x32xf32>
    %17 = vector.shape_cast %16 : vector<1x4x32xf32> to vector<4x32xf32>
    %cst_14 = arith.constant dense<0.000000e+00> : vector<128x32xf32>
    %18 = tpu.matmul %15, %17, %cst_14 {dimension_numbers = #tpu.dot_dimension_numbers<[1], [0], [0], [1], [0, 0, 1, 1], [], []>} : vector<128x4xf32>, vector<4x32xf32>, vector<128x32xf32> -> vector<128x32xf32>
    %19 = arith.addf %13, %18 : vector<128x32xf32>
    %c0_15 = arith.constant 0 : index
    %c1_16 = arith.constant 1 : index
    %c0_17 = arith.constant 0 : index
    %c0_18 = arith.constant 0 : index
    %20 = vector.load %arg1[%c0_15, %c1_16, %c0_17, %c0_18] : memref<2x10x10x4xf32, #tpu.memory_space<vmem>>, vector<2x8x8x4xf32>
    %21 = vector.shape_cast %20 : vector<2x8x8x4xf32> to vector<128x4xf32>
    %22 = vector.extract_strided_slice %0 {offsets = [3, 0, 0], sizes = [1, 4, 32], strides = [1, 1, 1]} : vector<9x4x32xf32> to vector<1x4x32xf32>
    %23 = vector.shape_cast %22 : vector<1x4x32xf32> to vector<4x32xf32>
    %cst_19 = arith.constant dense<0.000000e+00> : vector<128x32xf32>
    %24 = tpu.matmul %21, %23, %cst_19 {dimension_numbers = #tpu.dot_dimension_numbers<[1], [0], [0], [1], [0, 0, 1, 1], [], []>} : vector<128x4xf32>, vector<4x32xf32>, vector<128x32xf32> -> vector<128x32xf32>
    %25 = arith.addf %19, %24 : vector<128x32xf32>
    %c0_20 = arith.constant 0 : index
    %c1_21 = arith.constant 1 : index
    %c1_22 = arith.constant 1 : index
    %c0_23 = arith.constant 0 : index
    %26 = vector.load %arg1[%c0_20, %c1_21, %c1_22, %c0_23] : memref<2x10x10x4xf32, #tpu.memory_space<vmem>>, vector<2x8x8x4xf32>
    %27 = vector.shape_cast %26 : vector<2x8x8x4xf32> to vector<128x4xf32>
    %28 = vector.extract_strided_slice %0 {offsets = [4, 0, 0], sizes = [1, 4, 32], strides = [1, 1, 1]} : vector<9x4x32xf32> to vector<1x4x32xf32>
    %29 = vector.shape_cast %28 : vector<1x4x32xf32> to vector<4x32xf32>
    %cst_24 = arith.constant dense<0.000000e+00> : vector<128x32xf32>
    %30 = tpu.matmul %27, %29, %cst_24 {dimension_numbers = #tpu.dot_dimension_numbers<[1], [0], [0], [1], [0, 0, 1, 1], [], []>} : vector<128x4xf32>, vector<4x32xf32>, vector<128x32xf32> -> vector<128x32xf32>
    %31 = arith.addf %25, %30 : vector<128x32xf32>
    %c0_25 = arith.constant 0 : index
    %c1_26 = arith.constant 1 : index
    %c2_27 = arith.constant 2 : index
    %c0_28 = arith.constant 0 : index
    %32 = vector.load %arg1[%c0_25, %c1_26, %c2_27, %c0_28] : memref<2x10x10x4xf32, #tpu.memory_space<vmem>>, vector<2x8x8x4xf32>
    %33 = vector.shape_cast %32 : vector<2x8x8x4xf32> to vector<128x4xf32>
    %34 = vector.extract_strided_slice %0 {offsets = [5, 0, 0], sizes = [1, 4, 32], strides = [1, 1, 1]} : vector<9x4x32xf32> to vector<1x4x32xf32>
    %35 = vector.shape_cast %34 : vector<1x4x32xf32> to vector<4x32xf32>
    %cst_29 = arith.constant dense<0.000000e+00> : vector<128x32xf32>
    %36 = tpu.matmul %33, %35, %cst_29 {dimension_numbers = #tpu.dot_dimension_numbers<[1], [0], [0], [1], [0, 0, 1, 1], [], []>} : vector<128x4xf32>, vector<4x32xf32>, vector<128x32xf32> -> vector<128x32xf32>
    %37 = arith.addf %31, %36 : vector<128x32xf32>
    %c0_30 = arith.constant 0 : index
    %c2_31 = arith.constant 2 : index
    %c0_32 = arith.constant 0 : index
    %c0_33 = arith.constant 0 : index
    %38 = vector.load %arg1[%c0_30, %c2_31, %c0_32, %c0_33] : memref<2x10x10x4xf32, #tpu.memory_space<vmem>>, vector<2x8x8x4xf32>
    %39 = vector.shape_cast %38 : vector<2x8x8x4xf32> to vector<128x4xf32>
    %40 = vector.extract_strided_slice %0 {offsets = [6, 0, 0], sizes = [1, 4, 32], strides = [1, 1, 1]} : vector<9x4x32xf32> to vector<1x4x32xf32>
    %41 = vector.shape_cast %40 : vector<1x4x32xf32> to vector<4x32xf32>
    %cst_34 = arith.constant dense<0.000000e+00> : vector<128x32xf32>
    %42 = tpu.matmul %39, %41, %cst_34 {dimension_numbers = #tpu.dot_dimension_numbers<[1], [0], [0], [1], [0, 0, 1, 1], [], []>} : vector<128x4xf32>, vector<4x32xf32>, vector<128x32xf32> -> vector<128x32xf32>
    %43 = arith.addf %37, %42 : vector<128x32xf32>
    %c0_35 = arith.constant 0 : index
    %c2_36 = arith.constant 2 : index
    %c1_37 = arith.constant 1 : index
    %c0_38 = arith.constant 0 : index
    %44 = vector.load %arg1[%c0_35, %c2_36, %c1_37, %c0_38] : memref<2x10x10x4xf32, #tpu.memory_space<vmem>>, vector<2x8x8x4xf32>
    %45 = vector.shape_cast %44 : vector<2x8x8x4xf32> to vector<128x4xf32>
    %46 = vector.extract_strided_slice %0 {offsets = [7, 0, 0], sizes = [1, 4, 32], strides = [1, 1, 1]} : vector<9x4x32xf32> to vector<1x4x32xf32>
    %47 = vector.shape_cast %46 : vector<1x4x32xf32> to vector<4x32xf32>
    %cst_39 = arith.constant dense<0.000000e+00> : vector<128x32xf32>
    %48 = tpu.matmul %45, %47, %cst_39 {dimension_numbers = #tpu.dot_dimension_numbers<[1], [0], [0], [1], [0, 0, 1, 1], [], []>} : vector<128x4xf32>, vector<4x32xf32>, vector<128x32xf32> -> vector<128x32xf32>
    %49 = arith.addf %43, %48 : vector<128x32xf32>
    %c0_40 = arith.constant 0 : index
    %c2_41 = arith.constant 2 : index
    %c2_42 = arith.constant 2 : index
    %c0_43 = arith.constant 0 : index
    %50 = vector.load %arg1[%c0_40, %c2_41, %c2_42, %c0_43] : memref<2x10x10x4xf32, #tpu.memory_space<vmem>>, vector<2x8x8x4xf32>
    %51 = vector.shape_cast %50 : vector<2x8x8x4xf32> to vector<128x4xf32>
    %52 = vector.extract_strided_slice %0 {offsets = [8, 0, 0], sizes = [1, 4, 32], strides = [1, 1, 1]} : vector<9x4x32xf32> to vector<1x4x32xf32>
    %53 = vector.shape_cast %52 : vector<1x4x32xf32> to vector<4x32xf32>
    %cst_44 = arith.constant dense<0.000000e+00> : vector<128x32xf32>
    %54 = tpu.matmul %51, %53, %cst_44 {dimension_numbers = #tpu.dot_dimension_numbers<[1], [0], [0], [1], [0, 0, 1, 1], [], []>} : vector<128x4xf32>, vector<4x32xf32>, vector<128x32xf32> -> vector<128x32xf32>
    %55 = arith.addf %49, %54 : vector<128x32xf32>
    %c0_45 = arith.constant 0 : index
    %c0_46 = arith.constant 0 : index
    %56 = vector.load %arg3[%c0_45, %c0_46] : memref<1x32xf32, #tpu.memory_space<vmem>>, vector<1x32xf32>
    %57 = vector.broadcast %56 : vector<1x32xf32> to vector<128x32xf32>
    %58 = arith.addf %55, %57 : vector<128x32xf32>
    %cst_47 = arith.constant 0.000000e+00 : f32
    %59 = vector.broadcast %cst_47 : f32 to vector<128x32xf32>
    %60 = arith.maximumf %58, %59 : vector<128x32xf32>
    %cst_48 = arith.constant 0.000000e+00 : f32
    %61 = vector.broadcast %cst_48 : f32 to vector<2x10x10x32xf32>
    %c0_49 = arith.constant 0 : index
    %c0_50 = arith.constant 0 : index
    %c0_51 = arith.constant 0 : index
    %c0_52 = arith.constant 0 : index
    %62 = vector.load %arg11[%c0_49, %c0_50, %c0_51, %c0_52] : memref<2x10x10x32xf32, #tpu.memory_space<vmem>>, vector<2x10x10x32xf32>
    tpu.vector_store %arg11[%c0_49, %c0_50, %c0_51, %c0_52], %61 {strides = array<i32>} : memref<2x10x10x32xf32, #tpu.memory_space<vmem>>, vector<2x10x10x32xf32>,
    %63 = vector.shape_cast %60 : vector<128x32xf32> to vector<2x8x8x32xf32>
    %c0_53 = arith.constant 0 : index
    %c1_54 = arith.constant 1 : index
    %c1_55 = arith.constant 1 : index
    %c0_56 = arith.constant 0 : index
    %64 = vector.load %arg11[%c0_53, %c1_54, %c1_55, %c0_56] : memref<2x10x10x32xf32, #tpu.memory_space<vmem>>, vector<2x8x8x32xf32>
    tpu.vector_store %arg11[%c0_53, %c1_54, %c1_55, %c0_56], %63 {strides = array<i32>} : memref<2x10x10x32xf32, #tpu.memory_space<vmem>>, vector<2x8x8x32xf32>,
    %c0_57 = arith.constant 0 : index
    %c0_58 = arith.constant 0 : index
    %c0_59 = arith.constant 0 : index
    %65 = vector.load %arg4[%c0_57, %c0_58, %c0_59] : memref<9x32x64xf32, #tpu.memory_space<vmem>>, vector<9x32x64xf32>
    %cst_60 = arith.constant 0.000000e+00 : f32
    %66 = vector.broadcast %cst_60 : f32 to vector<128x64xf32>
    %c0_61 = arith.constant 0 : index
    %c0_62 = arith.constant 0 : index
    %c0_63 = arith.constant 0 : index
    %c0_64 = arith.constant 0 : index
    %67 = vector.load %arg11[%c0_61, %c0_62, %c0_63, %c0_64] : memref<2x10x10x32xf32, #tpu.memory_space<vmem>>, vector<2x8x8x32xf32>
    %68 = vector.shape_cast %67 : vector<2x8x8x32xf32> to vector<128x32xf32>
    %69 = vector.extract_strided_slice %65 {offsets = [0, 0, 0], sizes = [1, 32, 64], strides = [1, 1, 1]} : vector<9x32x64xf32> to vector<1x32x64xf32>
    %70 = vector.shape_cast %69 : vector<1x32x64xf32> to vector<32x64xf32>
    %cst_65 = arith.constant dense<0.000000e+00> : vector<128x64xf32>
    %71 = tpu.matmul %68, %70, %cst_65 {dimension_numbers = #tpu.dot_dimension_numbers<[1], [0], [0], [1], [0, 0, 1, 1], [], []>} : vector<128x32xf32>, vector<32x64xf32>, vector<128x64xf32> -> vector<128x64xf32>
    %72 = arith.addf %66, %71 : vector<128x64xf32>
    %c0_66 = arith.constant 0 : index
    %c0_67 = arith.constant 0 : index
    %c1_68 = arith.constant 1 : index
    %c0_69 = arith.constant 0 : index
    %73 = vector.load %arg11[%c0_66, %c0_67, %c1_68, %c0_69] : memref<2x10x10x32xf32, #tpu.memory_space<vmem>>, vector<2x8x8x32xf32>
    %74 = vector.shape_cast %73 : vector<2x8x8x32xf32> to vector<128x32xf32>
    %75 = vector.extract_strided_slice %65 {offsets = [1, 0, 0], sizes = [1, 32, 64], strides = [1, 1, 1]} : vector<9x32x64xf32> to vector<1x32x64xf32>
    %76 = vector.shape_cast %75 : vector<1x32x64xf32> to vector<32x64xf32>
    %cst_70 = arith.constant dense<0.000000e+00> : vector<128x64xf32>
    %77 = tpu.matmul %74, %76, %cst_70 {dimension_numbers = #tpu.dot_dimension_numbers<[1], [0], [0], [1], [0, 0, 1, 1], [], []>} : vector<128x32xf32>, vector<32x64xf32>, vector<128x64xf32> -> vector<128x64xf32>
    %78 = arith.addf %72, %77 : vector<128x64xf32>
    %c0_71 = arith.constant 0 : index
    %c0_72 = arith.constant 0 : index
    %c2_73 = arith.constant 2 : index
    %c0_74 = arith.constant 0 : index
    %79 = vector.load %arg11[%c0_71, %c0_72, %c2_73, %c0_74] : memref<2x10x10x32xf32, #tpu.memory_space<vmem>>, vector<2x8x8x32xf32>
    %80 = vector.shape_cast %79 : vector<2x8x8x32xf32> to vector<128x32xf32>
    %81 = vector.extract_strided_slice %65 {offsets = [2, 0, 0], sizes = [1, 32, 64], strides = [1, 1, 1]} : vector<9x32x64xf32> to vector<1x32x64xf32>
    %82 = vector.shape_cast %81 : vector<1x32x64xf32> to vector<32x64xf32>
    %cst_75 = arith.constant dense<0.000000e+00> : vector<128x64xf32>
    %83 = tpu.matmul %80, %82, %cst_75 {dimension_numbers = #tpu.dot_dimension_numbers<[1], [0], [0], [1], [0, 0, 1, 1], [], []>} : vector<128x32xf32>, vector<32x64xf32>, vector<128x64xf32> -> vector<128x64xf32>
    %84 = arith.addf %78, %83 : vector<128x64xf32>
    %c0_76 = arith.constant 0 : index
    %c1_77 = arith.constant 1 : index
    %c0_78 = arith.constant 0 : index
    %c0_79 = arith.constant 0 : index
    %85 = vector.load %arg11[%c0_76, %c1_77, %c0_78, %c0_79] : memref<2x10x10x32xf32, #tpu.memory_space<vmem>>, vector<2x8x8x32xf32>
    %86 = vector.shape_cast %85 : vector<2x8x8x32xf32> to vector<128x32xf32>
    %87 = vector.extract_strided_slice %65 {offsets = [3, 0, 0], sizes = [1, 32, 64], strides = [1, 1, 1]} : vector<9x32x64xf32> to vector<1x32x64xf32>
    %88 = vector.shape_cast %87 : vector<1x32x64xf32> to vector<32x64xf32>
    %cst_80 = arith.constant dense<0.000000e+00> : vector<128x64xf32>
    %89 = tpu.matmul %86, %88, %cst_80 {dimension_numbers = #tpu.dot_dimension_numbers<[1], [0], [0], [1], [0, 0, 1, 1], [], []>} : vector<128x32xf32>, vector<32x64xf32>, vector<128x64xf32> -> vector<128x64xf32>
    %90 = arith.addf %84, %89 : vector<128x64xf32>
    %c0_81 = arith.constant 0 : index
    %c1_82 = arith.constant 1 : index
    %c1_83 = arith.constant 1 : index
    %c0_84 = arith.constant 0 : index
    %91 = vector.load %arg11[%c0_81, %c1_82, %c1_83, %c0_84] : memref<2x10x10x32xf32, #tpu.memory_space<vmem>>, vector<2x8x8x32xf32>
    %92 = vector.shape_cast %91 : vector<2x8x8x32xf32> to vector<128x32xf32>
    %93 = vector.extract_strided_slice %65 {offsets = [4, 0, 0], sizes = [1, 32, 64], strides = [1, 1, 1]} : vector<9x32x64xf32> to vector<1x32x64xf32>
    %94 = vector.shape_cast %93 : vector<1x32x64xf32> to vector<32x64xf32>
    %cst_85 = arith.constant dense<0.000000e+00> : vector<128x64xf32>
    %95 = tpu.matmul %92, %94, %cst_85 {dimension_numbers = #tpu.dot_dimension_numbers<[1], [0], [0], [1], [0, 0, 1, 1], [], []>} : vector<128x32xf32>, vector<32x64xf32>, vector<128x64xf32> -> vector<128x64xf32>
    %96 = arith.addf %90, %95 : vector<128x64xf32>
    %c0_86 = arith.constant 0 : index
    %c1_87 = arith.constant 1 : index
    %c2_88 = arith.constant 2 : index
    %c0_89 = arith.constant 0 : index
    %97 = vector.load %arg11[%c0_86, %c1_87, %c2_88, %c0_89] : memref<2x10x10x32xf32, #tpu.memory_space<vmem>>, vector<2x8x8x32xf32>
    %98 = vector.shape_cast %97 : vector<2x8x8x32xf32> to vector<128x32xf32>
    %99 = vector.extract_strided_slice %65 {offsets = [5, 0, 0], sizes = [1, 32, 64], strides = [1, 1, 1]} : vector<9x32x64xf32> to vector<1x32x64xf32>
    %100 = vector.shape_cast %99 : vector<1x32x64xf32> to vector<32x64xf32>
    %cst_90 = arith.constant dense<0.000000e+00> : vector<128x64xf32>
    %101 = tpu.matmul %98, %100, %cst_90 {dimension_numbers = #tpu.dot_dimension_numbers<[1], [0], [0], [1], [0, 0, 1, 1], [], []>} : vector<128x32xf32>, vector<32x64xf32>, vector<128x64xf32> -> vector<128x64xf32>
    %102 = arith.addf %96, %101 : vector<128x64xf32>
    %c0_91 = arith.constant 0 : index
    %c2_92 = arith.constant 2 : index
    %c0_93 = arith.constant 0 : index
    %c0_94 = arith.constant 0 : index
    %103 = vector.load %arg11[%c0_91, %c2_92, %c0_93, %c0_94] : memref<2x10x10x32xf32, #tpu.memory_space<vmem>>, vector<2x8x8x32xf32>
    %104 = vector.shape_cast %103 : vector<2x8x8x32xf32> to vector<128x32xf32>
    %105 = vector.extract_strided_slice %65 {offsets = [6, 0, 0], sizes = [1, 32, 64], strides = [1, 1, 1]} : vector<9x32x64xf32> to vector<1x32x64xf32>
    %106 = vector.shape_cast %105 : vector<1x32x64xf32> to vector<32x64xf32>
    %cst_95 = arith.constant dense<0.000000e+00> : vector<128x64xf32>
    %107 = tpu.matmul %104, %106, %cst_95 {dimension_numbers = #tpu.dot_dimension_numbers<[1], [0], [0], [1], [0, 0, 1, 1], [], []>} : vector<128x32xf32>, vector<32x64xf32>, vector<128x64xf32> -> vector<128x64xf32>
    %108 = arith.addf %102, %107 : vector<128x64xf32>
    %c0_96 = arith.constant 0 : index
    %c2_97 = arith.constant 2 : index
    %c1_98 = arith.constant 1 : index
    %c0_99 = arith.constant 0 : index
    %109 = vector.load %arg11[%c0_96, %c2_97, %c1_98, %c0_99] : memref<2x10x10x32xf32, #tpu.memory_space<vmem>>, vector<2x8x8x32xf32>
    %110 = vector.shape_cast %109 : vector<2x8x8x32xf32> to vector<128x32xf32>
    %111 = vector.extract_strided_slice %65 {offsets = [7, 0, 0], sizes = [1, 32, 64], strides = [1, 1, 1]} : vector<9x32x64xf32> to vector<1x32x64xf32>
    %112 = vector.shape_cast %111 : vector<1x32x64xf32> to vector<32x64xf32>
    %cst_100 = arith.constant dense<0.000000e+00> : vector<128x64xf32>
    %113 = tpu.matmul %110, %112, %cst_100 {dimension_numbers = #tpu.dot_dimension_numbers<[1], [0], [0], [1], [0, 0, 1, 1], [], []>} : vector<128x32xf32>, vector<32x64xf32>, vector<128x64xf32> -> vector<128x64xf32>
    %114 = arith.addf %108, %113 : vector<128x64xf32>
    %c0_101 = arith.constant 0 : index
    %c2_102 = arith.constant 2 : index
    %c2_103 = arith.constant 2 : index
    %c0_104 = arith.constant 0 : index
    %115 = vector.load %arg11[%c0_101, %c2_102, %c2_103, %c0_104] : memref<2x10x10x32xf32, #tpu.memory_space<vmem>>, vector<2x8x8x32xf32>
    %116 = vector.shape_cast %115 : vector<2x8x8x32xf32> to vector<128x32xf32>
    %117 = vector.extract_strided_slice %65 {offsets = [8, 0, 0], sizes = [1, 32, 64], strides = [1, 1, 1]} : vector<9x32x64xf32> to vector<1x32x64xf32>
    %118 = vector.shape_cast %117 : vector<1x32x64xf32> to vector<32x64xf32>
    %cst_105 = arith.constant dense<0.000000e+00> : vector<128x64xf32>
    %119 = tpu.matmul %116, %118, %cst_105 {dimension_numbers = #tpu.dot_dimension_numbers<[1], [0], [0], [1], [0, 0, 1, 1], [], []>} : vector<128x32xf32>, vector<32x64xf32>, vector<128x64xf32> -> vector<128x64xf32>
    %120 = arith.addf %114, %119 : vector<128x64xf32>
    %c0_106 = arith.constant 0 : index
    %c0_107 = arith.constant 0 : index
    %121 = vector.load %arg5[%c0_106, %c0_107] : memref<1x64xf32, #tpu.memory_space<vmem>>, vector<1x64xf32>
    %122 = vector.broadcast %121 : vector<1x64xf32> to vector<128x64xf32>
    %123 = arith.addf %120, %122 : vector<128x64xf32>
    %cst_108 = arith.constant 0.000000e+00 : f32
    %124 = vector.broadcast %cst_108 : f32 to vector<128x64xf32>
    %125 = arith.maximumf %123, %124 : vector<128x64xf32>
    %cst_109 = arith.constant 0.000000e+00 : f32
    %126 = vector.broadcast %cst_109 : f32 to vector<2x10x10x64xf32>
    %c0_110 = arith.constant 0 : index
    %c0_111 = arith.constant 0 : index
    %c0_112 = arith.constant 0 : index
    %c0_113 = arith.constant 0 : index
    %127 = vector.load %arg12[%c0_110, %c0_111, %c0_112, %c0_113] : memref<2x10x10x64xf32, #tpu.memory_space<vmem>>, vector<2x10x10x64xf32>
    tpu.vector_store %arg12[%c0_110, %c0_111, %c0_112, %c0_113], %126 {strides = array<i32>} : memref<2x10x10x64xf32, #tpu.memory_space<vmem>>, vector<2x10x10x64xf32>,
    %128 = vector.shape_cast %125 : vector<128x64xf32> to vector<2x8x8x64xf32>
    %c0_114 = arith.constant 0 : index
    %c1_115 = arith.constant 1 : index
    %c1_116 = arith.constant 1 : index
    %c0_117 = arith.constant 0 : index
    %129 = vector.load %arg12[%c0_114, %c1_115, %c1_116, %c0_117] : memref<2x10x10x64xf32, #tpu.memory_space<vmem>>, vector<2x8x8x64xf32>
    tpu.vector_store %arg12[%c0_114, %c1_115, %c1_116, %c0_117], %128 {strides = array<i32>} : memref<2x10x10x64xf32, #tpu.memory_space<vmem>>, vector<2x8x8x64xf32>,
    %c0_118 = arith.constant 0 : index
    %c0_119 = arith.constant 0 : index
    %c0_120 = arith.constant 0 : index
    %130 = vector.load %arg6[%c0_118, %c0_119, %c0_120] : memref<9x64x128xf32, #tpu.memory_space<vmem>>, vector<9x64x128xf32>
    %cst_121 = arith.constant 0.000000e+00 : f32
    %131 = vector.broadcast %cst_121 : f32 to vector<128x128xf32>
    %c0_122 = arith.constant 0 : index
    %c0_123 = arith.constant 0 : index
    %c0_124 = arith.constant 0 : index
    %c0_125 = arith.constant 0 : index
    %132 = vector.load %arg12[%c0_122, %c0_123, %c0_124, %c0_125] : memref<2x10x10x64xf32, #tpu.memory_space<vmem>>, vector<2x8x8x64xf32>
    %133 = vector.shape_cast %132 : vector<2x8x8x64xf32> to vector<128x64xf32>
    %134 = vector.extract_strided_slice %130 {offsets = [0, 0, 0], sizes = [1, 64, 128], strides = [1, 1, 1]} : vector<9x64x128xf32> to vector<1x64x128xf32>
    %135 = vector.shape_cast %134 : vector<1x64x128xf32> to vector<64x128xf32>
    %cst_126 = arith.constant dense<0.000000e+00> : vector<128x128xf32>
    %136 = tpu.matmul %133, %135, %cst_126 {dimension_numbers = #tpu.dot_dimension_numbers<[1], [0], [0], [1], [0, 0, 1, 1], [], []>} : vector<128x64xf32>, vector<64x128xf32>, vector<128x128xf32> -> vector<128x128xf32>
    %137 = arith.addf %131, %136 : vector<128x128xf32>
    %c0_127 = arith.constant 0 : index
    %c0_128 = arith.constant 0 : index
    %c1_129 = arith.constant 1 : index
    %c0_130 = arith.constant 0 : index
    %138 = vector.load %arg12[%c0_127, %c0_128, %c1_129, %c0_130] : memref<2x10x10x64xf32, #tpu.memory_space<vmem>>, vector<2x8x8x64xf32>
    %139 = vector.shape_cast %138 : vector<2x8x8x64xf32> to vector<128x64xf32>
    %140 = vector.extract_strided_slice %130 {offsets = [1, 0, 0], sizes = [1, 64, 128], strides = [1, 1, 1]} : vector<9x64x128xf32> to vector<1x64x128xf32>
    %141 = vector.shape_cast %140 : vector<1x64x128xf32> to vector<64x128xf32>
    %cst_131 = arith.constant dense<0.000000e+00> : vector<128x128xf32>
    %142 = tpu.matmul %139, %141, %cst_131 {dimension_numbers = #tpu.dot_dimension_numbers<[1], [0], [0], [1], [0, 0, 1, 1], [], []>} : vector<128x64xf32>, vector<64x128xf32>, vector<128x128xf32> -> vector<128x128xf32>
    %143 = arith.addf %137, %142 : vector<128x128xf32>
    %c0_132 = arith.constant 0 : index
    %c0_133 = arith.constant 0 : index
    %c2_134 = arith.constant 2 : index
    %c0_135 = arith.constant 0 : index
    %144 = vector.load %arg12[%c0_132, %c0_133, %c2_134, %c0_135] : memref<2x10x10x64xf32, #tpu.memory_space<vmem>>, vector<2x8x8x64xf32>
    %145 = vector.shape_cast %144 : vector<2x8x8x64xf32> to vector<128x64xf32>
    %146 = vector.extract_strided_slice %130 {offsets = [2, 0, 0], sizes = [1, 64, 128], strides = [1, 1, 1]} : vector<9x64x128xf32> to vector<1x64x128xf32>
    %147 = vector.shape_cast %146 : vector<1x64x128xf32> to vector<64x128xf32>
    %cst_136 = arith.constant dense<0.000000e+00> : vector<128x128xf32>
    %148 = tpu.matmul %145, %147, %cst_136 {dimension_numbers = #tpu.dot_dimension_numbers<[1], [0], [0], [1], [0, 0, 1, 1], [], []>} : vector<128x64xf32>, vector<64x128xf32>, vector<128x128xf32> -> vector<128x128xf32>
    %149 = arith.addf %143, %148 : vector<128x128xf32>
    %c0_137 = arith.constant 0 : index
    %c1_138 = arith.constant 1 : index
    %c0_139 = arith.constant 0 : index
    %c0_140 = arith.constant 0 : index
    %150 = vector.load %arg12[%c0_137, %c1_138, %c0_139, %c0_140] : memref<2x10x10x64xf32, #tpu.memory_space<vmem>>, vector<2x8x8x64xf32>
    %151 = vector.shape_cast %150 : vector<2x8x8x64xf32> to vector<128x64xf32>
    %152 = vector.extract_strided_slice %130 {offsets = [3, 0, 0], sizes = [1, 64, 128], strides = [1, 1, 1]} : vector<9x64x128xf32> to vector<1x64x128xf32>
    %153 = vector.shape_cast %152 : vector<1x64x128xf32> to vector<64x128xf32>
    %cst_141 = arith.constant dense<0.000000e+00> : vector<128x128xf32>
    %154 = tpu.matmul %151, %153, %cst_141 {dimension_numbers = #tpu.dot_dimension_numbers<[1], [0], [0], [1], [0, 0, 1, 1], [], []>} : vector<128x64xf32>, vector<64x128xf32>, vector<128x128xf32> -> vector<128x128xf32>
    %155 = arith.addf %149, %154 : vector<128x128xf32>
    %c0_142 = arith.constant 0 : index
    %c1_143 = arith.constant 1 : index
    %c1_144 = arith.constant 1 : index
    %c0_145 = arith.constant 0 : index
    %156 = vector.load %arg12[%c0_142, %c1_143, %c1_144, %c0_145] : memref<2x10x10x64xf32, #tpu.memory_space<vmem>>, vector<2x8x8x64xf32>
    %157 = vector.shape_cast %156 : vector<2x8x8x64xf32> to vector<128x64xf32>
    %158 = vector.extract_strided_slice %130 {offsets = [4, 0, 0], sizes = [1, 64, 128], strides = [1, 1, 1]} : vector<9x64x128xf32> to vector<1x64x128xf32>
    %159 = vector.shape_cast %158 : vector<1x64x128xf32> to vector<64x128xf32>
    %cst_146 = arith.constant dense<0.000000e+00> : vector<128x128xf32>
    %160 = tpu.matmul %157, %159, %cst_146 {dimension_numbers = #tpu.dot_dimension_numbers<[1], [0], [0], [1], [0, 0, 1, 1], [], []>} : vector<128x64xf32>, vector<64x128xf32>, vector<128x128xf32> -> vector<128x128xf32>
    %161 = arith.addf %155, %160 : vector<128x128xf32>
    %c0_147 = arith.constant 0 : index
    %c1_148 = arith.constant 1 : index
    %c2_149 = arith.constant 2 : index
    %c0_150 = arith.constant 0 : index
    %162 = vector.load %arg12[%c0_147, %c1_148, %c2_149, %c0_150] : memref<2x10x10x64xf32, #tpu.memory_space<vmem>>, vector<2x8x8x64xf32>
    %163 = vector.shape_cast %162 : vector<2x8x8x64xf32> to vector<128x64xf32>
    %164 = vector.extract_strided_slice %130 {offsets = [5, 0, 0], sizes = [1, 64, 128], strides = [1, 1, 1]} : vector<9x64x128xf32> to vector<1x64x128xf32>
    %165 = vector.shape_cast %164 : vector<1x64x128xf32> to vector<64x128xf32>
    %cst_151 = arith.constant dense<0.000000e+00> : vector<128x128xf32>
    %166 = tpu.matmul %163, %165, %cst_151 {dimension_numbers = #tpu.dot_dimension_numbers<[1], [0], [0], [1], [0, 0, 1, 1], [], []>} : vector<128x64xf32>, vector<64x128xf32>, vector<128x128xf32> -> vector<128x128xf32>
    %167 = arith.addf %161, %166 : vector<128x128xf32>
    %c0_152 = arith.constant 0 : index
    %c2_153 = arith.constant 2 : index
    %c0_154 = arith.constant 0 : index
    %c0_155 = arith.constant 0 : index
    %168 = vector.load %arg12[%c0_152, %c2_153, %c0_154, %c0_155] : memref<2x10x10x64xf32, #tpu.memory_space<vmem>>, vector<2x8x8x64xf32>
    %169 = vector.shape_cast %168 : vector<2x8x8x64xf32> to vector<128x64xf32>
    %170 = vector.extract_strided_slice %130 {offsets = [6, 0, 0], sizes = [1, 64, 128], strides = [1, 1, 1]} : vector<9x64x128xf32> to vector<1x64x128xf32>
    %171 = vector.shape_cast %170 : vector<1x64x128xf32> to vector<64x128xf32>
    %cst_156 = arith.constant dense<0.000000e+00> : vector<128x128xf32>
    %172 = tpu.matmul %169, %171, %cst_156 {dimension_numbers = #tpu.dot_dimension_numbers<[1], [0], [0], [1], [0, 0, 1, 1], [], []>} : vector<128x64xf32>, vector<64x128xf32>, vector<128x128xf32> -> vector<128x128xf32>
    %173 = arith.addf %167, %172 : vector<128x128xf32>
    %c0_157 = arith.constant 0 : index
    %c2_158 = arith.constant 2 : index
    %c1_159 = arith.constant 1 : index
    %c0_160 = arith.constant 0 : index
    %174 = vector.load %arg12[%c0_157, %c2_158, %c1_159, %c0_160] : memref<2x10x10x64xf32, #tpu.memory_space<vmem>>, vector<2x8x8x64xf32>
    %175 = vector.shape_cast %174 : vector<2x8x8x64xf32> to vector<128x64xf32>
    %176 = vector.extract_strided_slice %130 {offsets = [7, 0, 0], sizes = [1, 64, 128], strides = [1, 1, 1]} : vector<9x64x128xf32> to vector<1x64x128xf32>
    %177 = vector.shape_cast %176 : vector<1x64x128xf32> to vector<64x128xf32>
    %cst_161 = arith.constant dense<0.000000e+00> : vector<128x128xf32>
    %178 = tpu.matmul %175, %177, %cst_161 {dimension_numbers = #tpu.dot_dimension_numbers<[1], [0], [0], [1], [0, 0, 1, 1], [], []>} : vector<128x64xf32>, vector<64x128xf32>, vector<128x128xf32> -> vector<128x128xf32>
    %179 = arith.addf %173, %178 : vector<128x128xf32>
    %c0_162 = arith.constant 0 : index
    %c2_163 = arith.constant 2 : index
    %c2_164 = arith.constant 2 : index
    %c0_165 = arith.constant 0 : index
    %180 = vector.load %arg12[%c0_162, %c2_163, %c2_164, %c0_165] : memref<2x10x10x64xf32, #tpu.memory_space<vmem>>, vector<2x8x8x64xf32>
    %181 = vector.shape_cast %180 : vector<2x8x8x64xf32> to vector<128x64xf32>
    %182 = vector.extract_strided_slice %130 {offsets = [8, 0, 0], sizes = [1, 64, 128], strides = [1, 1, 1]} : vector<9x64x128xf32> to vector<1x64x128xf32>
    %183 = vector.shape_cast %182 : vector<1x64x128xf32> to vector<64x128xf32>
    %cst_166 = arith.constant dense<0.000000e+00> : vector<128x128xf32>
    %184 = tpu.matmul %181, %183, %cst_166 {dimension_numbers = #tpu.dot_dimension_numbers<[1], [0], [0], [1], [0, 0, 1, 1], [], []>} : vector<128x64xf32>, vector<64x128xf32>, vector<128x128xf32> -> vector<128x128xf32>
    %185 = arith.addf %179, %184 : vector<128x128xf32>
    %c0_167 = arith.constant 0 : index
    %c0_168 = arith.constant 0 : index
    %186 = vector.load %arg7[%c0_167, %c0_168] : memref<1x128xf32, #tpu.memory_space<vmem>>, vector<1x128xf32>
    %187 = vector.broadcast %186 : vector<1x128xf32> to vector<128x128xf32>
    %188 = arith.addf %185, %187 : vector<128x128xf32>
    %cst_169 = arith.constant 0.000000e+00 : f32
    %189 = vector.broadcast %cst_169 : f32 to vector<128x128xf32>
    %190 = arith.maximumf %188, %189 : vector<128x128xf32>
    %c0_170 = arith.constant 0 : index
    %c0_171 = arith.constant 0 : index
    %191 = vector.load %arg8[%c0_170, %c0_171] : memref<128x128xf32, #tpu.memory_space<vmem>>, vector<128x128xf32>
    %cst_172 = arith.constant dense<0.000000e+00> : vector<128x128xf32>
    %192 = tpu.matmul %190, %191, %cst_172 {dimension_numbers = #tpu.dot_dimension_numbers<[1], [0], [0], [1], [0, 0, 1, 1], [], []>} : vector<128x128xf32>, vector<128x128xf32>, vector<128x128xf32> -> vector<128x128xf32>
    %c0_173 = arith.constant 0 : index
    %c0_174 = arith.constant 0 : index
    %193 = vector.load %arg9[%c0_173, %c0_174] : memref<1x128xf32, #tpu.memory_space<vmem>>, vector<1x128xf32>
    %194 = vector.broadcast %193 : vector<1x128xf32> to vector<128x128xf32>
    %195 = arith.addf %192, %194 : vector<128x128xf32>
    %cst_175 = arith.constant 0.000000e+00 : f32
    %196 = vector.broadcast %cst_175 : f32 to vector<128x128xf32>
    %197 = arith.maximumf %195, %196 : vector<128x128xf32>
    %c0_176 = arith.constant 0 : index
    %c0_177 = arith.constant 0 : index
    %198 = vector.load %arg10[%c0_176, %c0_177] : memref<128x128xf32, #tpu.memory_space<vmem>>, vector<128x128xf32>
    tpu.vector_store %arg10[%c0_176, %c0_177], %197 {strides = array<i32>} : memref<128x128xf32, #tpu.memory_space<vmem>>, vector<128x128xf32>,
    return
  }
  func.func @transform_0(%arg0: i32) -> (i32, i32, i32, i32) {
    %c0_i32 = arith.constant 0 : i32
    %c0_i32_0 = arith.constant 0 : i32
    %c0_i32_1 = arith.constant 0 : i32
    %c0_i32_2 = arith.constant 0 : i32
    return %arg0, %c0_i32, %c0_i32_0, %c0_i32_1 : i32, i32, i32, i32
  }
  func.func @transform_1(%arg0: i32) -> (i32, i32, i32) {
    %c0_i32 = arith.constant 0 : i32
    %c0_i32_0 = arith.constant 0 : i32
    %c0_i32_1 = arith.constant 0 : i32
    %c0_i32_2 = arith.constant 0 : i32
    return %c0_i32, %c0_i32_0, %c0_i32_1 : i32, i32, i32
  }
  func.func @transform_2(%arg0: i32) -> (i32, i32) {
    %c0_i32 = arith.constant 0 : i32
    %c0_i32_0 = arith.constant 0 : i32
    %c0_i32_1 = arith.constant 0 : i32
    return %c0_i32, %c0_i32_0 : i32, i32
  }
  func.func @transform_3(%arg0: i32) -> (i32, i32, i32) {
    %c0_i32 = arith.constant 0 : i32
    %c0_i32_0 = arith.constant 0 : i32
    %c0_i32_1 = arith.constant 0 : i32
    %c0_i32_2 = arith.constant 0 : i32
    return %c0_i32, %c0_i32_0, %c0_i32_1 : i32, i32, i32
  }
  func.func @transform_4(%arg0: i32) -> (i32, i32) {
    %c0_i32 = arith.constant 0 : i32
    %c0_i32_0 = arith.constant 0 : i32
    %c0_i32_1 = arith.constant 0 : i32
    return %c0_i32, %c0_i32_0 : i32, i32
  }
  func.func @transform_5(%arg0: i32) -> (i32, i32, i32) {
    %c0_i32 = arith.constant 0 : i32
    %c0_i32_0 = arith.constant 0 : i32
    %c0_i32_1 = arith.constant 0 : i32
    %c0_i32_2 = arith.constant 0 : i32
    return %c0_i32, %c0_i32_0, %c0_i32_1 : i32, i32, i32
  }
  func.func @transform_6(%arg0: i32) -> (i32, i32) {
    %c0_i32 = arith.constant 0 : i32
    %c0_i32_0 = arith.constant 0 : i32
    %c0_i32_1 = arith.constant 0 : i32
    return %c0_i32, %c0_i32_0 : i32, i32
  }
  func.func @transform_7(%arg0: i32) -> (i32, i32) {
    %c0_i32 = arith.constant 0 : i32
    %c0_i32_0 = arith.constant 0 : i32
    %c0_i32_1 = arith.constant 0 : i32
    return %c0_i32, %c0_i32_0 : i32, i32
  }
  func.func @transform_8(%arg0: i32) -> (i32, i32) {
    %c0_i32 = arith.constant 0 : i32
    %c0_i32_0 = arith.constant 0 : i32
    %c0_i32_1 = arith.constant 0 : i32
    return %c0_i32, %c0_i32_0 : i32, i32
  }
  func.func @transform_9(%arg0: i32) -> (i32, i32) {
    %c0_i32 = arith.constant 0 : i32
    %c0_i32_0 = arith.constant 0 : i32
    return %arg0, %c0_i32 : i32, i32
  }
}

module attributes {stable_mosaic.version = 11 : i64} {
  func.func @_heads_linear_kernel(%arg0: i32, %arg1: memref<2x256xf32, #tpu.memory_space<vmem>>, %arg2: memref<2x128xf32, #tpu.memory_space<vmem>>, %arg3: memref<256x64xf32, #tpu.memory_space<vmem>>, %arg4: memref<1x64xf32, #tpu.memory_space<vmem>>, %arg5: memref<128x64xf32, #tpu.memory_space<vmem>>, %arg6: memref<1x64xf32, #tpu.memory_space<vmem>>, %arg7: memref<64x1xf32, #tpu.memory_space<vmem>>, %arg8: memref<1x1xf32, #tpu.memory_space<vmem>>, %arg9: memref<2x64xf32, #tpu.memory_space<vmem>>, %arg10: memref<2x1xf32, #tpu.memory_space<vmem>>) attributes {dimension_semantics = [#tpu.dimension_semantics<arbitrary>], iteration_bounds = array<i64: 1>, scalar_prefetch = 0 : i64, scratch_operands = 0 : i64, tpu.core_type = #tpu.core_type<tc>, window_params = [{pipeline_mode = #tpu.pipeline_mode<synchronous>, transform_indices = @transform_0, window_bounds = array<i64: 2, 256>}, {pipeline_mode = #tpu.pipeline_mode<synchronous>, transform_indices = @transform_1, window_bounds = array<i64: 2, 128>}, {pipeline_mode = #tpu.pipeline_mode<synchronous>, transform_indices = @transform_2, window_bounds = array<i64: 256, 64>}, {pipeline_mode = #tpu.pipeline_mode<synchronous>, transform_indices = @transform_3, window_bounds = array<i64: 1, 64>}, {pipeline_mode = #tpu.pipeline_mode<synchronous>, transform_indices = @transform_4, window_bounds = array<i64: 128, 64>}, {pipeline_mode = #tpu.pipeline_mode<synchronous>, transform_indices = @transform_5, window_bounds = array<i64: 1, 64>}, {pipeline_mode = #tpu.pipeline_mode<synchronous>, transform_indices = @transform_6, window_bounds = array<i64: 64, 1>}, {pipeline_mode = #tpu.pipeline_mode<synchronous>, transform_indices = @transform_7, window_bounds = array<i64: 1, 1>}, {pipeline_mode = #tpu.pipeline_mode<synchronous>, transform_indices = @transform_8, window_bounds = array<i64: 2, 64>}, {pipeline_mode = #tpu.pipeline_mode<synchronous>, transform_indices = @transform_9, window_bounds = array<i64: 2, 1>}]} {
    %c0 = arith.constant 0 : index
    %c0_0 = arith.constant 0 : index
    %0 = vector.load %arg1[%c0, %c0_0] : memref<2x256xf32, #tpu.memory_space<vmem>>, vector<2x256xf32>
    %c0_1 = arith.constant 0 : index
    %c0_2 = arith.constant 0 : index
    %1 = vector.load %arg3[%c0_1, %c0_2] : memref<256x64xf32, #tpu.memory_space<vmem>>, vector<256x64xf32>
    %cst = arith.constant dense<0.000000e+00> : vector<2x64xf32>
    %2 = tpu.matmul %0, %1, %cst {dimension_numbers = #tpu.dot_dimension_numbers<[1], [0], [0], [1], [0, 0, 1, 1], [], []>} : vector<2x256xf32>, vector<256x64xf32>, vector<2x64xf32> -> vector<2x64xf32>
    %c0_3 = arith.constant 0 : index
    %c0_4 = arith.constant 0 : index
    %3 = vector.load %arg4[%c0_3, %c0_4] : memref<1x64xf32, #tpu.memory_space<vmem>>, vector<1x64xf32>
    %4 = vector.broadcast %3 : vector<1x64xf32> to vector<2x64xf32>
    %5 = arith.addf %2, %4 : vector<2x64xf32>
    %cst_5 = arith.constant dense<0xFF800000> : vector<2xf32>
    %6 = vector.multi_reduction <maximumf>, %5, %cst_5 [1] : vector<2x64xf32> to vector<2xf32>
    %7 = vector.shape_cast %6 : vector<2xf32> to vector<2x1xf32>
    %8 = vector.broadcast %7 : vector<2x1xf32> to vector<2x64xf32>
    %9 = arith.subf %5, %8 : vector<2x64xf32>
    %10 = math.exp %9 : vector<2x64xf32>
    %cst_6 = arith.constant dense<0.000000e+00> : vector<2xf32>
    %11 = vector.multi_reduction <add>, %10, %cst_6 [1] : vector<2x64xf32> to vector<2xf32>
    %12 = vector.shape_cast %11 : vector<2xf32> to vector<2x1xf32>
    %13 = math.log %12 : vector<2x1xf32>
    %14 = vector.broadcast %13 : vector<2x1xf32> to vector<2x64xf32>
    %15 = arith.subf %9, %14 : vector<2x64xf32>
    %c0_7 = arith.constant 0 : index
    %c0_8 = arith.constant 0 : index
    %16 = vector.load %arg9[%c0_7, %c0_8] : memref<2x64xf32, #tpu.memory_space<vmem>>, vector<2x64xf32>
    tpu.vector_store %arg9[%c0_7, %c0_8], %15 {strides = array<i32>} : memref<2x64xf32, #tpu.memory_space<vmem>>, vector<2x64xf32>,
    %c0_9 = arith.constant 0 : index
    %c0_10 = arith.constant 0 : index
    %17 = vector.load %arg2[%c0_9, %c0_10] : memref<2x128xf32, #tpu.memory_space<vmem>>, vector<2x128xf32>
    %c0_11 = arith.constant 0 : index
    %c0_12 = arith.constant 0 : index
    %18 = vector.load %arg5[%c0_11, %c0_12] : memref<128x64xf32, #tpu.memory_space<vmem>>, vector<128x64xf32>
    %cst_13 = arith.constant dense<0.000000e+00> : vector<2x64xf32>
    %19 = tpu.matmul %17, %18, %cst_13 {dimension_numbers = #tpu.dot_dimension_numbers<[1], [0], [0], [1], [0, 0, 1, 1], [], []>} : vector<2x128xf32>, vector<128x64xf32>, vector<2x64xf32> -> vector<2x64xf32>
    %c0_14 = arith.constant 0 : index
    %c0_15 = arith.constant 0 : index
    %20 = vector.load %arg6[%c0_14, %c0_15] : memref<1x64xf32, #tpu.memory_space<vmem>>, vector<1x64xf32>
    %21 = vector.broadcast %20 : vector<1x64xf32> to vector<2x64xf32>
    %22 = arith.addf %19, %21 : vector<2x64xf32>
    %cst_16 = arith.constant 0.000000e+00 : f32
    %23 = vector.broadcast %cst_16 : f32 to vector<2x64xf32>
    %24 = arith.maximumf %22, %23 : vector<2x64xf32>
    %c0_17 = arith.constant 0 : index
    %c0_18 = arith.constant 0 : index
    %25 = vector.load %arg7[%c0_17, %c0_18] : memref<64x1xf32, #tpu.memory_space<vmem>>, vector<64x1xf32>
    %cst_19 = arith.constant dense<0.000000e+00> : vector<2x1xf32>
    %26 = tpu.matmul %24, %25, %cst_19 {dimension_numbers = #tpu.dot_dimension_numbers<[1], [0], [0], [1], [0, 0, 1, 1], [], []>} : vector<2x64xf32>, vector<64x1xf32>, vector<2x1xf32> -> vector<2x1xf32>
    %c0_20 = arith.constant 0 : index
    %c0_21 = arith.constant 0 : index
    %27 = vector.load %arg8[%c0_20, %c0_21] : memref<1x1xf32, #tpu.memory_space<vmem>>, vector<1x1xf32>
    %28 = vector.broadcast %27 : vector<1x1xf32> to vector<2x1xf32>
    %29 = arith.addf %26, %28 : vector<2x1xf32>
    %30 = math.tanh %29 : vector<2x1xf32>
    %c0_22 = arith.constant 0 : index
    %c0_23 = arith.constant 0 : index
    %31 = vector.load %arg10[%c0_22, %c0_23] : memref<2x1xf32, #tpu.memory_space<vmem>>, vector<2x1xf32>
    tpu.vector_store %arg10[%c0_22, %c0_23], %30 {strides = array<i32>} : memref<2x1xf32, #tpu.memory_space<vmem>>, vector<2x1xf32>,
    return
  }
  func.func @transform_0(%arg0: i32) -> (i32, i32) {
    %c0_i32 = arith.constant 0 : i32
    %c0_i32_0 = arith.constant 0 : i32
    %c0_i32_1 = arith.constant 0 : i32
    return %c0_i32, %c0_i32_0 : i32, i32
  }
  func.func @transform_1(%arg0: i32) -> (i32, i32) {
    %c0_i32 = arith.constant 0 : i32
    %c0_i32_0 = arith.constant 0 : i32
    %c0_i32_1 = arith.constant 0 : i32
    return %c0_i32, %c0_i32_0 : i32, i32
  }
  func.func @transform_2(%arg0: i32) -> (i32, i32) {
    %c0_i32 = arith.constant 0 : i32
    %c0_i32_0 = arith.constant 0 : i32
    %c0_i32_1 = arith.constant 0 : i32
    return %c0_i32, %c0_i32_0 : i32, i32
  }
  func.func @transform_3(%arg0: i32) -> (i32, i32) {
    %c0_i32 = arith.constant 0 : i32
    %c0_i32_0 = arith.constant 0 : i32
    %c0_i32_1 = arith.constant 0 : i32
    return %c0_i32, %c0_i32_0 : i32, i32
  }
  func.func @transform_4(%arg0: i32) -> (i32, i32) {
    %c0_i32 = arith.constant 0 : i32
    %c0_i32_0 = arith.constant 0 : i32
    %c0_i32_1 = arith.constant 0 : i32
    return %c0_i32, %c0_i32_0 : i32, i32
  }
  func.func @transform_5(%arg0: i32) -> (i32, i32) {
    %c0_i32 = arith.constant 0 : i32
    %c0_i32_0 = arith.constant 0 : i32
    %c0_i32_1 = arith.constant 0 : i32
    return %c0_i32, %c0_i32_0 : i32, i32
  }
  func.func @transform_6(%arg0: i32) -> (i32, i32) {
    %c0_i32 = arith.constant 0 : i32
    %c0_i32_0 = arith.constant 0 : i32
    %c0_i32_1 = arith.constant 0 : i32
    return %c0_i32, %c0_i32_0 : i32, i32
  }
  func.func @transform_7(%arg0: i32) -> (i32, i32) {
    %c0_i32 = arith.constant 0 : i32
    %c0_i32_0 = arith.constant 0 : i32
    %c0_i32_1 = arith.constant 0 : i32
    return %c0_i32, %c0_i32_0 : i32, i32
  }
  func.func @transform_8(%arg0: i32) -> (i32, i32) {
    %c0_i32 = arith.constant 0 : i32
    %c0_i32_0 = arith.constant 0 : i32
    %c0_i32_1 = arith.constant 0 : i32
    return %c0_i32, %c0_i32_0 : i32, i32
  }
  func.func @transform_9(%arg0: i32) -> (i32, i32) {
    %c0_i32 = arith.constant 0 : i32
    %c0_i32_0 = arith.constant 0 : i32
    %c0_i32_1 = arith.constant 0 : i32
    return %c0_i32, %c0_i32_0 : i32, i32
  }
}

</mosaic_0001>

<bundles_post_ra>
// kernel: my_net_forward.3
= control target key start
LH: loop header
LB: loop body
LE: loop exit
PB: predicated region body
PF: predicated region fallthrough
CT: control target
= control target key end

     0   :  { %s803_s0 = inlined_call_operand.vmem [shape: f32[2,256], index: 0, kind: input, shape index: {}]   ;;  %s804_s1 = inlined_call_operand.vmem [shape: f32[2,128], index: 1, kind: input, shape index: {}]   ;;  %s805_s2 = inlined_call_operand.vmem [shape: f32[256,64], index: 2, kind: input, shape index: {}]   ;;  %s806_s3 = inlined_call_operand.vmem [shape: f32[1,64], index: 3, kind: input, shape index: {}]   ;;  %s807_s4 = inlined_call_operand.vmem [shape: f32[128,64], index: 4, kind: input, shape index: {}]   ;;  %s808_s5 = inlined_call_operand.vmem [shape: f32[1,64], index: 5, kind: input, shape index: {}]   ;;  %s809_s6 = inlined_call_operand.vmem [shape: f32[64,1], index: 6, kind: input, shape index: {}]   ;;  %s810_s7 = inlined_call_operand.<no memory space> [shape: f32[1,1], index: 7, kind: input, shape index: {}]   ;;  %s811_s8 = inlined_call_operand.hbm [shape: f32[2,64], index: 8, kind: output, shape index: {0}]   ;;  %s812_s9 = inlined_call_operand.vmem [shape: f32[2,1], index: 9, kind: output, shape index: {1}]  }
   0x1   :  { %v15_v0 = vstv %s810_s7 }
   0x2   :  { %16 = vst [vmem:[#allocation2] sm:$0x1] %v15_v0 }
   0x3   :  { %v66_v1 = vld [vmem:[%s805_s2 + $0xf8] sm:$0xff]  ;;  %v65_v3 = vld [vmem:[%s805_s2 + $0xf0] sm:$0xff]  ;;  %v525_v5 = vmov 0.0   ;;  %v64_v6 = vld [vmem:[%s805_s2 + $0xe8] sm:$0xff]  ;;  %vm526_vm0 = vmmov 0  }
   0x4   :  { %v50_v2 = vld [vmem:[%s805_s2 + $0x78] sm:$0xff]  ;;  %379 = vmatprep.subr.mxu0 %v66_v1  ;;  %v49_v4 = vld [vmem:[%s805_s2 + $0x70] sm:$0xff]  ;;  %440 = vmatprep.subr.mxu1 %v525_v5  ;;  %v48_v7 = vld [vmem:[%s805_s2 + $0x68] sm:$0xff] }
   0x5   :  { %380 = vmatpush3.msra.mxu0 %v50_v2  ;;  %472 = vmatprep.mubr.msk.f32.mxu1 %vm526_vm0, %v525_v5  ;;  %v63_v8 = vld [vmem:[%s805_s2 + $0xe0] sm:$0xff]  ;;  %v62_v10 = vld [vmem:[%s805_s2 + $0xd8] sm:$0xff]  ;;  %v61_v12 = vld [vmem:[%s805_s2 + $0xd0] sm:$0xff] }
   0x6   :  { %381 = vmatprep.subr.mxu0 %v65_v3  ;;  %v47_v9 = vld [vmem:[%s805_s2 + $0x60] sm:$0xff]  ;;  %v46_v11 = vld [vmem:[%s805_s2 + $0x58] sm:$0xff]  ;;  %v45_v13 = vld [vmem:[%s805_s2 + $0x50] sm:$0xff] }
   0x7   :  { %382 = vmatpush3.msra.mxu0 %v49_v4  ;;  %v60_v14 = vld [vmem:[%s805_s2 + $0xc8] sm:$0xff]  ;;  %v626_v15 = vld.sshfl [vmem:[%s803_s0] sm:$0x33 pattern:$0x76325410]  ;;  %v185_v18 = vld [vmem:[%s807_s4 + $0x78] sm:$0xff] }
   0x8   :  { %383 = vmatprep.subr.mxu0 %v64_v6  ;;  %v44_v16 = vld [vmem:[%s805_s2 + $0x48] sm:$0xff]  ;;  %v82_v17 = vcombine.high %v626_v15, %v626_v15  ;;  %v59_v19 = vld [vmem:[%s805_s2 + $0xc0] sm:$0xff]  ;;  %441 = vmatpush3.msra.mxu1 %v185_v18  ;;  %v184_v20 = vld [vmem:[%s807_s4 + $0x70] sm:$0xff] }
   0x9   :  { %384 = vmatpush3.msra.mxu0 %v48_v7  ;;  %v43_v21 = vld [vmem:[%s805_s2 + $0x40] sm:$0xff]  ;;  %v58_v22 = vld [vmem:[%s805_s2 + $0xb8] sm:$0xff]  ;;  %442 = vmatprep.subr.mxu1 %v525_v5  ;;  %v183_v23 = vld [vmem:[%s807_s4 + $0x68] sm:$0xff] }
   0xa   :  { %385 = vmatprep.subr.mxu0 %v63_v8  ;;  %149 = vmatprep.mubr.f32.mxu0 %v82_v17  ;;  %v42_v24 = vld [vmem:[%s805_s2 + $0x38] sm:$0xff]  ;;  %v57_v25 = vld [vmem:[%s805_s2 + $0xb0] sm:$0xff]  ;;  %v182_v26 = vld [vmem:[%s807_s4 + $0x60] sm:$0xff] }
   0xb   :  { %386 = vmatpush3.msra.mxu0 %v47_v9  ;;  %443 = vmatpush3.msra.mxu1 %v184_v20 }
   0xc   :  { %387 = vmatprep.subr.mxu0 %v62_v10  ;;  %444 = vmatprep.subr.mxu1 %v525_v5 }
   0xd   :  { %388 = vmatpush3.msra.mxu0 %v46_v11 }
   0xe   :  { %389 = vmatprep.subr.mxu0 %v61_v12 }
   0xf   :  { %390 = vmatpush3.msra.mxu0 %v45_v13 }
  0x10   :  { %391 = vmatprep.subr.mxu0 %v60_v14 }
  0x11   :  { %392 = vmatpush3.msra.mxu0 %v44_v16 }
  0x12   :  { %393 = vmatprep.subr.mxu0 %v59_v19 }
  0x13   :  { %394 = vmatpush3.msra.mxu0 %v43_v21 }
  0x14   :  { %17 = vsyncpa [#allocation4], 0  ;;  %395 = vmatprep.subr.mxu0 %v58_v22  ;;  %v41_v27 = vld [vmem:[%s805_s2 + $0x30] sm:$0xff]  ;;  %445 = vmatpush3.msra.mxu1 %v183_v23  ;;  %v56_v28 = vld [vmem:[%s805_s2 + $0xa8] sm:$0xff]  ;;  %vm155_vm1 = vcmask 517120   ;;  %vm279_vm2 = vcmask 523264  }
  0x15   :  { %396 = vmatpush3.msra.mxu0 %v42_v24  ;;  %446 = vmatprep.subr.mxu1 %v525_v5  ;;  %v181_v29 = vld [vmem:[%s807_s4 + $0x58] sm:$0xff]  ;;  %v40_v30 = vld [vmem:[%s805_s2 + $0x28] sm:$0xff]  ;;  %v55_v31 = vld [vmem:[%s805_s2 + $0xa0] sm:$0xff]  ;;  %vm354_vm3 = vcmask 1024  }
  0x16   :  { %397 = vmatprep.subr.mxu0 %v57_v25  ;;  %447 = vmatpush3.msra.mxu1 %v182_v26  ;;  %v180_v32 = vld [vmem:[%s807_s4 + $0x50] sm:$0xff]  ;;  %v39_v33 = vld [vmem:[%s805_s2 + $0x20] sm:$0xff]  ;;  %v54_v34 = vld [vmem:[%s805_s2 + $0x98] sm:$0xff] }
  0x17   :  { %398 = vmatpush3.msra.mxu0 %v41_v27  ;;  %448 = vmatprep.subr.mxu1 %v525_v5  ;;  %v179_v35 = vld [vmem:[%s807_s4 + $0x48] sm:$0xff]  ;;  %v38_v36 = vld [vmem:[%s805_s2 + $0x18] sm:$0xff]  ;;  %v53_v37 = vld [vmem:[%s805_s2 + $0x90] sm:$0xff] }
  0x18   :  { %399 = vmatprep.subr.mxu0 %v56_v28  ;;  %449 = vmatpush3.msra.mxu1 %v181_v29  ;;  %v178_v38 = vld [vmem:[%s807_s4 + $0x40] sm:$0xff]  ;;  %v37_v39 = vld [vmem:[%s805_s2 + $0x10] sm:$0xff]  ;;  %v52_v40 = vld [vmem:[%s805_s2 + $0x88] sm:$0xff] }
  0x19   :  { %400 = vmatpush3.msra.mxu0 %v40_v30  ;;  %450 = vmatprep.subr.mxu1 %v525_v5  ;;  %v177_v41 = vld [vmem:[%s807_s4 + $0x38] sm:$0xff]  ;;  %v36_v42 = vld [vmem:[%s805_s2 + $0x8] sm:$0xff]  ;;  %v51_v43 = vld [vmem:[%s805_s2 + $0x80] sm:$0xff] }
  0x1a   :  { %401 = vmatprep.subr.mxu0 %v55_v31  ;;  %451 = vmatpush3.msra.mxu1 %v180_v32  ;;  %v176_v44 = vld [vmem:[%s807_s4 + $0x30] sm:$0xff]  ;;  %v35_v45 = vld [vmem:[%s805_s2] sm:$0xff]  ;;  %v175_v46 = vld [vmem:[%s807_s4 + $0x28] sm:$0xff] }
  0x1b   :  { %402 = vmatpush3.msra.mxu0 %v39_v33  ;;  %452 = vmatprep.subr.mxu1 %v525_v5  ;;  %v174_v47 = vld [vmem:[%s807_s4 + $0x20] sm:$0xff]  ;;  %v173_v48 = vld [vmem:[%s807_s4 + $0x18] sm:$0xff]  ;;  %v172_v49 = vld [vmem:[%s807_s4 + $0x10] sm:$0xff] }
  0x1c   :  { %403 = vmatprep.subr.mxu0 %v54_v34  ;;  %453 = vmatpush3.msra.mxu1 %v179_v35  ;;  %v171_v50 = vld [vmem:[%s807_s4 + $0x8] sm:$0xff]  ;;  %v170_v51 = vld [vmem:[%s807_s4] sm:$0xff]  ;;  %v271_v53 = vld [vmem:[%s809_s6 + $0x38] sm:$0xff] }
  0x1d   :  { %404 = vmatpush3.msra.mxu0 %v38_v36  ;;  %454 = vmatprep.subr.mxu1 %v525_v5  ;;  %v169_v52 = vld [vmem:[%s804_s1] sm:$0x3]  ;;  %v270_v54 = vld [vmem:[%s809_s6 + $0x30] sm:$0xff]  ;;  %v269_v55 = vld [vmem:[%s809_s6 + $0x28] sm:$0xff] }
  0x1e   :  { %405 = vmatprep.subr.mxu0 %v53_v37  ;;  %455 = vmatpush3.msra.mxu1 %v178_v38  ;;  %v268_v56 = vld [vmem:[%s809_s6 + $0x20] sm:$0xff]  ;;  %v267_v57 = vld [vmem:[%s809_s6 + $0x18] sm:$0xff]  ;;  %v266_v58 = vld [vmem:[%s809_s6 + $0x10] sm:$0xff] }
  0x1f   :  { %406 = vmatpush3.msra.mxu0 %v37_v39  ;;  %456 = vmatprep.subr.mxu1 %v525_v5  ;;  %v265_v59 = vld [vmem:[%s809_s6 + $0x8] sm:$0xff]  ;;  %v264_v60 = vld [vmem:[%s809_s6] sm:$0xff]  ;;  %s527_s6 = smov [#allocation3]  }
  0x20   :  { %407 = vmatprep.subr.mxu0 %v52_v40  ;;  %457 = vmatpush3.msra.mxu1 %v177_v41  ;;  %v374_v63 = vld [vmem:[%s806_s3] ss:$0 sm:$0xff]  ;;  %s362_s13 = sshll.u32 %s527_s6, 4  ;;  %s363_s13 = int_to_ptr.vmem [resolvable:$true] %s362_s13 }
  0x21   :  { %408 = vmatpush3.msra.mxu0 %v36_v42  ;;  %458 = vmatprep.subr.mxu1 %v525_v5  ;;  %v376_v3 = vld [vmem:[%s808_s5] ss:$0 sm:$0xff]  ;;  %s503_s14 = scalar_lea.vmem %s363_s13, 32  ;;  %p508_p1 = scmp.lt.s32.totalorder %s363_s13, %s363_s13 }
  0x22   :  { %409 = vmatprep.subr.mxu0 %v51_v43  ;;  %459 = vmatpush3.msra.mxu1 %v176_v44  ;;  %v377_v13 = vld [vmem:[#allocation2] ss:$0 sm:$0xff]  ;;  %p504_p0 = scmp.ne.s32.totalorder %s363_s13, %s503_s14  ;;  %p509_p2 = scmp.lt.s32.totalorder %s503_s14, %s503_s14 }
  0x23   :  { %410 = vmatpush3.msra.mxu0 %v35_v45  ;;  %460 = vmatprep.subr.mxu1 %v525_v5 }
  0x24   :  { %150 = vmatmul.mubr.f32.vlgmr.msra.gmra.mxu0 %v626_v15  ;;  %461 = vmatpush3.msra.mxu1 %v175_v46  ;;  %p510_p3 = por %p509_p2, %p508_p1 }
  0x25   :  { %462 = vmatprep.subr.mxu1 %v525_v5  ;;  %475 = vmatprep.subr.mxu0 %v525_v5 }
  0x26   :  { %463 = vmatpush3.msra.mxu1 %v174_v47  ;;  %491 = vmatprep.mubr.msk.f32.mxu0 %vm526_vm0, %v525_v5  ;;  %p511_p4 = pnand %p510_p3, %p504_p0 }
  0x27   :  { %464 = vmatprep.subr.mxu1 %v525_v5  ;;  %476 = vmatpush3.msra.mxu0 %v271_v53 }
  0x28   :  { %465 = vmatpush3.msra.mxu1 %v173_v48  ;;  %477 = vmatprep.subr.mxu0 %v525_v5 }
  0x29   :  { %466 = vmatprep.subr.mxu1 %v525_v5  ;;  %478 = vmatpush3.msra.mxu0 %v270_v54 }
  0x2a   :  { %467 = vmatpush3.msra.mxu1 %v172_v49  ;;  %479 = vmatprep.subr.mxu0 %v525_v5 }
  0x2b   :  { %468 = vmatprep.subr.mxu1 %v525_v5  ;;  %480 = vmatpush3.msra.mxu0 %v269_v55 }
  0x2c   :  { %469 = vmatpush3.msra.mxu1 %v171_v50  ;;  %481 = vmatprep.subr.mxu0 %v525_v5 }
  0x2d   :  { %470 = vmatprep.subr.mxu1 %v525_v5  ;;  %482 = vmatpush3.msra.mxu0 %v268_v56 }
  0x2e   :  { %471 = vmatpush3.msra.mxu1 %v170_v51  ;;  %483 = vmatprep.subr.mxu0 %v525_v5 }
  0x2f   :  { %473 = vmatmul.mubr.f32.vlgmr.msra.gmra.mxu1 %v169_v52  ;;  %484 = vmatpush3.msra.mxu0 %v267_v57 }
  0x30   :  { %485 = vmatprep.subr.mxu0 %v525_v5 }
  0x31   :  { %486 = vmatpush3.msra.mxu0 %v266_v58 }
  0x32   :  { %487 = vmatprep.subr.mxu0 %v525_v5 }
  0x33   :  { %488 = vmatpush3.msra.mxu0 %v265_v59 }
  0x34   :  { %489 = vmatprep.subr.mxu0 %v525_v5 }
  0x35   :  { %490 = vmatpush3.msra.mxu0 %v264_v60 }
  0xe4   :  { %v411_v61 = vpop.f32.mrf.mxu0 }
  0xe6   :  { %v412_v62 = vpop.f32.mrf.mxu0 }
  0xe7   :  { %v413_v0 = vadd.f32 %v412_v62, %v411_v61 }
  0xe9   :  { %v152_v1 = vadd.f32 %v413_v0, %v374_v63 }
  0xeb   :  { %v156_v2 = vsel %vm155_vm1, %v152_v1, -inf }
  0xec   :  { %157 = vmax.xlane.f32.xlu0 %v156_v2 }
  0xef   :  { %v259_v4 = vpop.f32.mrf.mxu1 }
  0xf0   :  { %v260_v6 = vadd.f32 %v376_v3, %v259_v4 }
  0xf1   :  { %v474_v5 = vpop.f32.mrf.mxu1 }
  0xf2   :  { %v263_v7 = vmax.f32 %v260_v6, 0.0 }
  0xf4   :  { %492 = vmatmul.mubr.msk.f32.vlgmr.msra.gmra.mxu0 %vm279_vm2, %v263_v7 }
 0x175   :  { %v158_v8 = vpop.xlane.xlu0 %157 }
 0x176   :  { %v159_v9 = vsub.f32 %v152_v1, %v158_v8 }
 0x178   :  { %v160_v10 = vmul.f32 1.442695, %v159_v9 }
 0x17a   :  { %497 = vpow2.f32 %v160_v10 }
 0x187   :  { %v498_v11 = vpop.eup %497 }
 0x188   :  { %v162_v12 = vsel %vm155_vm1, %v498_v11, 0.0 }
 0x189   :  { %163 = vadd.xlane.f32.xlu0 %v162_v12 }
 0x1b4   :  { %v349_v14 = vpop.f32.mrf.mxu0 }
 0x1b5   :  { %v350_v15 = vadd.f32 %v377_v13, %v349_v14 }
 0x1b6   :  { %v493_v16 = vpop.f32.mrf.mxu0 }
 0x1b7   :  { %499 = vtanh.f32 %v350_v15 }
 0x1c4   :  { %v500_v17 = vpop.eup %499 }
 0x1c5   :  { %355 = vst.msk [vmem:[%s812_s9] sm:$0x3] %vm354_vm3, %v500_v17 }
 0x212   :  { %v164_v18 = vpop.xlane.xlu0 %163 }
 0x213   :  { %501 = vlog2.f32 %v164_v18 }
 0x220   :  { %v502_v19 = vpop.eup %501 }
 0x221   :  { %v166_v20 = vmul.f32 0.6931472, %v502_v19 }
 0x223   :  { %v167_v21 = vsub.f32 %v159_v9, %v166_v20 }
 0x225   :  { %168 = vst.msk [vmem:[#allocation3] sm:$0x3] %vm155_vm1, %v167_v21 }
 0x226   :  { %514 = shalt.err (!%p511_p4)
}
 0x227   :  { %365 = dma.vmem_to_hbm [thread:$0]  %s363_s13, 32, %s811_s8, [#allocation4]  }
 0x228   :  { %523 = dma.done.wait [#allocation4], 32  }
 0x229   :  { %524 = vsyncadd [#allocation4], 4294967264 }
 0x22a   :  { %373 = vsyncpa [#allocation4], 1 }

// kernel: my_net_forward.2
= control target key start
LH: loop header
LB: loop body
LE: loop exit
PB: predicated region body
PF: predicated region fallthrough
CT: control target
= control target key end

     0   :  { %14 = vsyncpa [#allocation5], 0  ;;  %s11477_s0 = inlined_call_operand.vmem [shape: f32[2,10,10,4], index: 0, kind: input, shape index: {}]   ;;  %s11478_s1 = inlined_call_operand.vmem [shape: f32[9,4,32], index: 1, kind: input, shape index: {}]   ;;  %s11479_s2 = inlined_call_operand.vmem [shape: f32[1,32], index: 2, kind: input, shape index: {}]   ;;  %s11480_s3 = inlined_call_operand.hbm [shape: f32[9,32,64], index: 3, kind: input, shape index: {}]   ;;  %s11481_s4 = inlined_call_operand.vmem [shape: f32[1,64], index: 4, kind: input, shape index: {}]   ;;  %s11482_s5 = inlined_call_operand.vmem [shape: f32[9,64,128], index: 5, kind: input, shape index: {}]   ;;  %s11483_s6 = inlined_call_operand.vmem [shape: f32[1,128], index: 6, kind: input, shape index: {}]   ;;  %s11484_s7 = inlined_call_operand.hbm [shape: f32[128,128], index: 7, kind: input, shape index: {}]   ;;  %s11485_s8 = inlined_call_operand.vmem [shape: f32[1,128], index: 8, kind: input, shape index: {}]   ;;  %s11486_s9 = inlined_call_operand.vmem [shape: f32[128,128], index: 9, kind: output, shape index: {}]  }
   0x1   :  { %15 = vsyncpa [#allocation7], 0  ;;  %s8739_s30 = smov [#allocation4]  }
   0x2   :  { %s27_s10 = sshll.u32 %s8739_s30, 4  ;;  %s28_s10 = int_to_ptr.vmem [resolvable:$true] %s27_s10 }
   0x3   :  { %s8703_s11 = scalar_lea.vmem %s28_s10, 4608  ;;  %p8708_p1 = scmp.lt.s32.totalorder %s28_s10, %s28_s10 }
   0x4   :  { %p8704_p0 = scmp.ne.s32.totalorder %s28_s10, %s8703_s11  ;;  %p8709_p2 = scmp.lt.s32.totalorder %s8703_s11, %s8703_s11 }
   0x6   :  { %p8710_p3 = por %p8709_p2, %p8708_p1 }
   0x8   :  { %p8711_p4 = pnand %p8710_p3, %p8704_p0 }
   0xa   :  { %8714 = shalt.err (!%p8711_p4)
}
   0xb   :  { %s8740_s12 = smov 128   ;;  %s8741_s13 = smov 8  }
   0xc   :  { %33 = dma.hbm_to_vmem [thread:$0]  %s11480_s3, 4608, %s28_s10, [#allocation5], %s8740_s12, %s8740_s12, %s8741_s13  }
   0xd   :  { %s8742_s16 = smov [#allocation6]  }
   0xe   :  { %s45_s17 = sshll.u32 %s8742_s16, 4  ;;  %s46_s17 = int_to_ptr.vmem [resolvable:$true] %s45_s17 }
   0xf   :  { %s8723_s18 = scalar_lea.vmem %s46_s17, 2048  ;;  %p8728_p6 = scmp.lt.s32.totalorder %s46_s17, %s46_s17 }
  0x10   :  { %p8724_p5 = scmp.ne.s32.totalorder %s46_s17, %s8723_s18  ;;  %p8729_p7 = scmp.lt.s32.totalorder %s8723_s18, %s8723_s18 }
  0x12   :  { %p8730_p8 = por %p8729_p7, %p8728_p6 }
  0x14   :  { %p8731_p9 = pnand %p8730_p8, %p8724_p5 }
  0x16   :  { %8734 = shalt.err (!%p8731_p9)
}
  0x17   :  { %51 = dma.hbm_to_vmem [thread:$0]  %s11484_s7, 2048, %s46_s17, [#allocation7], %s8740_s12, %s8740_s12, %s8741_s13  }
  0x18   :  { %8735 = dma.done.wait [#allocation5], 4608  }
  0x19   :  { %8736 = vsyncadd [#allocation5], 4294962688 }
  0x1a   :  { %8737 = dma.done.wait [#allocation7], 2048  }
  0x1b   :  { %8738 = vsyncadd [#allocation7], 4294965248  ;;  %vm150_vm0 = vcmask 1043456   ;;  %vm101_vm1 = vcmask 31744   ;;  %v61_v0 = vld [vmem:[%s11478_s1 + $0x4] sm:$0xf] }
  0x1c   :  { %v60_v1 = vld [vmem:[%s11478_s1] sm:$0xf]  ;;  %7752 = vmatprep.subr.msk.mxu0 %vm150_vm0, %v61_v0  ;;  %v8817_v4 = vld [vmem:[%s11477_s0 + $0x11] sm:$0xff]  ;;  %v62_v6 = vld [vmem:[%s11478_s1 + $0x8] sm:$0xf]  ;;  %vm2132_vm2 = vcmask 261120  }
  0x1d   :  { %v85_v2 = vld [vmem:[%s11477_s0 + $0x1] sm:$0xff]  ;;  %7778 = vmatprep.subr.msk.mxu1 %vm150_vm0, %v60_v1  ;;  %v8822_v5 = vld [vmem:[%s11477_s0 + $0x10] sm:$0xff]  ;;  %7753 = vmatpush3.msk.msra.mxu0 %vm150_vm0, %v61_v0  ;;  %v63_v17 = vld [vmem:[%s11478_s1 + $0xc] sm:$0xf]  ;;  %vm2134_vm3 = vcmask 254976   ;;  %vm4260_vm4 = vcmask 523264  }
  0x1e   :  { %v69_v3 = vld [vmem:[%s11477_s0] sm:$0xff]  ;;  %7754 = vmatprep.mubr.msk.f32.mxu0 %vm101_vm1, %v85_v2  ;;  %7779 = vmatpush3.msk.msra.mxu1 %vm150_vm0, %v60_v1  ;;  %v8851_v9 = vld [vmem:[%s11477_s0 + $0x31] sm:$0xff]  ;;  %v67_v42 = vld [vmem:[%s11478_s1 + $0x1c] sm:$0xf]  ;;  %vm4262_vm5 = vcmask 517120  }
  0x1f   :  { %v8832_v7 = vld [vmem:[%s11477_s0 + $0x21] sm:$0xff]  ;;  %7780 = vmatprep.mubr.msk.f32.mxu1 %vm101_vm1, %v69_v3  ;;  %7755 = vmatmul.mubr.msk.f32.vlgmr.msra.gmra.mxu0 %vm101_vm1, %v8817_v4  ;;  %v8856_v10 = vld [vmem:[%s11477_s0 + $0x30] sm:$0xff]  ;;  %v66_v41 = vld [vmem:[%s11478_s1 + $0x18] sm:$0xf] }
  0x20   :  { %v8839_v8 = vld [vmem:[%s11477_s0 + $0x20] sm:$0xff]  ;;  %7781 = vmatmul.mubr.msk.f32.vlgmr.msra.gmra.mxu1 %vm101_vm1, %v8822_v5  ;;  %7804 = vmatprep.subr.msk.mxu0 %vm150_vm0, %v62_v6  ;;  %v8882_v13 = vld [vmem:[%s11477_s0 + $0x51] sm:$0xff] }
  0x21   :  { %7757 = vmatprep.mubr.msk.f32.mxu0 %vm101_vm1, %v8832_v7  ;;  %7805 = vmatpush3.msk.msra.mxu0 %vm150_vm0, %v62_v6  ;;  %v8864_v11 = vld [vmem:[%s11477_s0 + $0x41] sm:$0xff]  ;;  %v8887_v14 = vld [vmem:[%s11477_s0 + $0x50] sm:$0xff] }
  0x22   :  { %7783 = vmatprep.mubr.msk.f32.mxu1 %vm101_vm1, %v8839_v8  ;;  %v8869_v12 = vld [vmem:[%s11477_s0 + $0x40] sm:$0xff]  ;;  %v64_v18 = vld [vmem:[%s11478_s1 + $0x10] sm:$0xf]  ;;  %7830 = vmatprep.subr.msk.mxu1 %vm150_vm0, %v63_v17  ;;  %v65_v27 = vld [vmem:[%s11478_s1 + $0x14] sm:$0xf] }
  0x23   :  { %7758 = vmatmul.mubr.msk.f32.gmra.mxu0 %vm101_vm1, %v8851_v9  ;;  %v8892_v15 = vld [vmem:[%s11477_s0 + $0x61] sm:$0xff]  ;;  %v8916_v19 = vld [vmem:[%s11477_s0 + $0x71] sm:$0xff]  ;;  %7856 = vmatprep.subr.msk.mxu0 %vm150_vm0, %v64_v18 }
  0x24   :  { %7784 = vmatmul.mubr.msk.f32.gmra.mxu1 %vm101_vm1, %v8856_v10  ;;  %7760 = vmatprep.mubr.msk.f32.mxu0 %vm101_vm1, %v8864_v11  ;;  %v8897_v16 = vld [vmem:[%s11477_s0 + $0x60] sm:$0xff]  ;;  %v8921_v20 = vld [vmem:[%s11477_s0 + $0x70] sm:$0xff] }
  0x25   :  { %7786 = vmatprep.mubr.msk.f32.mxu1 %vm101_vm1, %v8869_v12  ;;  %v93_v21 = vld [vmem:[%s11477_s0 + $0xa1] sm:$0xff]  ;;  %7831 = vmatpush3.msk.msra.mxu1 %vm150_vm0, %v63_v17  ;;  %v8941_v23 = vld [vmem:[%s11477_s0 + $0xb1] sm:$0xff]  ;;  %v11487_v17 = vmov 0.0  }
  0x26   :  { %v77_v22 = vld [vmem:[%s11477_s0 + $0xa0] sm:$0xff]  ;;  %v8946_v24 = vld [vmem:[%s11477_s0 + $0xb0] sm:$0xff]  ;;  %7882 = vmatprep.subr.msk.mxu1 %vm150_vm0, %v65_v27  ;;  %2138 = vst.msk [vmem:[#allocation2 + $0x20] sm:$0xff] %vm2132_vm2, %v11487_v17  ;;  %2133 = vst.msk [vmem:[#allocation2] sm:$0xff] %vm2132_vm2, %v11487_v17 }
  0x27   :  { %7761 = vmatmul.mubr.msk.f32.gmra.mxu0 %vm101_vm1, %v8882_v13  ;;  %v8951_v25 = vld [vmem:[%s11477_s0 + $0xc1] sm:$0xff]  ;;  %v8973_v28 = vld [vmem:[%s11477_s0 + $0xd1] sm:$0xff]  ;;  %2139 = vst.msk [vmem:[#allocation2 + $0x28] sm:$0x3] %vm2134_vm3, %v11487_v17  ;;  %2135 = vst.msk [vmem:[#allocation2 + $0x8] sm:$0x3] %vm2134_vm3, %v11487_v17 }
  0x28   :  { %7787 = vmatmul.mubr.msk.f32.gmra.mxu1 %vm101_vm1, %v8887_v14  ;;  %7763 = vmatprep.mubr.msk.f32.mxu0 %vm101_vm1, %v8892_v15  ;;  %v8956_v26 = vld [vmem:[%s11477_s0 + $0xc0] sm:$0xff]  ;;  %v8978_v29 = vld [vmem:[%s11477_s0 + $0xd0] sm:$0xff]  ;;  %2136 = vst.msk [vmem:[#allocation2 + $0x10] sm:$0xff] %vm2132_vm2, %v11487_v17  ;;  %2140 = vst.msk [vmem:[#allocation2 + $0x30] sm:$0xff] %vm2132_vm2, %v11487_v17 }
  0x29   :  { %7789 = vmatprep.mubr.msk.f32.mxu1 %vm101_vm1, %v8897_v16  ;;  %v8983_v30 = vld [vmem:[%s11477_s0 + $0xe1] sm:$0xff]  ;;  %v9001_v32 = vld [vmem:[%s11477_s0 + $0xf1] sm:$0xff]  ;;  %2137 = vst.msk [vmem:[#allocation2 + $0x18] sm:$0x3] %vm2134_vm3, %v11487_v17  ;;  %2141 = vst.msk [vmem:[#allocation2 + $0x38] sm:$0x3] %vm2134_vm3, %v11487_v17 }
  0x2a   :  { %v8988_v31 = vld [vmem:[%s11477_s0 + $0xe0] sm:$0xff]  ;;  %v9006_v33 = vld [vmem:[%s11477_s0 + $0xf0] sm:$0xff]  ;;  %2142 = vst.msk [vmem:[#allocation2 + $0x40] sm:$0xff] %vm2132_vm2, %v11487_v17  ;;  %2144 = vst.msk [vmem:[#allocation2 + $0x50] sm:$0xff] %vm2132_vm2, %v11487_v17 }
  0x2b   :  { %7764 = vmatmul.mubr.msk.f32.gmra.mxu0 %vm101_vm1, %v8916_v19  ;;  %v9011_v34 = vld [vmem:[%s11477_s0 + $0x101] sm:$0xff]  ;;  %v9029_v36 = vld [vmem:[%s11477_s0 + $0x111] sm:$0xff]  ;;  %2143 = vst.msk [vmem:[#allocation2 + $0x48] sm:$0x3] %vm2134_vm3, %v11487_v17  ;;  %2145 = vst.msk [vmem:[#allocation2 + $0x58] sm:$0x3] %vm2134_vm3, %v11487_v17 }
  0x2c   :  { %7790 = vmatmul.mubr.msk.f32.gmra.mxu1 %vm101_vm1, %v8921_v20  ;;  %7766 = vmatprep.mubr.msk.f32.mxu0 %vm101_vm1, %v93_v21  ;;  %v9016_v35 = vld [vmem:[%s11477_s0 + $0x100] sm:$0xff]  ;;  %v9034_v37 = vld [vmem:[%s11477_s0 + $0x110] sm:$0xff]  ;;  %2146 = vst.msk [vmem:[#allocation2 + $0x60] sm:$0xff] %vm2132_vm2, %v11487_v17  ;;  %2148 = vst.msk [vmem:[#allocation2 + $0x70] sm:$0xff] %vm2132_vm2, %v11487_v17 }
  0x2d   :  { %7792 = vmatprep.mubr.msk.f32.mxu1 %vm101_vm1, %v77_v22  ;;  %v495_v38 = vld [vmem:[%s11477_s0 + $0x2] sm:$0xff]  ;;  %v496_v39 = vld [vmem:[%s11477_s0 + $0x12] sm:$0xff]  ;;  %2147 = vst.msk [vmem:[#allocation2 + $0x68] sm:$0x3] %vm2134_vm3, %v11487_v17  ;;  %2149 = vst.msk [vmem:[#allocation2 + $0x78] sm:$0x3] %vm2134_vm3, %v11487_v17 }
  0x2e   :  { %v9052_v40 = vld [vmem:[%s11477_s0 + $0x22] sm:$0xff]  ;;  %v9069_v43 = vld [vmem:[%s11477_s0 + $0x32] sm:$0xff]  ;;  %2150 = vst.msk [vmem:[#allocation2 + $0x80] sm:$0xff] %vm2132_vm2, %v11487_v17  ;;  %2152 = vst.msk [vmem:[#allocation2 + $0x90] sm:$0xff] %vm2132_vm2, %v11487_v17 }
  0x2f   :  { %7767 = vmatmul.mubr.msk.f32.gmra.mxu0 %vm101_vm1, %v8941_v23  ;;  %v9076_v44 = vld [vmem:[%s11477_s0 + $0x42] sm:$0xff]  ;;  %v9090_v45 = vld [vmem:[%s11477_s0 + $0x52] sm:$0xff]  ;;  %2151 = vst.msk [vmem:[#allocation2 + $0x88] sm:$0x3] %vm2134_vm3, %v11487_v17  ;;  %2153 = vst.msk [vmem:[#allocation2 + $0x98] sm:$0x3] %vm2134_vm3, %v11487_v17 }
  0x30   :  { %7793 = vmatmul.mubr.msk.f32.gmra.mxu1 %vm101_vm1, %v8946_v24  ;;  %7769 = vmatprep.mubr.msk.f32.mxu0 %vm101_vm1, %v8951_v25  ;;  %v9097_v46 = vld [vmem:[%s11477_s0 + $0x62] sm:$0xff]  ;;  %v9108_v47 = vld [vmem:[%s11477_s0 + $0x72] sm:$0xff]  ;;  %2154 = vst.msk [vmem:[#allocation2 + $0xa0] sm:$0xff] %vm2132_vm2, %v11487_v17  ;;  %2156 = vst.msk [vmem:[#allocation2 + $0xb0] sm:$0xff] %vm2132_vm2, %v11487_v17 }
  0x31   :  { %7795 = vmatprep.mubr.msk.f32.mxu1 %vm101_vm1, %v8956_v26  ;;  %v9115_v48 = vld [vmem:[%s11477_s0 + $0x80] sm:$0xff]  ;;  %v504_v50 = vld [vmem:[%s11477_s0 + $0xb2] sm:$0xff]  ;;  %2155 = vst.msk [vmem:[#allocation2 + $0xa8] sm:$0x3] %vm2134_vm3, %v11487_v17  ;;  %2157 = vst.msk [vmem:[#allocation2 + $0xb8] sm:$0x3] %vm2134_vm3, %v11487_v17 }
  0x32   :  { %v503_v49 = vld [vmem:[%s11477_s0 + $0xa2] sm:$0xff]  ;;  %v9143_v52 = vld [vmem:[%s11477_s0 + $0xd2] sm:$0xff]  ;;  %2158 = vst.msk [vmem:[#allocation2 + $0xc0] sm:$0xff] %vm2132_vm2, %v11487_v17  ;;  %2160 = vst.msk [vmem:[#allocation2 + $0xd0] sm:$0xff] %vm2132_vm2, %v11487_v17 }
  0x33   :  { %7770 = vmatmul.mubr.msk.f32.gmra.mxu0 %vm101_vm1, %v8973_v28  ;;  %v9133_v51 = vld [vmem:[%s11477_s0 + $0xc2] sm:$0xff]  ;;  %v9161_v54 = vld [vmem:[%s11477_s0 + $0xf2] sm:$0xff]  ;;  %2159 = vst.msk [vmem:[#allocation2 + $0xc8] sm:$0x3] %vm2134_vm3, %v11487_v17  ;;  %2161 = vst.msk [vmem:[#allocation2 + $0xd8] sm:$0x3] %vm2134_vm3, %v11487_v17 }
  0x34   :  { %7796 = vmatmul.mubr.msk.f32.gmra.mxu1 %vm101_vm1, %v8978_v29  ;;  %7772 = vmatprep.mubr.msk.f32.mxu0 %vm101_vm1, %v8983_v30  ;;  %v9150_v53 = vld [vmem:[%s11477_s0 + $0xe2] sm:$0xff]  ;;  %v9179_v56 = vld [vmem:[%s11477_s0 + $0x112] sm:$0xff]  ;;  %2162 = vst.msk [vmem:[#allocation2 + $0xe0] sm:$0xff] %vm2132_vm2, %v11487_v17  ;;  %2164 = vst.msk [vmem:[#allocation2 + $0xf0] sm:$0xff] %vm2132_vm2, %v11487_v17 }
  0x35   :  { %7798 = vmatprep.mubr.msk.f32.mxu1 %vm101_vm1, %v8988_v31  ;;  %v9168_v55 = vld [vmem:[%s11477_s0 + $0x102] sm:$0xff]  ;;  %v6787_v63 = vld [vmem:[%s11477_s0 + $0x90] sm:$0xff]  ;;  %2163 = vst.msk [vmem:[#allocation2 + $0xe8] sm:$0x3] %vm2134_vm3, %v11487_v17  ;;  %2165 = vst.msk [vmem:[#allocation2 + $0xf8] sm:$0x3] %vm2134_vm3, %v11487_v17 }
  0x36   :  { %v9186_v57 = vld [vmem:[%s11477_s0 + $0x120] sm:$0xff]  ;;  %v6820_v0 = vld [vmem:[%s11477_s0 + $0x91] sm:$0xff]  ;;  %2166 = vst.msk [vmem:[#allocation2 + $0x100] sm:$0xff] %vm2132_vm2, %v11487_v17  ;;  %2168 = vst.msk [vmem:[#allocation2 + $0x110] sm:$0xff] %vm2132_vm2, %v11487_v17 }
  0x37   :  { %7773 = vmatmul.mubr.msk.f32.gmra.mxu0 %vm101_vm1, %v9001_v32  ;;  %v68_v58 = vld [vmem:[%s11478_s1 + $0x20] sm:$0xf]  ;;  %v6795_v1 = vld [vmem:[%s11477_s0 + $0x130] sm:$0xff]  ;;  %2167 = vst.msk [vmem:[#allocation2 + $0x108] sm:$0x3] %vm2134_vm3, %v11487_v17  ;;  %v2194_v21 = vld [vmem:[#allocation4 + $0x18] sm:$0xff] }
  0x38   :  { %7799 = vmatmul.mubr.msk.f32.gmra.mxu1 %vm101_vm1, %v9006_v33  ;;  %7775 = vmatprep.mubr.msk.f32.mxu0 %vm101_vm1, %v9011_v34  ;;  %v6721_v59 = vld [vmem:[%s11477_s0 + $0x81] sm:$0xff]  ;;  %v6828_v2 = vld [vmem:[%s11477_s0 + $0x131] sm:$0xff]  ;;  %2169 = vst.msk [vmem:[#allocation2 + $0x118] sm:$0x3] %vm2134_vm3, %v11487_v17  ;;  %2171 = vst.msk [vmem:[#allocation2 + $0x128] sm:$0x3] %vm2134_vm3, %v11487_v17 }
  0x39   :  { %7801 = vmatprep.mubr.msk.f32.mxu1 %vm101_vm1, %v9016_v35  ;;  %v9231_v60 = vld [vmem:[%s11477_s0 + $0x82] sm:$0xff]  ;;  %v6853_v3 = vld [vmem:[%s11477_s0 + $0x92] sm:$0xff]  ;;  %2170 = vst.msk [vmem:[#allocation2 + $0x120] sm:$0xff] %vm2132_vm2, %v11487_v17  ;;  %2172 = vst.msk [vmem:[#allocation2 + $0x130] sm:$0xff] %vm2132_vm2, %v11487_v17 }
  0x3a   :  { %v6729_v61 = vld [vmem:[%s11477_s0 + $0x121] sm:$0xff]  ;;  %v2197_v6 = vld [vmem:[#allocation4 + $0x30] sm:$0xff]  ;;  %2173 = vst.msk [vmem:[#allocation2 + $0x138] sm:$0x3] %vm2134_vm3, %v11487_v17 }
  0x3b   :  { %7776 = vmatmul.mubr.msk.f32.gmra.mxu0 %vm101_vm1, %v9029_v36  ;;  %v6762_v62 = vld [vmem:[%s11477_s0 + $0x122] sm:$0xff] }
  0x3c   :  { %7802 = vmatmul.mubr.msk.f32.gmra.mxu1 %vm101_vm1, %v9034_v37  ;;  %7806 = vmatprep.mubr.msk.f32.mxu0 %vm101_vm1, %v495_v38 }
  0x3d   :  { %7832 = vmatprep.mubr.msk.f32.mxu1 %vm101_vm1, %v8822_v5  ;;  %v2198_v5 = vld [vmem:[#allocation4 + $0x38] sm:$0xff] }
  0x3f   :  { %7807 = vmatmul.mubr.msk.f32.vlgmr.msra.gmra.mxu0 %vm101_vm1, %v496_v39 }
  0x40   :  { %7833 = vmatmul.mubr.msk.f32.vlgmr.msra.gmra.mxu1 %vm101_vm1, %v8839_v8  ;;  %7857 = vmatpush3.msk.msra.mxu0 %vm150_vm0, %v64_v18  ;;  %v2196_v18 = vld [vmem:[#allocation4 + $0x28] sm:$0xff] }
  0x41   :  { %7809 = vmatprep.mubr.msk.f32.mxu0 %vm101_vm1, %v9052_v40  ;;  %7835 = vmatprep.mubr.msk.f32.mxu1 %vm101_vm1, %v8856_v10 }
  0x42   :  { %7883 = vmatpush3.msk.msra.mxu1 %vm150_vm0, %v65_v27  ;;  %7908 = vmatprep.subr.msk.mxu0 %vm150_vm0, %v66_v41 }
  0x43   :  { %7934 = vmatprep.subr.msk.mxu1 %vm150_vm0, %v67_v42  ;;  %7810 = vmatmul.mubr.msk.f32.gmra.mxu0 %vm101_vm1, %v9069_v43 }
  0x44   :  { %7836 = vmatmul.mubr.msk.f32.gmra.mxu1 %vm101_vm1, %v8869_v12  ;;  %7812 = vmatprep.mubr.msk.f32.mxu0 %vm101_vm1, %v9076_v44 }
  0x45   :  { %7838 = vmatprep.mubr.msk.f32.mxu1 %vm101_vm1, %v8887_v14 }
  0x47   :  { %7813 = vmatmul.mubr.msk.f32.gmra.mxu0 %vm101_vm1, %v9090_v45 }
  0x48   :  { %7839 = vmatmul.mubr.msk.f32.gmra.mxu1 %vm101_vm1, %v8897_v16  ;;  %7815 = vmatprep.mubr.msk.f32.mxu0 %vm101_vm1, %v9097_v46 }
  0x49   :  { %7841 = vmatprep.mubr.msk.f32.mxu1 %vm101_vm1, %v8921_v20 }
  0x4b   :  { %7816 = vmatmul.mubr.msk.f32.gmra.mxu0 %vm101_vm1, %v9108_v47 }
  0x4c   :  { %7842 = vmatmul.mubr.msk.f32.gmra.mxu1 %vm101_vm1, %v9115_v48  ;;  %7818 = vmatprep.mubr.msk.f32.mxu0 %vm101_vm1, %v503_v49 }
  0x4d   :  { %7844 = vmatprep.mubr.msk.f32.mxu1 %vm101_vm1, %v8946_v24 }
  0x4f   :  { %7819 = vmatmul.mubr.msk.f32.gmra.mxu0 %vm101_vm1, %v504_v50 }
  0x50   :  { %7845 = vmatmul.mubr.msk.f32.gmra.mxu1 %vm101_vm1, %v8956_v26  ;;  %7821 = vmatprep.mubr.msk.f32.mxu0 %vm101_vm1, %v9133_v51 }
  0x51   :  { %7847 = vmatprep.mubr.msk.f32.mxu1 %vm101_vm1, %v8978_v29 }
  0x53   :  { %7822 = vmatmul.mubr.msk.f32.gmra.mxu0 %vm101_vm1, %v9143_v52 }
  0x54   :  { %7848 = vmatmul.mubr.msk.f32.gmra.mxu1 %vm101_vm1, %v8988_v31  ;;  %7824 = vmatprep.mubr.msk.f32.mxu0 %vm101_vm1, %v9150_v53 }
  0x55   :  { %7850 = vmatprep.mubr.msk.f32.mxu1 %vm101_vm1, %v9006_v33 }
  0x57   :  { %7825 = vmatmul.mubr.msk.f32.gmra.mxu0 %vm101_vm1, %v9161_v54 }
  0x58   :  { %7851 = vmatmul.mubr.msk.f32.gmra.mxu1 %vm101_vm1, %v9016_v35  ;;  %7827 = vmatprep.mubr.msk.f32.mxu0 %vm101_vm1, %v9168_v55 }
  0x59   :  { %7853 = vmatprep.mubr.msk.f32.mxu1 %vm101_vm1, %v9034_v37 }
  0x5b   :  { %7828 = vmatmul.mubr.msk.f32.gmra.mxu0 %vm101_vm1, %v9179_v56 }
  0x5c   :  { %7854 = vmatmul.mubr.msk.f32.gmra.mxu1 %vm101_vm1, %v9186_v57  ;;  %7858 = vmatprep.mubr.msk.f32.mxu0 %vm101_vm1, %v8817_v4  ;;  %v6861_v4 = vld [vmem:[%s11477_s0 + $0x132] sm:$0xff] }
  0x5d   :  { %7884 = vmatprep.mubr.msk.f32.mxu1 %vm101_vm1, %v496_v39 }
  0x5f   :  { %7859 = vmatmul.mubr.msk.f32.vlgmr.msra.gmra.mxu0 %vm101_vm1, %v8832_v7 }
  0x60   :  { %7885 = vmatmul.mubr.msk.f32.vlgmr.msra.gmra.mxu1 %vm101_vm1, %v9052_v40  ;;  %7909 = vmatpush3.msk.msra.mxu0 %vm150_vm0, %v66_v41 }
  0x61   :  { %7861 = vmatprep.mubr.msk.f32.mxu0 %vm101_vm1, %v8851_v9  ;;  %7887 = vmatprep.mubr.msk.f32.mxu1 %vm101_vm1, %v9069_v43 }
  0x62   :  { %7935 = vmatpush3.msk.msra.mxu1 %vm150_vm0, %v67_v42  ;;  %7960 = vmatprep.subr.msk.mxu0 %vm150_vm0, %v68_v58 }
  0x63   :  { %7862 = vmatmul.mubr.msk.f32.gmra.mxu0 %vm101_vm1, %v8864_v11  ;;  %7986 = vmatprep.subr.mxu1 %v2198_v5 }
  0x64   :  { %7888 = vmatmul.mubr.msk.f32.gmra.mxu1 %vm101_vm1, %v9076_v44  ;;  %7864 = vmatprep.mubr.msk.f32.mxu0 %vm101_vm1, %v8882_v13 }
  0x65   :  { %7890 = vmatprep.mubr.msk.f32.mxu1 %vm101_vm1, %v9090_v45 }
  0x67   :  { %7865 = vmatmul.mubr.msk.f32.gmra.mxu0 %vm101_vm1, %v8892_v15 }
  0x68   :  { %7891 = vmatmul.mubr.msk.f32.gmra.mxu1 %vm101_vm1, %v9097_v46  ;;  %7867 = vmatprep.mubr.msk.f32.mxu0 %vm101_vm1, %v8916_v19 }
  0x69   :  { %7893 = vmatprep.mubr.msk.f32.mxu1 %vm101_vm1, %v9108_v47 }
  0x6b   :  { %7868 = vmatmul.mubr.msk.f32.gmra.mxu0 %vm101_vm1, %v6721_v59 }
  0x6c   :  { %7894 = vmatmul.mubr.msk.f32.gmra.mxu1 %vm101_vm1, %v9231_v60  ;;  %7870 = vmatprep.mubr.msk.f32.mxu0 %vm101_vm1, %v8941_v23 }
  0x6d   :  { %7896 = vmatprep.mubr.msk.f32.mxu1 %vm101_vm1, %v504_v50 }
  0x6f   :  { %7871 = vmatmul.mubr.msk.f32.gmra.mxu0 %vm101_vm1, %v8951_v25 }
  0x70   :  { %7897 = vmatmul.mubr.msk.f32.gmra.mxu1 %vm101_vm1, %v9133_v51  ;;  %7873 = vmatprep.mubr.msk.f32.mxu0 %vm101_vm1, %v8973_v28 }
  0x71   :  { %7899 = vmatprep.mubr.msk.f32.mxu1 %vm101_vm1, %v9143_v52 }
  0x73   :  { %7874 = vmatmul.mubr.msk.f32.gmra.mxu0 %vm101_vm1, %v8983_v30 }
  0x74   :  { %7900 = vmatmul.mubr.msk.f32.gmra.mxu1 %vm101_vm1, %v9150_v53  ;;  %7876 = vmatprep.mubr.msk.f32.mxu0 %vm101_vm1, %v9001_v32 }
  0x75   :  { %7902 = vmatprep.mubr.msk.f32.mxu1 %vm101_vm1, %v9161_v54 }
  0x77   :  { %7877 = vmatmul.mubr.msk.f32.gmra.mxu0 %vm101_vm1, %v9011_v34 }
  0x78   :  { %7903 = vmatmul.mubr.msk.f32.gmra.mxu1 %vm101_vm1, %v9168_v55  ;;  %7879 = vmatprep.mubr.msk.f32.mxu0 %vm101_vm1, %v9029_v36 }
  0x79   :  { %7905 = vmatprep.mubr.msk.f32.mxu1 %vm101_vm1, %v9179_v56 }
  0x7b   :  { %7880 = vmatmul.mubr.msk.f32.gmra.mxu0 %vm101_vm1, %v6729_v61 }
  0x7c   :  { %7906 = vmatmul.mubr.msk.f32.gmra.mxu1 %vm101_vm1, %v6762_v62  ;;  %7910 = vmatprep.mubr.msk.f32.mxu0 %vm101_vm1, %v8839_v8 }
  0x7d   :  { %7936 = vmatprep.mubr.msk.f32.mxu1 %vm101_vm1, %v8832_v7 }
  0x7f   :  { %7911 = vmatmul.mubr.msk.f32.vlgmr.msra.gmra.mxu0 %vm101_vm1, %v8856_v10 }
  0x80   :  { %7937 = vmatmul.mubr.msk.f32.vlgmr.msra.gmra.mxu1 %vm101_vm1, %v8851_v9  ;;  %7961 = vmatpush3.msk.msra.mxu0 %vm150_vm0, %v68_v58 }
  0x81   :  { %7913 = vmatprep.mubr.msk.f32.mxu0 %vm101_vm1, %v8869_v12  ;;  %7939 = vmatprep.mubr.msk.f32.mxu1 %vm101_vm1, %v8864_v11 }
  0x82   :  { %7987 = vmatpush3.msra.mxu1 %v2198_v5  ;;  %8018 = vmatprep.subr.mxu0 %v2194_v21  ;;  %v9518_v5 = vld [vmem:[#allocation4 + $0x78] sm:$0xff] }
  0x83   :  { %7914 = vmatmul.mubr.msk.f32.gmra.mxu0 %vm101_vm1, %v8887_v14  ;;  %7988 = vmatprep.subr.mxu1 %v2197_v6  ;;  %11494 = vst [vmem:[#allocation11_spill] sm:$0xff] %v9518_v5 }
  0x84   :  { %7940 = vmatmul.mubr.msk.f32.gmra.mxu1 %vm101_vm1, %v8882_v13  ;;  %7916 = vmatprep.mubr.msk.f32.mxu0 %vm101_vm1, %v8897_v16 }
  0x85   :  { %7942 = vmatprep.mubr.msk.f32.mxu1 %vm101_vm1, %v8892_v15  ;;  %7989 = vmatpush3.msra.mxu1 %v2197_v6 }
  0x86   :  { %7990 = vmatprep.subr.mxu1 %v2196_v18 }
  0x87   :  { %7917 = vmatmul.mubr.msk.f32.gmra.mxu0 %vm101_vm1, %v8921_v20  ;;  %7991 = vmatpush3.msra.mxu1 %v2196_v18 }
  0x88   :  { %7943 = vmatmul.mubr.msk.f32.gmra.mxu1 %vm101_vm1, %v8916_v19  ;;  %7919 = vmatprep.mubr.msk.f32.mxu0 %vm101_vm1, %v9115_v48 }
  0x89   :  { %7945 = vmatprep.mubr.msk.f32.mxu1 %vm101_vm1, %v6721_v59 }
  0x8b   :  { %7920 = vmatmul.mubr.msk.f32.gmra.mxu0 %vm101_vm1, %v6787_v63 }
  0x8c   :  { %7946 = vmatmul.mubr.msk.f32.gmra.mxu1 %vm101_vm1, %v6820_v0  ;;  %7922 = vmatprep.mubr.msk.f32.mxu0 %vm101_vm1, %v8956_v26 }
  0x8d   :  { %7948 = vmatprep.mubr.msk.f32.mxu1 %vm101_vm1, %v8951_v25  ;;  %v2193_v25 = vld [vmem:[#allocation4 + $0x10] sm:$0xff] }
  0x8f   :  { %7923 = vmatmul.mubr.msk.f32.gmra.mxu0 %vm101_vm1, %v8978_v29 }
  0x90   :  { %7949 = vmatmul.mubr.msk.f32.gmra.mxu1 %vm101_vm1, %v8973_v28  ;;  %7925 = vmatprep.mubr.msk.f32.mxu0 %vm101_vm1, %v8988_v31  ;;  %v2192_v28 = vld [vmem:[#allocation4 + $0x8] sm:$0xff] }
  0x91   :  { %7951 = vmatprep.mubr.msk.f32.mxu1 %vm101_vm1, %v8983_v30 }
  0x93   :  { %7926 = vmatmul.mubr.msk.f32.gmra.mxu0 %vm101_vm1, %v9006_v33  ;;  %v2191_v33 = vld [vmem:[#allocation4] sm:$0xff] }
  0x94   :  { %7952 = vmatmul.mubr.msk.f32.gmra.mxu1 %vm101_vm1, %v9001_v32  ;;  %7928 = vmatprep.mubr.msk.f32.mxu0 %vm101_vm1, %v9016_v35  ;;  %v2195_v32 = vld [vmem:[#allocation4 + $0x20] sm:$0xff] }
  0x95   :  { %7954 = vmatprep.mubr.msk.f32.mxu1 %vm101_vm1, %v9011_v34  ;;  %7992 = vmatprep.subr.mxu1 %v2195_v32  ;;  %v2243_v34 = vld [vmem:[#allocation2 + $0x1] sm:$0xff] }
  0x96   :  { %v2227_v35 = vld [vmem:[#allocation2] sm:$0xff]  ;;  %7993 = vmatpush3.msra.mxu1 %v2195_v32 }
  0x97   :  { %7929 = vmatmul.mubr.msk.f32.gmra.mxu0 %vm101_vm1, %v9034_v37 }
  0x98   :  { %7955 = vmatmul.mubr.msk.f32.gmra.mxu1 %vm101_vm1, %v9029_v36  ;;  %7931 = vmatprep.mubr.msk.f32.mxu0 %vm101_vm1, %v9186_v57 }
  0x99   :  { %7957 = vmatprep.mubr.msk.f32.mxu1 %vm101_vm1, %v6729_v61 }
  0x9b   :  { %7932 = vmatmul.mubr.msk.f32.gmra.mxu0 %vm101_vm1, %v6795_v1 }
  0x9c   :  { %7958 = vmatmul.mubr.msk.f32.gmra.mxu1 %vm101_vm1, %v6828_v2  ;;  %7962 = vmatprep.mubr.msk.f32.mxu0 %vm101_vm1, %v9052_v40 }
  0x9d   :  { %7994 = vmatprep.mubr.msk.f32.mxu1 %vm2132_vm2, %v2243_v34 }
  0x9f   :  { %7963 = vmatmul.mubr.msk.f32.vlgmr.msra.gmra.mxu0 %vm101_vm1, %v9069_v43 }
  0xa0   :  { %7965 = vmatprep.mubr.msk.f32.mxu0 %vm101_vm1, %v9076_v44  ;;  %8019 = vmatpush3.msra.mxu0 %v2194_v21 }
  0xa1   :  { %8020 = vmatprep.subr.mxu0 %v2193_v25 }
  0xa2   :  { %8021 = vmatpush3.msra.mxu0 %v2193_v25 }
  0xa3   :  { %7966 = vmatmul.mubr.msk.f32.gmra.mxu0 %vm101_vm1, %v9090_v45  ;;  %8022 = vmatprep.subr.mxu0 %v2192_v28 }
  0xa4   :  { %7968 = vmatprep.mubr.msk.f32.mxu0 %vm101_vm1, %v9097_v46  ;;  %8023 = vmatpush3.msra.mxu0 %v2192_v28  ;;  %v9487_v46 = vld [vmem:[#allocation4 + $0x58] sm:$0xff] }
  0xa5   :  { %8024 = vmatprep.subr.mxu0 %v2191_v33  ;;  %11493 = vst [vmem:[#allocation10_spill] sm:$0xff] %v9487_v46  ;;  %8050 = vmatprep.subr.mxu1 %v9487_v46 }
  0xa6   :  { %8025 = vmatpush3.msra.mxu0 %v2191_v33 }
  0xa7   :  { %7969 = vmatmul.mubr.msk.f32.gmra.mxu0 %vm101_vm1, %v9108_v47  ;;  %8082 = vmatprep.subr.mxu0 %v9518_v5 }
  0xa8   :  { %7971 = vmatprep.mubr.msk.f32.mxu0 %vm101_vm1, %v9231_v60 }
  0xab   :  { %7972 = vmatmul.mubr.msk.f32.gmra.mxu0 %vm101_vm1, %v6853_v3 }
  0xac   :  { %7974 = vmatprep.mubr.msk.f32.mxu0 %vm101_vm1, %v9133_v51 }
  0xaf   :  { %7975 = vmatmul.mubr.msk.f32.gmra.mxu0 %vm101_vm1, %v9143_v52 }
  0xb0   :  { %7977 = vmatprep.mubr.msk.f32.mxu0 %vm101_vm1, %v9150_v53 }
  0xb3   :  { %7978 = vmatmul.mubr.msk.f32.gmra.mxu0 %vm101_vm1, %v9161_v54 }
  0xb4   :  { %7980 = vmatprep.mubr.msk.f32.mxu0 %vm101_vm1, %v9168_v55 }
  0xb7   :  { %7981 = vmatmul.mubr.msk.f32.gmra.mxu0 %vm101_vm1, %v9179_v56 }
  0xb8   :  { %7983 = vmatprep.mubr.msk.f32.mxu0 %vm101_vm1, %v6762_v62 }
  0xbb   :  { %7984 = vmatmul.mubr.msk.f32.gmra.mxu0 %vm101_vm1, %v6861_v4 }
  0xbc   :  { %8026 = vmatprep.mubr.msk.f32.mxu0 %vm2132_vm2, %v2227_v35 }
  0xdf   :  { %v7756_v7 = vpop.f32.mrf.mxu0 }
  0xe0   :  { %v7782_v8 = vpop.f32.mrf.mxu1 }
  0xe1   :  { %v9377_v9 = vadd.f32 %v7782_v8, %v7756_v7  ;;  %v9379_v10 = vpop.f32.mrf.mxu0 }
  0xe2   :  { %v9381_v11 = vpop.f32.mrf.mxu1 }
  0xe3   :  { %v7759_v12 = vpop.f32.mrf.mxu0 }
  0xe4   :  { %v7785_v13 = vpop.f32.mrf.mxu1 }
  0xe5   :  { %v9383_v14 = vadd.f32 %v7785_v13, %v7759_v12  ;;  %v9385_v15 = vpop.f32.mrf.mxu0 }
  0xe6   :  { %v9387_v16 = vpop.f32.mrf.mxu1 }
  0xe7   :  { %v7762_v19 = vpop.f32.mrf.mxu0 }
  0xe8   :  { %v7788_v20 = vpop.f32.mrf.mxu1 }
  0xe9   :  { %v442_v22 = vadd.f32 %v7788_v20, %v7762_v19  ;;  %v9469_v23 = vpop.f32.mrf.mxu0 }
  0xea   :  { %v9471_v24 = vpop.f32.mrf.mxu1 }
  0xeb   :  { %v7765_v26 = vpop.f32.mrf.mxu0 }
  0xec   :  { %v7791_v27 = vpop.f32.mrf.mxu1 }
  0xed   :  { %v452_v29 = vadd.f32 %v7791_v27, %v7765_v26  ;;  %v9473_v30 = vpop.f32.mrf.mxu0 }
  0xee   :  { %v9475_v31 = vpop.f32.mrf.mxu1 }
  0xef   :  { %v7768_v36 = vpop.f32.mrf.mxu0 }
  0xf0   :  { %v7794_v37 = vpop.f32.mrf.mxu1 }
  0xf1   :  { %v462_v38 = vadd.f32 %v7794_v37, %v7768_v36  ;;  %v9479_v39 = vpop.f32.mrf.mxu0 }
  0xf2   :  { %v9481_v40 = vpop.f32.mrf.mxu1 }
  0xf3   :  { %v7771_v41 = vpop.f32.mrf.mxu0 }
  0xf4   :  { %v7797_v42 = vpop.f32.mrf.mxu1 }
  0xf5   :  { %v472_v43 = vadd.f32 %v7797_v42, %v7771_v41  ;;  %v9483_v44 = vpop.f32.mrf.mxu0 }
  0xf6   :  { %v9485_v45 = vpop.f32.mrf.mxu1 }
  0xf7   :  { %v7774_v47 = vpop.f32.mrf.mxu0 }
  0xf8   :  { %v7800_v48 = vpop.f32.mrf.mxu1 }
  0xf9   :  { %v482_v49 = vadd.f32 %v7800_v48, %v7774_v47  ;;  %v9490_v50 = vpop.f32.mrf.mxu0 }
  0xfa   :  { %v9492_v51 = vpop.f32.mrf.mxu1 }
  0xfb   :  { %v7777_v52 = vpop.f32.mrf.mxu0 }
  0xfc   :  { %v7803_v53 = vpop.f32.mrf.mxu1 }
  0xfd   :  { %v492_v54 = vadd.f32 %v7803_v53, %v7777_v52  ;;  %v9494_v55 = vpop.f32.mrf.mxu0 }
  0xfe   :  { %v9496_v56 = vpop.f32.mrf.mxu1 }
  0xff   :  { %v7808_v57 = vpop.f32.mrf.mxu0 }
 0x100   :  { %v9498_v58 = vpop.f32.mrf.mxu1  ;;  %v9501_v59 = vadd.f32 %v7808_v57, %v9377_v9 }
 0x101   :  { %v9503_v60 = vpop.f32.mrf.mxu0 }
 0x102   :  { %v9505_v61 = vpop.f32.mrf.mxu1 }
 0x103   :  { %v7811_v62 = vpop.f32.mrf.mxu0 }
 0x104   :  { %v9507_v63 = vpop.f32.mrf.mxu1  ;;  %v9510_v0 = vadd.f32 %v7811_v62, %v9383_v14 }
 0x105   :  { %v9512_v1 = vpop.f32.mrf.mxu0 }
 0x106   :  { %v9514_v2 = vpop.f32.mrf.mxu1 }
 0x107   :  { %v7814_v3 = vpop.f32.mrf.mxu0 }
 0x108   :  { %v9516_v4 = vpop.f32.mrf.mxu1  ;;  %v9520_v6 = vadd.f32 %v7814_v3, %v442_v22 }
 0x109   :  { %v9523_v7 = vpop.f32.mrf.mxu0 }
 0x10a   :  { %v9525_v8 = vpop.f32.mrf.mxu1 }
 0x10b   :  { %v7817_v9 = vpop.f32.mrf.mxu0 }
 0x10c   :  { %v9527_v12 = vpop.f32.mrf.mxu1  ;;  %v9529_v13 = vadd.f32 %v7817_v9, %v452_v29 }
 0x10d   :  { %v9531_v14 = vpop.f32.mrf.mxu0 }
 0x10e   :  { %v9533_v18 = vpop.f32.mrf.mxu1 }
 0x10f   :  { %v7820_v19 = vpop.f32.mrf.mxu0 }
 0x110   :  { %v9535_v20 = vpop.f32.mrf.mxu1  ;;  %v9537_v21 = vadd.f32 %v7820_v19, %v462_v38 }
 0x111   :  { %v9539_v22 = vpop.f32.mrf.mxu0 }
 0x112   :  { %v9541_v25 = vpop.f32.mrf.mxu1 }
 0x113   :  { %11495 = vst [vmem:[#allocation12_spill] sm:$0xff] %v9541_v25  ;;  %v7823_v26 = vpop.f32.mrf.mxu0 }
 0x114   :  { %v9543_v27 = vpop.f32.mrf.mxu1  ;;  %v9545_v28 = vadd.f32 %v7823_v26, %v472_v43 }
 0x115   :  { %11496 = vst [vmem:[#allocation13_spill] sm:$0xff] %v9543_v27  ;;  %v9547_v29 = vpop.f32.mrf.mxu0 }
 0x116   :  { %11497 = vst [vmem:[#allocation14_spill] sm:$0xff] %v9545_v28  ;;  %v9549_v32 = vpop.f32.mrf.mxu1 }
 0x117   :  { %11498 = vst [vmem:[#allocation15_spill] sm:$0xff] %v9549_v32  ;;  %v7826_v33 = vpop.f32.mrf.mxu0 }
 0x118   :  { %v9551_v34 = vpop.f32.mrf.mxu1  ;;  %v9553_v35 = vadd.f32 %v7826_v33, %v482_v49 }
 0x119   :  { %11499 = vst [vmem:[#allocation16_spill] sm:$0xff] %v9551_v34  ;;  %v9555_v36 = vpop.f32.mrf.mxu0 }
 0x11a   :  { %11500 = vst [vmem:[#allocation17_spill] sm:$0xff] %v9553_v35  ;;  %11501 = vst [vmem:[#allocation18_spill] sm:$0xff] %v9555_v36  ;;  %v9557_v37 = vpop.f32.mrf.mxu1 }
 0x11b   :  { %11502 = vst [vmem:[#allocation19_spill] sm:$0xff] %v9557_v37  ;;  %v7829_v38 = vpop.f32.mrf.mxu0 }
 0x11c   :  { %v9559_v41 = vpop.f32.mrf.mxu1  ;;  %v9561_v42 = vadd.f32 %v7829_v38, %v492_v54 }
 0x11d   :  { %11503 = vst [vmem:[#allocation20_spill] sm:$0xff] %v9559_v41  ;;  %v9563_v43 = vpop.f32.mrf.mxu0 }
 0x11e   :  { %11504 = vst [vmem:[#allocation21_spill] sm:$0xff] %v9561_v42  ;;  %11505 = vst [vmem:[#allocation22_spill] sm:$0xff] %v9563_v43  ;;  %v9565_v47 = vpop.f32.mrf.mxu1 }
 0x11f   :  { %11506 = vst [vmem:[#allocation23_spill] sm:$0xff] %v9565_v47  ;;  %v7860_v48 = vpop.f32.mrf.mxu0 }
 0x120   :  { %v9567_v52 = vpop.f32.mrf.mxu1 }
 0x121   :  { %v1085_v53 = vpop.f32.mrf.mxu0 }
 0x122   :  { %v9569_v57 = vpop.f32.mrf.mxu1 }
 0x123   :  { %v7863_v49 = vpop.f32.mrf.mxu0 }
 0x124   :  { %v9571_v62 = vpop.f32.mrf.mxu1 }
 0x125   :  { %v9573_v3 = vpop.f32.mrf.mxu0 }
 0x126   :  { %v9575_v9 = vpop.f32.mrf.mxu1 }
 0x127   :  { %v9577_v19 = vpop.f32.mrf.mxu0 }
 0x128   :  { %v9579_v54 = vpop.f32.mrf.mxu1 }
 0x129   :  { %v9581_v26 = vpop.f32.mrf.mxu0 }
 0x12a   :  { %v9583_v33 = vpop.f32.mrf.mxu1 }
 0x12b   :  { %11507 = vst [vmem:[#allocation24_spill] sm:$0xff] %v9583_v33  ;;  %v9585_v38 = vpop.f32.mrf.mxu0 }
 0x12c   :  { %v9587_v17 = vpop.f32.mrf.mxu1 }
 0x12d   :  { %11508 = vst [vmem:[#allocation25_spill] sm:$0xff] %v9587_v17  ;;  %v9589_v5 = vpop.f32.mrf.mxu0 }
 0x12e   :  { %11509 = vst [vmem:[#allocation26_spill] sm:$0xff] %v9589_v5  ;;  %v9591_v46 = vpop.f32.mrf.mxu1  ;;  %v417_v5 = vadd.f32 %v9381_v11, %v9379_v10 }
 0x12f   :  { %11510 = vst [vmem:[#allocation27_spill] sm:$0xff] %v9591_v46  ;;  %v9593_v47 = vpop.f32.mrf.mxu0 }
 0x130   :  { %11511 = vst [vmem:[#allocation28_spill] sm:$0xff] %v9593_v47  ;;  %v9595_v41 = vpop.f32.mrf.mxu1  ;;  %v707_v25 = vadd.f32 %v9503_v60, %v417_v5  ;;  %v437_v60 = vadd.f32 %v9471_v24, %v9469_v23  ;;  %v447_v23 = vadd.f32 %v9475_v31, %v9473_v30  ;;  %v941_v24 = vadd.f32 %v9516_v4, %v9520_v6 }
 0x131   :  { %11512 = vst [vmem:[#allocation29_spill] sm:$0xff] %v9595_v41  ;;  %v9597_v42 = vpop.f32.mrf.mxu0  ;;  %v467_v4 = vadd.f32 %v9485_v45, %v9483_v44  ;;  %v9703_v44 = vadd.f32 %v9496_v56, %v9494_v55  ;;  %v945_v55 = vadd.f32 %v9535_v20, %v9537_v21 }
 0x132   :  { %11513 = vst [vmem:[#allocation30_spill] sm:$0xff] %v9597_v42  ;;  %v9599_v43 = vpop.f32.mrf.mxu1  ;;  %v1169_v30 = vadd.f32 %v9577_v19, %v941_v24 }
 0x133   :  { %11514 = vst [vmem:[#allocation31_spill] sm:$0xff] %v9599_v43  ;;  %v9601_v37 = vpop.f32.mrf.mxu0 }
 0x134   :  { %11515 = vst [vmem:[#allocation32_spill] sm:$0xff] %v9601_v37  ;;  %v9603_v34 = vpop.f32.mrf.mxu1 }
 0x135   :  { %11516 = vst [vmem:[#allocation33_spill] sm:$0xff] %v9603_v34  ;;  %v9605_v35 = vpop.f32.mrf.mxu0 }
 0x136   :  { %11517 = vst [vmem:[#allocation34_spill] sm:$0xff] %v9605_v35  ;;  %v9607_v36 = vpop.f32.mrf.mxu1 }
 0x137   :  { %11518 = vst [vmem:[#allocation35_spill] sm:$0xff] %v9607_v36  ;;  %v9609_v17 = vpop.f32.mrf.mxu0 }
 0x138   :  { %11519 = vst [vmem:[#allocation36_spill] sm:$0xff] %v9609_v17  ;;  %v9611_v32 = vpop.f32.mrf.mxu1 }
 0x139   :  { %11520 = vst [vmem:[#allocation37_spill] sm:$0xff] %v9611_v32  ;;  %v9613_v46 = vpop.f32.mrf.mxu0 }
 0x13a   :  { %11521 = vst [vmem:[#allocation38_spill] sm:$0xff] %v9613_v46  ;;  %v9615_v47 = vpop.f32.mrf.mxu1 }
 0x13b   :  { %11522 = vst [vmem:[#allocation39_spill] sm:$0xff] %v9615_v47  ;;  %v9617_v41 = vpop.f32.mrf.mxu0 }
 0x13c   :  { %11523 = vst [vmem:[#allocation40_spill] sm:$0xff] %v9617_v41  ;;  %v9619_v42 = vpop.f32.mrf.mxu1 }
 0x13d   :  { %11524 = vst [vmem:[#allocation41_spill] sm:$0xff] %v9619_v42  ;;  %v9621_v43 = vpop.f32.mrf.mxu0 }
 0x13e   :  { %11525 = vst [vmem:[#allocation42_spill] sm:$0xff] %v9621_v43  ;;  %v9623_v37 = vpop.f32.mrf.mxu1 }
 0x13f   :  { %11526 = vst [vmem:[#allocation43_spill] sm:$0xff] %v9623_v37  ;;  %v7912_v34 = vpop.f32.mrf.mxu0 }
 0x140   :  { %v7938_v35 = vpop.f32.mrf.mxu1 }
 0x141   :  { %v1542_v27 = vpop.f32.mrf.mxu0 }
 0x142   :  { %v9625_v36 = vpop.f32.mrf.mxu1 }
 0x143   :  { %v7915_v17 = vpop.f32.mrf.mxu0 }
 0x144   :  { %v9627_v32 = vpop.f32.mrf.mxu1 }
 0x145   :  { %v1552_v28 = vpop.f32.mrf.mxu0  ;;  %11527 = vst [vmem:[#allocation44_spill] sm:$0xff] %v9627_v32 }
 0x146   :  { %v9631_v47 = vpop.f32.mrf.mxu1 }
 0x147   :  { %v9629_v46 = vpop.f32.mrf.mxu0  ;;  %11529 = vst [vmem:[#allocation46_spill] sm:$0xff] %v9631_v47  ;;  %v427_v47 = vadd.f32 %v9387_v16, %v9385_v15  ;;  %v939_v15 = vadd.f32 %v9507_v63, %v9510_v0 }
 0x148   :  { %11528 = vst [vmem:[#allocation45_spill] sm:$0xff] %v9629_v46  ;;  %v9637_v43 = vpop.f32.mrf.mxu1 }
 0x149   :  { %v9633_v41 = vpop.f32.mrf.mxu0  ;;  %11531 = vst [vmem:[#allocation48_spill] sm:$0xff] %v9637_v43  ;;  %v709_v10 = vadd.f32 %v9512_v1, %v427_v47 }
 0x14a   :  { %v9646_v32 = vpop.f32.mrf.mxu1 }
 0x14b   :  { %v9635_v42 = vpop.f32.mrf.mxu0 }
 0x14c   :  { %11530 = vst [vmem:[#allocation47_spill] sm:$0xff] %v9635_v42  ;;  %v937_v42 = vadd.f32 %v9498_v58, %v9501_v59  ;;  %v9660_v5 = vpop.f32.mrf.mxu1  ;;  %v711_v58 = vadd.f32 %v9523_v7, %v437_v60  ;;  %v11539_v60 = vld [vmem:[#allocation13_spill] sm:$0xff] }
 0x14d   :  { %v9639_v37 = vpop.f32.mrf.mxu0 }
 0x14e   :  { %11532 = vst [vmem:[#allocation49_spill] sm:$0xff] %v9639_v37  ;;  %v936_v37 = vadd.f32 %v9505_v61, %v707_v25  ;;  %v1165_v11 = vadd.f32 %v7860_v48, %v937_v42  ;;  %v938_v61 = vadd.f32 %v9514_v2, %v709_v10  ;;  %v1167_v25 = vadd.f32 %v7863_v49, %v939_v15  ;;  %v9675_v42 = vpop.f32.mrf.mxu1  ;;  %v9713_v49 = vld [vmem:[%s11479_s2] ss:$0 sm:$0xff] }
 0x14f   :  { %v9643_v33 = vpop.f32.mrf.mxu0  ;;  %v457_v2 = vadd.f32 %v9481_v40, %v9479_v39  ;;  %v713_v48 = vadd.f32 %v9531_v14, %v447_v23  ;;  %v943_v39 = vadd.f32 %v9527_v12, %v9529_v13  ;;  %v1397_v12 = vadd.f32 %v9579_v54, %v1169_v30  ;;  %v11537_v54 = vld [vmem:[#allocation45_spill] sm:$0xff]  ;;  %v11545_v30 = vld [vmem:[#allocation18_spill] sm:$0xff] }
 0x150   :  { %11533 = vst [vmem:[#allocation50_spill] sm:$0xff] %v9643_v33  ;;  %v1164_v16 = vadd.f32 %v1085_v53, %v936_v37  ;;  %v1393_v1 = vadd.f32 %v9567_v52, %v1165_v11  ;;  %v1166_v0 = vadd.f32 %v9573_v3, %v938_v61  ;;  %v940_v37 = vadd.f32 %v9525_v8, %v711_v58  ;;  %v9697_v14 = vpop.f32.mrf.mxu1  ;;  %v11538_v11 = vld [vmem:[#allocation14_spill] sm:$0xff]  ;;  %v11542_v61 = vld [vmem:[#allocation25_spill] sm:$0xff] }
 0x151   :  { %v9648_v46 = vpop.f32.mrf.mxu0  ;;  %v1395_v6 = vadd.f32 %v9571_v62, %v1167_v25  ;;  %v715_v40 = vadd.f32 %v9539_v22, %v457_v2  ;;  %v1171_v13 = vadd.f32 %v9585_v38, %v943_v39  ;;  %v947_v15 = vadd.f32 %v11539_v60, %v11538_v11  ;;  %v11543_v25 = vld [vmem:[#allocation28_spill] sm:$0xff]  ;;  %v11547_v39 = vld [vmem:[#allocation30_spill] sm:$0xff]  ;;  %v11556_v60 = vld [vmem:[#allocation31_spill] sm:$0xff] }
 0x152   :  { %v1392_v63 = vadd.f32 %v9569_v57, %v1164_v16  ;;  %v1622_v7 = vadd.f32 %v7912_v34, %v1393_v1  ;;  %v477_v34 = vadd.f32 %v9492_v51, %v9490_v50  ;;  %v1168_v8 = vadd.f32 %v9581_v26, %v940_v37  ;;  %v9722_v38 = vpop.f32.mrf.mxu1  ;;  %v11540_v16 = vld [vmem:[#allocation44_spill] sm:$0xff] }
 0x153   :  { %v9654_v43 = vpop.f32.mrf.mxu0  ;;  %v1394_v45 = vadd.f32 %v9575_v9, %v1166_v0  ;;  %v1624_v57 = vadd.f32 %v7915_v17, %v1395_v6  ;;  %v942_v50 = vadd.f32 %v9533_v18, %v713_v48  ;;  %v717_v51 = vadd.f32 %v9547_v29, %v467_v4  ;;  %v11534_v18 = vld [vmem:[#allocation12_spill] sm:$0xff]  ;;  %v11536_v9 = vld [vmem:[#allocation26_spill] sm:$0xff]  ;;  %v11546_v6 = vld [vmem:[#allocation27_spill] sm:$0xff] }
 0x154   :  { %v1621_v52 = vadd.f32 %v1542_v27, %v1392_v63  ;;  %v1850_v27 = vadd.f32 %v7938_v35, %v1622_v7  ;;  %v944_v62 = vadd.f32 %v11534_v18, %v715_v40  ;;  %v11535_v29 = vld [vmem:[#allocation24_spill] sm:$0xff]  ;;  %v1626_v26 = vadd.f32 %v11537_v54, %v1397_v12  ;;  %v11544_v0 = vld [vmem:[#allocation46_spill] sm:$0xff] }
 0x155   :  { %v9662_v33 = vpop.f32.mrf.mxu0  ;;  %v1623_v17 = vadd.f32 %v1552_v28, %v1394_v45  ;;  %v1396_v3 = vadd.f32 %v11535_v29, %v1168_v8  ;;  %v1170_v19 = vadd.f32 %v11536_v9, %v942_v50  ;;  %v1852_v20 = vadd.f32 %v11540_v16, %v1624_v57  ;;  %v11548_v8 = vld [vmem:[#allocation48_spill] sm:$0xff]  ;;  %v11549_v50 = vld [vmem:[#allocation47_spill] sm:$0xff] }
 0x156   :  { %v1849_v56 = vadd.f32 %v9625_v36, %v1621_v52  ;;  %v11541_v36 = vld [vmem:[#allocation15_spill] sm:$0xff]  ;;  %v1399_v1 = vadd.f32 %v11542_v61, %v1171_v13  ;;  %v1173_v23 = vadd.f32 %v11543_v25, %v945_v55  ;;  %v719_v4 = vadd.f32 %v11545_v30, %v477_v34  ;;  %v11551_v55 = vld [vmem:[#allocation16_spill] sm:$0xff] }
 0x157   :  { %v9667_v59 = vpop.f32.mrf.mxu0  ;;  %v946_v58 = vadd.f32 %v11541_v36, %v717_v51  ;;  %v1625_v24 = vadd.f32 %v9633_v41, %v1396_v3  ;;  %v1851_v7 = vadd.f32 %v11544_v0, %v1623_v17  ;;  %v1398_v52 = vadd.f32 %v11546_v6, %v1170_v19  ;;  %v11554_v3 = vld [vmem:[#allocation49_spill] sm:$0xff] }
 0x158   :  { %v1172_v40 = vadd.f32 %v11547_v39, %v944_v62  ;;  %v1854_v45 = vadd.f32 %v11548_v8, %v1626_v26  ;;  %v1628_v41 = vadd.f32 %v11549_v50, %v1399_v1  ;;  %v11560_v0 = vld [vmem:[#allocation33_spill] sm:$0xff]  ;;  %v11563_v39 = vld [vmem:[#allocation20_spill] sm:$0xff]  ;;  %v11564_v8 = vld [vmem:[#allocation35_spill] sm:$0xff] }
 0x159   :  { %v9677_v47 = vpop.f32.mrf.mxu0  ;;  %v1853_v62 = vadd.f32 %v9646_v32, %v1625_v24  ;;  %v1627_v9 = vadd.f32 %v11554_v3, %v1398_v52  ;;  %v11559_v24 = vld [vmem:[#allocation22_spill] sm:$0xff]  ;;  %v11562_v52 = vld [vmem:[#allocation21_spill] sm:$0xff] }
 0x15a   :  { %v1400_v16 = vadd.f32 %v11556_v60, %v1172_v40  ;;  %v1856_v61 = vadd.f32 %v9660_v5, %v1628_v41  ;;  %v951_v40 = vadd.f32 %v11563_v39, %v11562_v52 }
 0x15b   :  { %v9686_v31 = vpop.f32.mrf.mxu0  ;;  %v1855_v30 = vadd.f32 %v9675_v42, %v1627_v9 }
 0x15d   :  { %v9699_v53 = vpop.f32.mrf.mxu0 }
 0x15f   :  { %v7964_v22 = vpop.f32.mrf.mxu0 }
 0x160   :  { %v2078_v35 = vadd.f32 %v7964_v22, %v1850_v27  ;;  %v9738_v27 = vpop.f32.mrf.mxu1  ;;  %v11550_v22 = vld [vmem:[#allocation17_spill] sm:$0xff] }
 0x161   :  { %v1998_v10 = vpop.f32.mrf.mxu0  ;;  %v949_v34 = vadd.f32 %v11551_v55, %v11550_v22  ;;  %v11566_v22 = vld [vmem:[#allocation23_spill] sm:$0xff] }
 0x162   :  { %v2101_v21 = vadd.f32 %v9713_v49, %v2078_v35  ;;  %v2077_v28 = vadd.f32 %v1998_v10, %v1849_v56  ;;  %v11552_v56 = vld [vmem:[#allocation29_spill] sm:$0xff]  ;;  %v11553_v35 = vld [vmem:[#allocation32_spill] sm:$0xff]  ;;  %v11555_v10 = vld [vmem:[#allocation19_spill] sm:$0xff] }
 0x163   :  { %v7967_v63 = vpop.f32.mrf.mxu0  ;;  %v1401_v17 = vadd.f32 %v11552_v56, %v1173_v23  ;;  %v1175_v18 = vadd.f32 %v11553_v35, %v947_v15  ;;  %v948_v11 = vadd.f32 %v11555_v10, %v719_v4  ;;  %v9755_v15 = vpop.f32.mrf.mxu1  ;;  %v2205_v10 = vld [vmem:[#allocation4 + $0x70] sm:$0xff] }
 0x164   :  { %v2117_v2 = vmax.f32 %v2101_v21, 0.0  ;;  %v2100_v37 = vadd.f32 %v9713_v49, %v2077_v28  ;;  %v2080_v48 = vadd.f32 %v7967_v63, %v1852_v20  ;;  %v11557_v20 = vld [vmem:[#allocation34_spill] sm:$0xff]  ;;  %v721_v63 = vadd.f32 %v11559_v24, %v9703_v44 }
 0x165   :  { %v2008_v57 = vpop.f32.mrf.mxu0  ;;  %v1174_v21 = vadd.f32 %v11557_v20, %v946_v58  ;;  %v11558_v28 = vld [vmem:[#allocation50_spill] sm:$0xff]  ;;  %v7956_v41 = vpop.f32.mrf.mxu1 }
 0x166   :  { %2176 = vst.msk [vmem:[#allocation2 + $0x21] sm:$0xff] %vm2132_vm2, %v2117_v2  ;;  %v2116_v51 = vmax.f32 %v2100_v37, 0.0  ;;  %v2103_v12 = vadd.f32 %v9713_v49, %v2080_v48  ;;  %v2079_v13 = vadd.f32 %v2008_v57, %v1851_v7  ;;  %v1630_v36 = vadd.f32 %v11558_v28, %v1401_v17  ;;  %v11561_v2 = vld [vmem:[#allocation36_spill] sm:$0xff] }
 0x167   :  { %v7970_v29 = vpop.f32.mrf.mxu0  ;;  %v1403_v7 = vadd.f32 %v11560_v0, %v1175_v18  ;;  %v1177_v58 = vadd.f32 %v11561_v2, %v949_v34  ;;  %v1629_v37 = vadd.f32 %v9648_v46, %v1400_v16  ;;  %v1402_v44 = vadd.f32 %v11564_v8, %v1174_v21  ;;  %v11567_v34 = vld [vmem:[#allocation37_spill] sm:$0xff]  ;;  %v11568_v17 = vld [vmem:[#allocation40_spill] sm:$0xff]  ;;  %v1830_v21 = vpop.f32.mrf.mxu1 }
 0x168   :  { %2175 = vst.msk [vmem:[#allocation2 + $0x11] sm:$0xff] %vm2132_vm2, %v2116_v51  ;;  %v2119_v19 = vmax.f32 %v2103_v12, 0.0  ;;  %v2102_v54 = vadd.f32 %v9713_v49, %v2079_v13  ;;  %v2082_v26 = vadd.f32 %v7970_v29, %v1854_v45  ;;  %v11565_v45 = vld [vmem:[#allocation38_spill] sm:$0xff]  ;;  %v1858_v50 = vadd.f32 %v9697_v14, %v1630_v36 }
 0x169   :  { %v2018_v32 = vpop.f32.mrf.mxu0  ;;  %v1176_v57 = vadd.f32 %v11565_v45, %v948_v11  ;;  %v1632_v51 = vadd.f32 %v9654_v43, %v1403_v7  ;;  %v950_v55 = vadd.f32 %v11566_v22, %v721_v63  ;;  %v1405_v56 = vadd.f32 %v11567_v34, %v1177_v58  ;;  %v2201_v43 = vld [vmem:[#allocation4 + $0x50] sm:$0xff]  ;;  %v11569_v11 = vld [vmem:[#allocation39_spill] sm:$0xff]  ;;  %v7959_v39 = vpop.f32.mrf.mxu1 }
 0x16a   :  { %2178 = vst.msk [vmem:[#allocation2 + $0x41] sm:$0xff] %vm2132_vm2, %v2119_v19  ;;  %v2118_v1 = vmax.f32 %v2102_v54, 0.0  ;;  %v2105_v25 = vadd.f32 %v9713_v49, %v2082_v26  ;;  %v2081_v23 = vadd.f32 %v2018_v32, %v1853_v62  ;;  %v1179_v35 = vadd.f32 %v11568_v17, %v951_v40 }
 0x16b   :  { %v7973_v48 = vpop.f32.mrf.mxu0  ;;  %v1857_v18 = vadd.f32 %v9722_v38, %v1629_v37  ;;  %v1631_v3 = vadd.f32 %v9662_v33, %v1402_v44  ;;  %v1404_v60 = vadd.f32 %v11569_v11, %v1176_v57  ;;  %v11570_v33 = vld [vmem:[#allocation42_spill] sm:$0xff]  ;;  %v1634_v20 = vadd.f32 %v9667_v59, %v1405_v56  ;;  %v11573_v59 = vld [vmem:[#allocation41_spill] sm:$0xff]  ;;  %v1840_v17 = vpop.f32.mrf.mxu1 }
 0x16c   :  { %2177 = vst.msk [vmem:[#allocation2 + $0x31] sm:$0xff] %vm2132_vm2, %v2118_v1  ;;  %v2121_v5 = vmax.f32 %v2105_v25, 0.0  ;;  %v2104_v4 = vadd.f32 %v9713_v49, %v2081_v23  ;;  %v2084_v6 = vadd.f32 %v7973_v48, %v1856_v61  ;;  %v1178_v16 = vadd.f32 %v11570_v33, %v950_v55  ;;  %v11571_v25 = vld [vmem:[#allocation10_spill] sm:$0xff]  ;;  %v11572_v23 = vld [vmem:[#allocation11_spill] sm:$0xff] }
 0x16d   :  { %v2028_v46 = vpop.f32.mrf.mxu0  ;;  %v9791_v38 = vld [vmem:[#allocation2 + $0x21] sm:$0xff]  ;;  %v1860_v36 = vadd.f32 %v9738_v27, %v1632_v51  ;;  %v1407_v24 = vadd.f32 %v11573_v59, %v1179_v35  ;;  %v1633_v63 = vadd.f32 %v9677_v47, %v1404_v60  ;;  %v1859_v58 = vadd.f32 %v9755_v15, %v1631_v3 }
 0x16e   :  { %2180 = vst.msk [vmem:[#allocation2 + $0x61] sm:$0xff] %vm2132_vm2, %v2121_v5  ;;  %v2120_v42 = vmax.f32 %v2104_v4, 0.0  ;;  %v2107_v12 = vadd.f32 %v9713_v49, %v2084_v6  ;;  %v2083_v13 = vadd.f32 %v2028_v46, %v1855_v30  ;;  %v9793_v26 = vld [vmem:[#allocation2 + $0x20] sm:$0xff]  ;;  %v2200_v27 = vld [vmem:[#allocation4 + $0x48] sm:$0xff]  ;;  %v1862_v15 = vadd.f32 %v7956_v41, %v1634_v20  ;;  %v2210_v20 = vld [vmem:[#allocation4 + $0x98] sm:$0xff] }
 0x16f   :  { %v7976_v62 = vpop.f32.mrf.mxu0  ;;  %v9780_v14 = vld [vmem:[#allocation2 + $0x11] sm:$0xff]  ;;  %v2204_v4 = vld [vmem:[#allocation4 + $0x68] sm:$0xff]  ;;  %v1636_v8 = vadd.f32 %v9686_v31, %v1407_v24  ;;  %v2203_v56 = vld [vmem:[#allocation4 + $0x60] sm:$0xff] }
 0x170   :  { %v9782_v29 = vld [vmem:[#allocation2 + $0x10] sm:$0xff]  ;;  %2179 = vst.msk [vmem:[#allocation2 + $0x51] sm:$0xff] %vm2132_vm2, %v2120_v42  ;;  %v2123_v9 = vmax.f32 %v2107_v12, 0.0  ;;  %v2106_v19 = vadd.f32 %v9713_v49, %v2083_v13  ;;  %v2086_v54 = vadd.f32 %v7976_v62, %v1858_v50  ;;  %7995 = vmatmul.mubr.msk.f32.vlgmr.msra.gmra.mxu1 %vm2132_vm2, %v9780_v14  ;;  %v11574_v6 = vld [vmem:[#allocation43_spill] sm:$0xff]  ;;  %v1861_v50 = vadd.f32 %v1830_v21, %v1633_v63  ;;  %v2199_v42 = vld [vmem:[#allocation4 + $0x40] sm:$0xff] }
 0x171   :  { %8027 = vmatmul.mubr.msk.f32.vlgmr.msra.gmra.mxu0 %vm2132_vm2, %v9782_v29  ;;  %v2038_v28 = vpop.f32.mrf.mxu0  ;;  %7997 = vmatprep.mubr.msk.f32.mxu1 %vm2132_vm2, %v9791_v38  ;;  %v9820_v47 = vld [vmem:[#allocation2 + $0x41] sm:$0xff]  ;;  %v1406_v52 = vadd.f32 %v11574_v6, %v1178_v16  ;;  %v2214_v21 = vld [vmem:[#allocation4 + $0xb8] sm:$0xff] }
 0x172   :  { %8029 = vmatprep.mubr.msk.f32.mxu0 %vm2132_vm2, %v9793_v26  ;;  %2182 = vst.msk [vmem:[#allocation2 + $0x81] sm:$0xff] %vm2132_vm2, %v2123_v9  ;;  %v2122_v32 = vmax.f32 %v2106_v19, 0.0  ;;  %v2109_v61 = vadd.f32 %v9713_v49, %v2086_v54  ;;  %v2085_v1 = vadd.f32 %v2038_v28, %v1857_v18  ;;  %8051 = vmatpush3.msra.mxu1 %v11571_v25  ;;  %v9822_v5 = vld [vmem:[#allocation2 + $0x40] sm:$0xff] }
 0x173   :  { %8083 = vmatpush3.msra.mxu0 %v11572_v23  ;;  %v7979_v0 = vpop.f32.mrf.mxu0  ;;  %v9809_v7 = vld [vmem:[#allocation2 + $0x31] sm:$0xff]  ;;  %8052 = vmatprep.subr.mxu1 %v2201_v43  ;;  %v1635_v12 = vadd.f32 %v9699_v53, %v1406_v52  ;;  %v1864_v53 = vadd.f32 %v7959_v39, %v1636_v8  ;;  %v2251_v3 = vld [vmem:[#allocation2 + $0xa1] sm:$0xff] }
 0x174   :  { %v9811_v2 = vld [vmem:[#allocation2 + $0x30] sm:$0xff]  ;;  %8084 = vmatprep.subr.mxu0 %v2205_v10  ;;  %2181 = vst.msk [vmem:[#allocation2 + $0x71] sm:$0xff] %vm2132_vm2, %v2122_v32  ;;  %v2125_v37 = vmax.f32 %v2109_v61, 0.0  ;;  %v2108_v48 = vadd.f32 %v9713_v49, %v2085_v1  ;;  %v2088_v30 = vadd.f32 %v7979_v0, %v1860_v36  ;;  %7998 = vmatmul.mubr.msk.f32.gmra.mxu1 %vm2132_vm2, %v9809_v7  ;;  %v2235_v9 = vld [vmem:[#allocation2 + $0xa0] sm:$0xff] }
 0x175   :  { %8030 = vmatmul.mubr.msk.f32.gmra.mxu0 %vm2132_vm2, %v9811_v2  ;;  %v2048_v40 = vpop.f32.mrf.mxu0  ;;  %8000 = vmatprep.mubr.msk.f32.mxu1 %vm2132_vm2, %v9820_v47  ;;  %v9843_v55 = vld [vmem:[#allocation2 + $0x61] sm:$0xff]  ;;  %v1863_v11 = vadd.f32 %v1840_v17, %v1635_v12 }
 0x176   :  { %8032 = vmatprep.mubr.msk.f32.mxu0 %vm2132_vm2, %v9822_v5  ;;  %2184 = vst.msk [vmem:[#allocation2 + $0xc1] sm:$0xff] %vm2132_vm2, %v2125_v37  ;;  %v2124_v44 = vmax.f32 %v2108_v48, 0.0  ;;  %v2111_v45 = vadd.f32 %v9713_v49, %v2088_v30  ;;  %v2087_v57 = vadd.f32 %v2048_v40, %v1859_v58  ;;  %8053 = vmatpush3.msra.mxu1 %v2201_v43  ;;  %v9845_v34 = vld [vmem:[#allocation2 + $0x60] sm:$0xff]  ;;  %v9930_v40 = vld [vmem:[#allocation2 + $0x12] sm:$0xff] }
 0x177   :  { %8085 = vmatpush3.msra.mxu0 %v2205_v10  ;;  %v7982_v41 = vpop.f32.mrf.mxu0  ;;  %v9832_v46 = vld [vmem:[#allocation2 + $0x51] sm:$0xff]  ;;  %8054 = vmatprep.subr.mxu1 %v2200_v27  ;;  %v2645_v52 = vld [vmem:[#allocation2 + $0x2] sm:$0xff] }
 0x178   :  { %v9834_v51 = vld [vmem:[#allocation2 + $0x50] sm:$0xff]  ;;  %8086 = vmatprep.subr.mxu0 %v2204_v4  ;;  %2183 = vst.msk [vmem:[#allocation2 + $0xb1] sm:$0xff] %vm2132_vm2, %v2124_v44  ;;  %v2127_v31 = vmax.f32 %v2111_v45, 0.0  ;;  %v2110_v13 = vadd.f32 %v9713_v49, %v2087_v57  ;;  %v2090_v22 = vadd.f32 %v7982_v41, %v1862_v15  ;;  %8001 = vmatmul.mubr.msk.f32.gmra.mxu1 %vm2132_vm2, %v9832_v46  ;;  %v9936_v8 = vld [vmem:[#allocation2 + $0x22] sm:$0xff] }
 0x179   :  { %8033 = vmatmul.mubr.msk.f32.gmra.mxu0 %vm2132_vm2, %v9834_v51  ;;  %v2058_v35 = vpop.f32.mrf.mxu0  ;;  %8003 = vmatprep.mubr.msk.f32.mxu1 %vm2132_vm2, %v9843_v55  ;;  %v2209_v44 = vld [vmem:[#allocation4 + $0x90] sm:$0xff]  ;;  %v9948_v57 = vld [vmem:[#allocation2 + $0x42] sm:$0xff] }
 0x17a   :  { %8035 = vmatprep.mubr.msk.f32.mxu0 %vm2132_vm2, %v9845_v34  ;;  %2186 = vst.msk [vmem:[#allocation2 + $0xe1] sm:$0xff] %vm2132_vm2, %v2127_v31  ;;  %v2126_v18 = vmax.f32 %v2110_v13, 0.0  ;;  %v2113_v62 = vadd.f32 %v9713_v49, %v2090_v22  ;;  %v2089_v43 = vadd.f32 %v2058_v35, %v1861_v50  ;;  %8055 = vmatpush3.msra.mxu1 %v2200_v27  ;;  %v2213_v45 = vld [vmem:[#allocation4 + $0xb0] sm:$0xff]  ;;  %v2208_v50 = vld [vmem:[#allocation4 + $0x88] sm:$0xff]  ;;  %v2207_v31 = vld [vmem:[#allocation4 + $0x80] sm:$0xff] }
 0x17b   :  { %8087 = vmatpush3.msra.mxu0 %v2204_v4  ;;  %v7985_v19 = vpop.f32.mrf.mxu0  ;;  %v9853_v54 = vld [vmem:[#allocation2 + $0x71] sm:$0xff]  ;;  %8056 = vmatprep.subr.mxu1 %v2199_v42  ;;  %v2212_v41 = vld [vmem:[#allocation4 + $0xa8] sm:$0xff]  ;;  %v2211_v13 = vld [vmem:[#allocation4 + $0xa0] sm:$0xff] }
 0x17c   :  { %v9855_v10 = vld [vmem:[#allocation2 + $0x70] sm:$0xff]  ;;  %8088 = vmatprep.subr.mxu0 %v2203_v56  ;;  %2185 = vst.msk [vmem:[#allocation2 + $0xd1] sm:$0xff] %vm2132_vm2, %v2126_v18  ;;  %v2129_v60 = vmax.f32 %v2113_v62, 0.0  ;;  %v2112_v33 = vadd.f32 %v9713_v49, %v2089_v43  ;;  %v2092_v16 = vadd.f32 %v7985_v19, %v1864_v53  ;;  %8004 = vmatmul.mubr.msk.f32.gmra.mxu1 %vm2132_vm2, %v9853_v54  ;;  %v9960_v12 = vld [vmem:[#allocation2 + $0x62] sm:$0xff]  ;;  %v2218_v35 = vld [vmem:[#allocation4 + $0xd8] sm:$0xff] }
 0x17d   :  { %8036 = vmatmul.mubr.msk.f32.gmra.mxu0 %vm2132_vm2, %v9855_v10  ;;  %v2068_v28 = vpop.f32.mrf.mxu0  ;;  %8006 = vmatprep.mubr.msk.f32.mxu1 %vm2132_vm2, %v2251_v3  ;;  %v9877_v24 = vld [vmem:[#allocation2 + $0xc1] sm:$0xff]  ;;  %v2222_v53 = vld [vmem:[#allocation4 + $0xf8] sm:$0xff] }
 0x17e   :  { %8038 = vmatprep.mubr.msk.f32.mxu0 %vm2132_vm2, %v2235_v9  ;;  %2188 = vst.msk [vmem:[#allocation2 + $0x101] sm:$0xff] %vm2132_vm2, %v2129_v60  ;;  %v2128_v36 = vmax.f32 %v2112_v33, 0.0  ;;  %v2115_v32 = vadd.f32 %v9713_v49, %v2092_v16  ;;  %v2091_v61 = vadd.f32 %v2068_v28, %v1863_v11  ;;  %8057 = vmatpush3.msra.mxu1 %v2199_v42  ;;  %v9879_v63 = vld [vmem:[#allocation2 + $0xc0] sm:$0xff]  ;;  %v9954_v42 = vld [vmem:[#allocation2 + $0x52] sm:$0xff] }
 0x17f   :  { %8089 = vmatpush3.msra.mxu0 %v2203_v56  ;;  %v9867_v1 = vld [vmem:[#allocation2 + $0xb1] sm:$0xff]  ;;  %8114 = vmatprep.subr.mxu1 %v2210_v20  ;;  %v2653_v22 = vld [vmem:[#allocation2 + $0xa2] sm:$0xff] }
 0x180   :  { %v9869_v25 = vld [vmem:[#allocation2 + $0xb0] sm:$0xff]  ;;  %8146 = vmatprep.subr.mxu0 %v2214_v21  ;;  %2187 = vst.msk [vmem:[#allocation2 + $0xf1] sm:$0xff] %vm2132_vm2, %v2128_v36  ;;  %v2131_v23 = vmax.f32 %v2115_v32, 0.0  ;;  %v2114_v59 = vadd.f32 %v9713_v49, %v2091_v61  ;;  %8007 = vmatmul.mubr.msk.f32.gmra.mxu1 %vm2132_vm2, %v9867_v1  ;;  %v9968_v17 = vld [vmem:[#allocation2 + $0x80] sm:$0xff]  ;;  %v2226_v61 = vld [vmem:[#allocation4 + $0x118] sm:$0xff] }
 0x181   :  { %8039 = vmatmul.mubr.msk.f32.gmra.mxu0 %vm2132_vm2, %v9869_v25  ;;  %8009 = vmatprep.mubr.msk.f32.mxu1 %vm2132_vm2, %v9877_v24  ;;  %v9895_v58 = vld [vmem:[#allocation2 + $0xe1] sm:$0xff]  ;;  %v9966_v56 = vld [vmem:[#allocation2 + $0x72] sm:$0xff] }
 0x182   :  { %8041 = vmatprep.mubr.msk.f32.mxu0 %vm2132_vm2, %v9879_v63  ;;  %2190 = vst.msk [vmem:[#allocation2 + $0x121] sm:$0xff] %vm2132_vm2, %v2131_v23  ;;  %v2130_v0 = vmax.f32 %v2114_v59, 0.0  ;;  %v9897_v37 = vld [vmem:[#allocation2 + $0xe0] sm:$0xff]  ;;  %v2654_v18 = vld [vmem:[#allocation2 + $0xb2] sm:$0xff] }
 0x183   :  { %v9886_v49 = vld [vmem:[#allocation2 + $0xd1] sm:$0xff]  ;;  %v9980_v62 = vld [vmem:[#allocation2 + $0xc2] sm:$0xff] }
 0x184   :  { %v9888_v27 = vld [vmem:[#allocation2 + $0xd0] sm:$0xff]  ;;  %2189 = vst.msk [vmem:[#allocation2 + $0x111] sm:$0xff] %vm2132_vm2, %v2130_v0  ;;  %8010 = vmatmul.mubr.msk.f32.gmra.mxu1 %vm2132_vm2, %v9886_v49  ;;  %v9992_v3 = vld [vmem:[#allocation2 + $0xe2] sm:$0xff] }
 0x185   :  { %8042 = vmatmul.mubr.msk.f32.gmra.mxu0 %vm2132_vm2, %v9888_v27  ;;  %8012 = vmatprep.mubr.msk.f32.mxu1 %vm2132_vm2, %v9895_v58  ;;  %v9911_v4 = vld [vmem:[#allocation2 + $0x101] sm:$0xff]  ;;  %v9986_v43 = vld [vmem:[#allocation2 + $0xd2] sm:$0xff] }
 0x186   :  { %8044 = vmatprep.mubr.msk.f32.mxu0 %vm2132_vm2, %v9897_v37  ;;  %v9913_v6 = vld [vmem:[#allocation2 + $0x100] sm:$0xff]  ;;  %v2217_v33 = vld [vmem:[#allocation4 + $0xd0] sm:$0xff] }
 0x187   :  { %v9903_v48 = vld [vmem:[#allocation2 + $0xf1] sm:$0xff]  ;;  %v10004_v19 = vld [vmem:[#allocation2 + $0x102] sm:$0xff] }
 0x188   :  { %v9905_v30 = vld [vmem:[#allocation2 + $0xf0] sm:$0xff]  ;;  %8013 = vmatmul.mubr.msk.f32.gmra.mxu1 %vm2132_vm2, %v9903_v48  ;;  %v2219_v28 = vld [vmem:[#allocation4 + $0xe0] sm:$0xff] }
 0x189   :  { %8045 = vmatmul.mubr.msk.f32.gmra.mxu0 %vm2132_vm2, %v9905_v30  ;;  %8015 = vmatprep.mubr.msk.f32.mxu1 %vm2132_vm2, %v9911_v4  ;;  %v9998_v9 = vld [vmem:[#allocation2 + $0xf2] sm:$0xff]  ;;  %v10012_v60 = vld [vmem:[#allocation2 + $0x120] sm:$0xff] }
 0x18a   :  { %8047 = vmatprep.mubr.msk.f32.mxu0 %vm2132_vm2, %v9913_v6  ;;  %v2221_v16 = vld [vmem:[#allocation4 + $0xf0] sm:$0xff]  ;;  %v3102_v36 = vld [vmem:[#allocation2 + $0x81] sm:$0xff] }
 0x18b   :  { %v9919_v15 = vld [vmem:[#allocation2 + $0x111] sm:$0xff]  ;;  %v10046_v32 = vld [vmem:[#allocation2 + $0x82] sm:$0xff] }
 0x18c   :  { %v9921_v39 = vld [vmem:[#allocation2 + $0x110] sm:$0xff]  ;;  %8016 = vmatmul.mubr.msk.f32.gmra.mxu1 %vm2132_vm2, %v9919_v15 }
 0x18d   :  { %8048 = vmatmul.mubr.msk.f32.gmra.mxu0 %vm2132_vm2, %v9921_v39  ;;  %8058 = vmatprep.mubr.msk.f32.mxu1 %vm2132_vm2, %v2645_v52  ;;  %v10010_v11 = vld [vmem:[#allocation2 + $0x112] sm:$0xff] }
 0x18e   :  { %8090 = vmatprep.mubr.msk.f32.mxu0 %vm2132_vm2, %v9782_v29  ;;  %v9942_v29 = vld [vmem:[#allocation2 + $0x32] sm:$0xff] }
 0x18f   :  { %v2225_v23 = vld [vmem:[#allocation4 + $0x110] sm:$0xff] }
 0x190   :  { %8059 = vmatmul.mubr.msk.f32.vlgmr.msra.gmra.mxu1 %vm2132_vm2, %v9930_v40 }
 0x191   :  { %8091 = vmatmul.mubr.msk.f32.vlgmr.msra.gmra.mxu0 %vm2132_vm2, %v9793_v26  ;;  %8061 = vmatprep.mubr.msk.f32.mxu1 %vm2132_vm2, %v9936_v8 }
 0x192   :  { %8093 = vmatprep.mubr.msk.f32.mxu0 %vm2132_vm2, %v9811_v2  ;;  %8115 = vmatpush3.msra.mxu1 %v2210_v20  ;;  %v2220_v20 = vld [vmem:[#allocation4 + $0xe8] sm:$0xff] }
 0x193   :  { %8147 = vmatpush3.msra.mxu0 %v2214_v21  ;;  %8116 = vmatprep.subr.mxu1 %v2209_v44  ;;  %v2215_v21 = vld [vmem:[#allocation4 + $0xc0] sm:$0xff] }
 0x194   :  { %8148 = vmatprep.subr.mxu0 %v2213_v45  ;;  %8062 = vmatmul.mubr.msk.f32.gmra.mxu1 %vm2132_vm2, %v9942_v29 }
 0x195   :  { %8094 = vmatmul.mubr.msk.f32.gmra.mxu0 %vm2132_vm2, %v9822_v5  ;;  %8064 = vmatprep.mubr.msk.f32.mxu1 %vm2132_vm2, %v9948_v57 }
 0x196   :  { %8096 = vmatprep.mubr.msk.f32.mxu0 %vm2132_vm2, %v9834_v51  ;;  %8117 = vmatpush3.msra.mxu1 %v2209_v44 }
 0x197   :  { %8149 = vmatpush3.msra.mxu0 %v2213_v45  ;;  %8118 = vmatprep.subr.mxu1 %v2208_v50  ;;  %v4322_v45 = vld [vmem:[%s11482_s5 + $0x18] sm:$0xff] }
 0x198   :  { %8150 = vmatprep.subr.mxu0 %v2212_v41  ;;  %8065 = vmatmul.mubr.msk.f32.gmra.mxu1 %vm2132_vm2, %v9954_v42 }
 0x199   :  { %8097 = vmatmul.mubr.msk.f32.gmra.mxu0 %vm2132_vm2, %v9845_v34  ;;  %8067 = vmatprep.mubr.msk.f32.mxu1 %vm2132_vm2, %v9960_v12 }
 0x19a   :  { %8099 = vmatprep.mubr.msk.f32.mxu0 %vm2132_vm2, %v9855_v10  ;;  %8119 = vmatpush3.msra.mxu1 %v2208_v50 }
 0x19b   :  { %8151 = vmatpush3.msra.mxu0 %v2212_v41  ;;  %8120 = vmatprep.subr.mxu1 %v2207_v31  ;;  %v4329_v41 = vld [vmem:[%s11482_s5 + $0x50] sm:$0xff] }
 0x19c   :  { %8152 = vmatprep.subr.mxu0 %v2211_v13  ;;  %8068 = vmatmul.mubr.msk.f32.gmra.mxu1 %vm2132_vm2, %v9966_v56 }
 0x19d   :  { %8100 = vmatmul.mubr.msk.f32.gmra.mxu0 %vm2132_vm2, %v9968_v17  ;;  %8070 = vmatprep.mubr.msk.f32.mxu1 %vm2132_vm2, %v2653_v22  ;;  %v4320_v22 = vld [vmem:[%s11482_s5 + $0x8] sm:$0xff] }
 0x19e   :  { %8102 = vmatprep.mubr.msk.f32.mxu0 %vm2132_vm2, %v9869_v25  ;;  %8121 = vmatpush3.msra.mxu1 %v2207_v31  ;;  %v10078_v25 = vld [vmem:[#allocation2 + $0x122] sm:$0xff] }
 0x19f   :  { %8153 = vmatpush3.msra.mxu0 %v2211_v13  ;;  %8178 = vmatprep.subr.mxu1 %v2218_v35  ;;  %v4328_v13 = vld [vmem:[%s11482_s5 + $0x48] sm:$0xff] }
 0x1a0   :  { %8210 = vmatprep.subr.mxu0 %v2222_v53  ;;  %8071 = vmatmul.mubr.msk.f32.gmra.mxu1 %vm2132_vm2, %v2654_v18 }
 0x1a1   :  { %8103 = vmatmul.mubr.msk.f32.gmra.mxu0 %vm2132_vm2, %v9879_v63  ;;  %8073 = vmatprep.mubr.msk.f32.mxu1 %vm2132_vm2, %v9980_v62 }
 0x1a2   :  { %8105 = vmatprep.mubr.msk.f32.mxu0 %vm2132_vm2, %v9888_v27 }
 0x1a4   :  { %8074 = vmatmul.mubr.msk.f32.gmra.mxu1 %vm2132_vm2, %v9986_v43 }
 0x1a5   :  { %8106 = vmatmul.mubr.msk.f32.gmra.mxu0 %vm2132_vm2, %v9897_v37  ;;  %8076 = vmatprep.mubr.msk.f32.mxu1 %vm2132_vm2, %v9992_v3 }
 0x1a6   :  { %8108 = vmatprep.mubr.msk.f32.mxu0 %vm2132_vm2, %v9905_v30 }
 0x1a8   :  { %8077 = vmatmul.mubr.msk.f32.gmra.mxu1 %vm2132_vm2, %v9998_v9 }
 0x1a9   :  { %8109 = vmatmul.mubr.msk.f32.gmra.mxu0 %vm2132_vm2, %v9913_v6  ;;  %8079 = vmatprep.mubr.msk.f32.mxu1 %vm2132_vm2, %v10004_v19 }
 0x1aa   :  { %8111 = vmatprep.mubr.msk.f32.mxu0 %vm2132_vm2, %v9921_v39 }
 0x1ac   :  { %8080 = vmatmul.mubr.msk.f32.gmra.mxu1 %vm2132_vm2, %v10010_v11 }
 0x1ad   :  { %8112 = vmatmul.mubr.msk.f32.gmra.mxu0 %vm2132_vm2, %v10012_v60  ;;  %8122 = vmatprep.mubr.msk.f32.mxu1 %vm2132_vm2, %v9780_v14  ;;  %v2216_v14 = vld [vmem:[#allocation4 + $0xc8] sm:$0xff] }
 0x1ae   :  { %8154 = vmatprep.mubr.msk.f32.mxu0 %vm2132_vm2, %v9930_v40  ;;  %v4330_v40 = vld [vmem:[%s11482_s5 + $0x58] sm:$0xff] }
 0x1b0   :  { %8123 = vmatmul.mubr.msk.f32.vlgmr.msra.gmra.mxu1 %vm2132_vm2, %v9791_v38 }
 0x1b1   :  { %8155 = vmatmul.mubr.msk.f32.vlgmr.msra.gmra.mxu0 %vm2132_vm2, %v9936_v8  ;;  %8125 = vmatprep.mubr.msk.f32.mxu1 %vm2132_vm2, %v9809_v7 }
 0x1b2   :  { %8157 = vmatprep.mubr.msk.f32.mxu0 %vm2132_vm2, %v9942_v29  ;;  %8179 = vmatpush3.msra.mxu1 %v2218_v35 }
 0x1b3   :  { %8211 = vmatpush3.msra.mxu0 %v2222_v53  ;;  %8180 = vmatprep.subr.mxu1 %v2217_v33  ;;  %v4327_v53 = vld [vmem:[%s11482_s5 + $0x40] sm:$0xff] }
 0x1b4   :  { %8212 = vmatprep.subr.mxu0 %v2221_v16  ;;  %8126 = vmatmul.mubr.msk.f32.gmra.mxu1 %vm2132_vm2, %v9820_v47 }
 0x1b5   :  { %8158 = vmatmul.mubr.msk.f32.gmra.mxu0 %vm2132_vm2, %v9948_v57  ;;  %8128 = vmatprep.mubr.msk.f32.mxu1 %vm2132_vm2, %v9832_v46 }
 0x1b6   :  { %8160 = vmatprep.mubr.msk.f32.mxu0 %vm2132_vm2, %v9954_v42  ;;  %8181 = vmatpush3.msra.mxu1 %v2217_v33 }
 0x1b7   :  { %8213 = vmatpush3.msra.mxu0 %v2221_v16  ;;  %8182 = vmatprep.subr.mxu1 %v2216_v14 }
 0x1b8   :  { %8214 = vmatprep.subr.mxu0 %v2220_v20  ;;  %8129 = vmatmul.mubr.msk.f32.gmra.mxu1 %vm2132_vm2, %v9843_v55 }
 0x1b9   :  { %8161 = vmatmul.mubr.msk.f32.gmra.mxu0 %vm2132_vm2, %v9960_v12  ;;  %8131 = vmatprep.mubr.msk.f32.mxu1 %vm2132_vm2, %v9853_v54 }
 0x1ba   :  { %8163 = vmatprep.mubr.msk.f32.mxu0 %vm2132_vm2, %v9966_v56  ;;  %8183 = vmatpush3.msra.mxu1 %v2216_v14 }
 0x1bb   :  { %8215 = vmatpush3.msra.mxu0 %v2220_v20  ;;  %8184 = vmatprep.subr.mxu1 %v2215_v21 }
 0x1bc   :  { %8216 = vmatprep.subr.mxu0 %v2219_v28  ;;  %8132 = vmatmul.mubr.msk.f32.gmra.mxu1 %vm2132_vm2, %v3102_v36 }
 0x1bd   :  { %8164 = vmatmul.mubr.msk.f32.gmra.mxu0 %vm2132_vm2, %v10046_v32  ;;  %8134 = vmatprep.mubr.msk.f32.mxu1 %vm2132_vm2, %v9867_v1  ;;  %v3110_v1 = vld [vmem:[#allocation2 + $0x121] sm:$0xff] }
 0x1be   :  { %8166 = vmatprep.mubr.msk.f32.mxu0 %vm2132_vm2, %v2654_v18  ;;  %8185 = vmatpush3.msra.mxu1 %v2215_v21  ;;  %v4319_v18 = vld [vmem:[%s11482_s5] sm:$0xff] }
 0x1bf   :  { %8217 = vmatpush3.msra.mxu0 %v2219_v28  ;;  %8242 = vmatprep.subr.mxu1 %v2226_v61  ;;  %v10334_v28 = vld [vmem:[%s11482_s5 + $0xb8] sm:$0xff] }
 0x1c0   :  { %8135 = vmatmul.mubr.msk.f32.gmra.mxu1 %vm2132_vm2, %v9877_v24  ;;  %11576 = vst [vmem:[#allocation12_spill] sm:$0xff] %v10334_v28 }
 0x1c1   :  { %8167 = vmatmul.mubr.msk.f32.gmra.mxu0 %vm2132_vm2, %v9980_v62  ;;  %8137 = vmatprep.mubr.msk.f32.mxu1 %vm2132_vm2, %v9886_v49 }
 0x1c2   :  { %8169 = vmatprep.mubr.msk.f32.mxu0 %vm2132_vm2, %v9986_v43 }
 0x1c4   :  { %8138 = vmatmul.mubr.msk.f32.gmra.mxu1 %vm2132_vm2, %v9895_v58 }
 0x1c5   :  { %8170 = vmatmul.mubr.msk.f32.gmra.mxu0 %vm2132_vm2, %v9992_v3  ;;  %8140 = vmatprep.mubr.msk.f32.mxu1 %vm2132_vm2, %v9903_v48 }
 0x1c6   :  { %8172 = vmatprep.mubr.msk.f32.mxu0 %vm2132_vm2, %v9998_v9 }
 0x1c8   :  { %8141 = vmatmul.mubr.msk.f32.gmra.mxu1 %vm2132_vm2, %v9911_v4 }
 0x1c9   :  { %8173 = vmatmul.mubr.msk.f32.gmra.mxu0 %vm2132_vm2, %v10004_v19  ;;  %8143 = vmatprep.mubr.msk.f32.mxu1 %vm2132_vm2, %v9919_v15 }
 0x1ca   :  { %8175 = vmatprep.mubr.msk.f32.mxu0 %vm2132_vm2, %v10010_v11 }
 0x1cc   :  { %8144 = vmatmul.mubr.msk.f32.gmra.mxu1 %vm2132_vm2, %v3110_v1 }
 0x1cd   :  { %8176 = vmatmul.mubr.msk.f32.gmra.mxu0 %vm2132_vm2, %v10078_v25  ;;  %8186 = vmatprep.mubr.msk.f32.mxu1 %vm2132_vm2, %v9793_v26  ;;  %v2223_v26 = vld [vmem:[#allocation4 + $0x100] sm:$0xff] }
 0x1ce   :  { %8218 = vmatprep.mubr.msk.f32.mxu0 %vm2132_vm2, %v9791_v38  ;;  %v2224_v38 = vld [vmem:[#allocation4 + $0x108] sm:$0xff] }
 0x1d0   :  { %8187 = vmatmul.mubr.msk.f32.vlgmr.msra.gmra.mxu1 %vm2132_vm2, %v9811_v2  ;;  %v3778_v2 = vld [vmem:[#allocation2 + $0x91] sm:$0xff] }
 0x1d1   :  { %8219 = vmatmul.mubr.msk.f32.vlgmr.msra.gmra.mxu0 %vm2132_vm2, %v9809_v7  ;;  %8189 = vmatprep.mubr.msk.f32.mxu1 %vm2132_vm2, %v9822_v5  ;;  %v3553_v7 = vld [vmem:[#allocation2 + $0x90] sm:$0xff] }
 0x1d2   :  { %8221 = vmatprep.mubr.msk.f32.mxu0 %vm2132_vm2, %v9820_v47  ;;  %8243 = vmatpush3.msra.mxu1 %v2226_v61  ;;  %v3561_v47 = vld [vmem:[#allocation2 + $0x130] sm:$0xff] }
 0x1d3   :  { %8244 = vmatprep.subr.mxu1 %v2225_v23  ;;  %v3786_v5 = vld [vmem:[#allocation2 + $0x131] sm:$0xff] }
 0x1d4   :  { %8190 = vmatmul.mubr.msk.f32.gmra.mxu1 %vm2132_vm2, %v9834_v51  ;;  %v4011_v51 = vld [vmem:[#allocation2 + $0x132] sm:$0xff] }
 0x1d5   :  { %8222 = vmatmul.mubr.msk.f32.gmra.mxu0 %vm2132_vm2, %v9832_v46  ;;  %8192 = vmatprep.mubr.msk.f32.mxu1 %vm2132_vm2, %v9845_v34  ;;  %v4003_v46 = vld [vmem:[#allocation2 + $0x92] sm:$0xff] }
 0x1d6   :  { %8224 = vmatprep.mubr.msk.f32.mxu0 %vm2132_vm2, %v9843_v55  ;;  %8245 = vmatpush3.msra.mxu1 %v2225_v23  ;;  %v4334_v55 = vld [vmem:[%s11482_s5 + $0x78] sm:$0xff]  ;;  %v4333_v34 = vld [vmem:[%s11482_s5 + $0x70] sm:$0xff] }
 0x1d7   :  { %8246 = vmatprep.subr.mxu1 %v2224_v38  ;;  %8274 = vmatprep.subr.mxu0 %v4334_v55 }
 0x1d8   :  { %8193 = vmatmul.mubr.msk.f32.gmra.mxu1 %vm2132_vm2, %v9855_v10  ;;  %8275 = vmatpush3.msra.mxu0 %v4334_v55  ;;  %v4331_v10 = vld [vmem:[%s11482_s5 + $0x60] sm:$0xff] }
 0x1d9   :  { %8225 = vmatmul.mubr.msk.f32.gmra.mxu0 %vm2132_vm2, %v9853_v54  ;;  %8195 = vmatprep.mubr.msk.f32.mxu1 %vm2132_vm2, %v9968_v17  ;;  %v4332_v54 = vld [vmem:[%s11482_s5 + $0x68] sm:$0xff] }
 0x1da   :  { %8227 = vmatprep.mubr.msk.f32.mxu0 %vm2132_vm2, %v3102_v36  ;;  %8247 = vmatpush3.msra.mxu1 %v2224_v38 }
 0x1db   :  { %8248 = vmatprep.subr.mxu1 %v2223_v26  ;;  %8276 = vmatprep.subr.mxu0 %v4333_v34 }
 0x1dc   :  { %8196 = vmatmul.mubr.msk.f32.gmra.mxu1 %vm2132_vm2, %v3553_v7  ;;  %8277 = vmatpush3.msra.mxu0 %v4333_v34 }
 0x1dd   :  { %8228 = vmatmul.mubr.msk.f32.gmra.mxu0 %vm2132_vm2, %v3778_v2  ;;  %8198 = vmatprep.mubr.msk.f32.mxu1 %vm2132_vm2, %v9879_v63  ;;  %v4326_v63 = vld [vmem:[%s11482_s5 + $0x38] sm:$0xff] }
 0x1de   :  { %8230 = vmatprep.mubr.msk.f32.mxu0 %vm2132_vm2, %v9877_v24  ;;  %8249 = vmatpush3.msra.mxu1 %v2223_v26 }
 0x1df   :  { %8278 = vmatprep.subr.mxu0 %v4332_v54  ;;  %8314 = vmatprep.subr.mxu1 %v4326_v63 }
 0x1e0   :  { %8199 = vmatmul.mubr.msk.f32.gmra.mxu1 %vm2132_vm2, %v9888_v27  ;;  %8279 = vmatpush3.msra.mxu0 %v4332_v54 }
 0x1e1   :  { %8231 = vmatmul.mubr.msk.f32.gmra.mxu0 %vm2132_vm2, %v9886_v49  ;;  %8201 = vmatprep.mubr.msk.f32.mxu1 %vm2132_vm2, %v9897_v37 }
 0x1e2   :  { %8233 = vmatprep.mubr.msk.f32.mxu0 %vm2132_vm2, %v9895_v58  ;;  %8280 = vmatprep.subr.mxu0 %v4331_v10  ;;  %v4325_v58 = vld [vmem:[%s11482_s5 + $0x30] sm:$0xff] }
 0x1e3   :  { %8281 = vmatpush3.msra.mxu0 %v4331_v10 }
 0x1e4   :  { %8202 = vmatmul.mubr.msk.f32.gmra.mxu1 %vm2132_vm2, %v9905_v30  ;;  %v4324_v30 = vld [vmem:[%s11482_s5 + $0x28] sm:$0xff]  ;;  %8282 = vmatprep.subr.mxu0 %v4330_v40 }
 0x1e5   :  { %8234 = vmatmul.mubr.msk.f32.gmra.mxu0 %vm2132_vm2, %v9903_v48  ;;  %8204 = vmatprep.mubr.msk.f32.mxu1 %vm2132_vm2, %v9913_v6 }
 0x1e6   :  { %8236 = vmatprep.mubr.msk.f32.mxu0 %vm2132_vm2, %v9911_v4  ;;  %8283 = vmatpush3.msra.mxu0 %v4330_v40 }
 0x1e7   :  { %8284 = vmatprep.subr.mxu0 %v4329_v41 }
 0x1e8   :  { %8205 = vmatmul.mubr.msk.f32.gmra.mxu1 %vm2132_vm2, %v9921_v39  ;;  %v4323_v39 = vld [vmem:[%s11482_s5 + $0x20] sm:$0xff]  ;;  %8285 = vmatpush3.msra.mxu0 %v4329_v41 }
 0x1e9   :  { %8237 = vmatmul.mubr.msk.f32.gmra.mxu0 %vm2132_vm2, %v9919_v15  ;;  %8207 = vmatprep.mubr.msk.f32.mxu1 %vm2132_vm2, %v10012_v60  ;;  %v11575_v15 = vmov 0.0  }
 0x1ea   :  { %8239 = vmatprep.mubr.msk.f32.mxu0 %vm2132_vm2, %v3110_v1  ;;  %4266 = vst.msk [vmem:[#allocation3 + $0x20] sm:$0xff] %vm4260_vm4, %v11575_v15  ;;  %4261 = vst.msk [vmem:[#allocation3] sm:$0xff] %vm4260_vm4, %v11575_v15  ;;  %8286 = vmatprep.subr.mxu0 %v4328_v13 }
 0x1eb   :  { %4267 = vst.msk [vmem:[#allocation3 + $0x28] sm:$0x3] %vm4262_vm5, %v11575_v15  ;;  %4263 = vst.msk [vmem:[#allocation3 + $0x8] sm:$0x3] %vm4262_vm5, %v11575_v15  ;;  %8287 = vmatpush3.msra.mxu0 %v4328_v13 }
 0x1ec   :  { %8208 = vmatmul.mubr.msk.f32.gmra.mxu1 %vm2132_vm2, %v3561_v47  ;;  %4264 = vst.msk [vmem:[#allocation3 + $0x10] sm:$0xff] %vm4260_vm4, %v11575_v15  ;;  %4268 = vst.msk [vmem:[#allocation3 + $0x30] sm:$0xff] %vm4260_vm4, %v11575_v15  ;;  %8288 = vmatprep.subr.mxu0 %v4327_v53 }
 0x1ed   :  { %8240 = vmatmul.mubr.msk.f32.gmra.mxu0 %vm2132_vm2, %v3786_v5  ;;  %8250 = vmatprep.mubr.msk.f32.mxu1 %vm2132_vm2, %v9936_v8  ;;  %4265 = vst.msk [vmem:[#allocation3 + $0x18] sm:$0x3] %vm4262_vm5, %v11575_v15  ;;  %4269 = vst.msk [vmem:[#allocation3 + $0x38] sm:$0x3] %vm4262_vm5, %v11575_v15 }
 0x1ee   :  { %4270 = vst.msk [vmem:[#allocation3 + $0x40] sm:$0xff] %vm4260_vm4, %v11575_v15  ;;  %4272 = vst.msk [vmem:[#allocation3 + $0x50] sm:$0xff] %vm4260_vm4, %v11575_v15  ;;  %8289 = vmatpush3.msra.mxu0 %v4327_v53 }
 0x1ef   :  { %4271 = vst.msk [vmem:[#allocation3 + $0x48] sm:$0x3] %vm4262_vm5, %v11575_v15  ;;  %4273 = vst.msk [vmem:[#allocation3 + $0x58] sm:$0x3] %vm4262_vm5, %v11575_v15  ;;  %8354 = vmatprep.subr.mxu0 %v10334_v28 }
 0x1f0   :  { %8251 = vmatmul.mubr.msk.f32.vlgmr.msra.gmra.mxu1 %vm2132_vm2, %v9942_v29  ;;  %4274 = vst.msk [vmem:[#allocation3 + $0x60] sm:$0xff] %vm4260_vm4, %v11575_v15  ;;  %4276 = vst.msk [vmem:[#allocation3 + $0x70] sm:$0xff] %vm4260_vm4, %v11575_v15 }
 0x1f1   :  { %8253 = vmatprep.mubr.msk.f32.mxu1 %vm2132_vm2, %v9948_v57  ;;  %8315 = vmatpush3.msra.mxu1 %v4326_v63  ;;  %4275 = vst.msk [vmem:[#allocation3 + $0x68] sm:$0x3] %vm4262_vm5, %v11575_v15  ;;  %4277 = vst.msk [vmem:[#allocation3 + $0x78] sm:$0x3] %vm4262_vm5, %v11575_v15 }
 0x1f2   :  { %8316 = vmatprep.subr.mxu1 %v4325_v58  ;;  %4278 = vst.msk [vmem:[#allocation3 + $0x80] sm:$0xff] %vm4260_vm4, %v11575_v15  ;;  %4280 = vst.msk [vmem:[#allocation3 + $0x90] sm:$0xff] %vm4260_vm4, %v11575_v15 }
 0x1f3   :  { %8317 = vmatpush3.msra.mxu1 %v4325_v58  ;;  %4279 = vst.msk [vmem:[#allocation3 + $0x88] sm:$0x3] %vm4262_vm5, %v11575_v15  ;;  %4281 = vst.msk [vmem:[#allocation3 + $0x98] sm:$0x3] %vm4262_vm5, %v11575_v15 }
 0x1f4   :  { %8254 = vmatmul.mubr.msk.f32.gmra.mxu1 %vm2132_vm2, %v9954_v42  ;;  %8318 = vmatprep.subr.mxu1 %v4324_v30  ;;  %4282 = vst.msk [vmem:[#allocation3 + $0xa0] sm:$0xff] %vm4260_vm4, %v11575_v15  ;;  %4284 = vst.msk [vmem:[#allocation3 + $0xb0] sm:$0xff] %vm4260_vm4, %v11575_v15  ;;  %v4321_v42 = vld [vmem:[%s11482_s5 + $0x10] sm:$0xff] }
 0x1f5   :  { %8256 = vmatprep.mubr.msk.f32.mxu1 %vm2132_vm2, %v9960_v12  ;;  %4283 = vst.msk [vmem:[#allocation3 + $0xa8] sm:$0x3] %vm4262_vm5, %v11575_v15  ;;  %4285 = vst.msk [vmem:[#allocation3 + $0xb8] sm:$0x3] %vm4262_vm5, %v11575_v15  ;;  %8319 = vmatpush3.msra.mxu1 %v4324_v30 }
 0x1f6   :  { %4286 = vst.msk [vmem:[#allocation3 + $0xc0] sm:$0xff] %vm4260_vm4, %v11575_v15  ;;  %4288 = vst.msk [vmem:[#allocation3 + $0xd0] sm:$0xff] %vm4260_vm4, %v11575_v15  ;;  %8320 = vmatprep.subr.mxu1 %v4323_v39 }
 0x1f7   :  { %4287 = vst.msk [vmem:[#allocation3 + $0xc8] sm:$0x3] %vm4262_vm5, %v11575_v15  ;;  %4289 = vst.msk [vmem:[#allocation3 + $0xd8] sm:$0x3] %vm4262_vm5, %v11575_v15  ;;  %8321 = vmatpush3.msra.mxu1 %v4323_v39 }
 0x1f8   :  { %8257 = vmatmul.mubr.msk.f32.gmra.mxu1 %vm2132_vm2, %v9966_v56  ;;  %4290 = vst.msk [vmem:[#allocation3 + $0xe0] sm:$0xff] %vm4260_vm4, %v11575_v15  ;;  %4292 = vst.msk [vmem:[#allocation3 + $0xf0] sm:$0xff] %vm4260_vm4, %v11575_v15  ;;  %8322 = vmatprep.subr.mxu1 %v4322_v45 }
 0x1f9   :  { %8259 = vmatprep.mubr.msk.f32.mxu1 %vm2132_vm2, %v10046_v32  ;;  %4291 = vst.msk [vmem:[#allocation3 + $0xe8] sm:$0x3] %vm4262_vm5, %v11575_v15  ;;  %4293 = vst.msk [vmem:[#allocation3 + $0xf8] sm:$0x3] %vm4262_vm5, %v11575_v15  ;;  %8323 = vmatpush3.msra.mxu1 %v4322_v45 }
 0x1fa   :  { %4294 = vst.msk [vmem:[#allocation3 + $0x100] sm:$0xff] %vm4260_vm4, %v11575_v15  ;;  %4296 = vst.msk [vmem:[#allocation3 + $0x110] sm:$0xff] %vm4260_vm4, %v11575_v15  ;;  %8324 = vmatprep.subr.mxu1 %v4321_v42 }
 0x1fb   :  { %4295 = vst.msk [vmem:[#allocation3 + $0x108] sm:$0x3] %vm4262_vm5, %v11575_v15  ;;  %4297 = vst.msk [vmem:[#allocation3 + $0x118] sm:$0x3] %vm4262_vm5, %v11575_v15  ;;  %8325 = vmatpush3.msra.mxu1 %v4321_v42 }
 0x1fc   :  { %8260 = vmatmul.mubr.msk.f32.gmra.mxu1 %vm2132_vm2, %v4003_v46  ;;  %4298 = vst.msk [vmem:[#allocation3 + $0x120] sm:$0xff] %vm4260_vm4, %v11575_v15  ;;  %4300 = vst.msk [vmem:[#allocation3 + $0x130] sm:$0xff] %vm4260_vm4, %v11575_v15  ;;  %8326 = vmatprep.subr.mxu1 %v4320_v22  ;;  %v10350_v46 = vld [vmem:[%s11482_s5 + $0xf8] sm:$0xff] }
 0x1fd   :  { %8262 = vmatprep.mubr.msk.f32.mxu1 %vm2132_vm2, %v9980_v62  ;;  %4299 = vst.msk [vmem:[#allocation3 + $0x128] sm:$0x3] %vm4262_vm5, %v11575_v15  ;;  %4301 = vst.msk [vmem:[#allocation3 + $0x138] sm:$0x3] %vm4262_vm5, %v11575_v15  ;;  %8327 = vmatpush3.msra.mxu1 %v4320_v22  ;;  %v4407_v62 = vld [vmem:[#allocation3 + $0x1] sm:$0xff] }
 0x1fe   :  { %8328 = vmatprep.subr.mxu1 %v4319_v18  ;;  %8290 = vmatprep.mubr.msk.f32.mxu0 %vm4260_vm4, %v4407_v62  ;;  %11577 = vst [vmem:[#allocation24_spill] sm:$0xff] %v10350_v46 }
 0x1ff   :  { %8329 = vmatpush3.msra.mxu1 %v4319_v18 }
 0x200   :  { %8263 = vmatmul.mubr.msk.f32.gmra.mxu1 %vm2132_vm2, %v9986_v43  ;;  %v4391_v43 = vld [vmem:[#allocation3] sm:$0xff]  ;;  %8394 = vmatprep.subr.mxu1 %v10350_v46 }
 0x201   :  { %8265 = vmatprep.mubr.msk.f32.mxu1 %vm2132_vm2, %v9992_v3 }
 0x204   :  { %8266 = vmatmul.mubr.msk.f32.gmra.mxu1 %vm2132_vm2, %v9998_v9 }
 0x205   :  { %8268 = vmatprep.mubr.msk.f32.mxu1 %vm2132_vm2, %v10004_v19 }
 0x208   :  { %8269 = vmatmul.mubr.msk.f32.gmra.mxu1 %vm2132_vm2, %v10010_v11 }
 0x209   :  { %8271 = vmatprep.mubr.msk.f32.mxu1 %vm2132_vm2, %v10078_v25 }
 0x20c   :  { %8272 = vmatmul.mubr.msk.f32.gmra.mxu1 %vm2132_vm2, %v4011_v51 }
 0x20d   :  { %8330 = vmatprep.mubr.msk.f32.mxu1 %vm4260_vm4, %v4391_v43 }
 0x230   :  { %v7996_v59 = vpop.f32.mrf.mxu1 }
 0x231   :  { %v8028_v24 = vpop.f32.mrf.mxu0 }
 0x232   :  { %v10186_v0 = vadd.f32 %v8028_v24, %v7996_v59  ;;  %v10188_v49 = vpop.f32.mrf.mxu1 }
 0x233   :  { %v10190_v27 = vpop.f32.mrf.mxu0 }
 0x234   :  { %v7999_v37 = vpop.f32.mrf.mxu1 }
 0x235   :  { %v8031_v48 = vpop.f32.mrf.mxu0 }
 0x236   :  { %v10198_v4 = vadd.f32 %v8031_v48, %v7999_v37  ;;  %v10200_v6 = vpop.f32.mrf.mxu1 }
 0x237   :  { %v10202_v52 = vpop.f32.mrf.mxu0 }
 0x238   :  { %v8002_v8 = vpop.f32.mrf.mxu1 }
 0x239   :  { %v8034_v44 = vpop.f32.mrf.mxu0 }
 0x23a   :  { %v10293_v29 = vadd.f32 %v8034_v44, %v8002_v8  ;;  %v10295_v57 = vpop.f32.mrf.mxu1 }
 0x23b   :  { %v10297_v50 = vpop.f32.mrf.mxu0 }
 0x23c   :  { %v8005_v12 = vpop.f32.mrf.mxu1 }
 0x23d   :  { %v8037_v31 = vpop.f32.mrf.mxu0 }
 0x23e   :  { %v2602_v56 = vadd.f32 %v8037_v31, %v8005_v12  ;;  %v10311_v17 = vpop.f32.mrf.mxu1 }
 0x23f   :  { %v10313_v35 = vpop.f32.mrf.mxu0 }
 0x240   :  { %v8008_v3 = vpop.f32.mrf.mxu1 }
 0x241   :  { %v8040_v9 = vpop.f32.mrf.mxu0 }
 0x242   :  { %v2612_v19 = vadd.f32 %v8040_v9, %v8008_v3  ;;  %v10323_v11 = vpop.f32.mrf.mxu1 }
 0x243   :  { %v10325_v60 = vpop.f32.mrf.mxu0 }
 0x244   :  { %v8011_v33 = vpop.f32.mrf.mxu1 }
 0x245   :  { %v8043_v16 = vpop.f32.mrf.mxu0 }
 0x246   :  { %v2622_v14 = vadd.f32 %v8043_v16, %v8011_v33  ;;  %v10327_v20 = vpop.f32.mrf.mxu1 }
 0x247   :  { %v10329_v21 = vpop.f32.mrf.mxu0 }
 0x248   :  { %v8014_v36 = vpop.f32.mrf.mxu1 }
 0x249   :  { %v8046_v32 = vpop.f32.mrf.mxu0 }
 0x24a   :  { %v2632_v61 = vadd.f32 %v8046_v32, %v8014_v36  ;;  %v10337_v1 = vpop.f32.mrf.mxu1 }
 0x24b   :  { %v10339_v25 = vpop.f32.mrf.mxu0 }
 0x24c   :  { %v8017_v23 = vpop.f32.mrf.mxu1 }
 0x24d   :  { %v8049_v38 = vpop.f32.mrf.mxu0 }
 0x24e   :  { %v2642_v26 = vadd.f32 %v8049_v38, %v8017_v23  ;;  %v10341_v7 = vpop.f32.mrf.mxu1 }
 0x24f   :  { %v10343_v2 = vpop.f32.mrf.mxu0 }
 0x250   :  { %v8060_v47 = vpop.f32.mrf.mxu1 }
 0x251   :  { %v10345_v5 = vpop.f32.mrf.mxu0  ;;  %v10353_v51 = vadd.f32 %v8060_v47, %v10186_v0 }
 0x252   :  { %v10356_v55 = vpop.f32.mrf.mxu1 }
 0x253   :  { %v10358_v34 = vpop.f32.mrf.mxu0 }
 0x254   :  { %v8063_v54 = vpop.f32.mrf.mxu1 }
 0x255   :  { %v10360_v10 = vpop.f32.mrf.mxu0  ;;  %v10363_v59 = vadd.f32 %v8063_v54, %v10198_v4 }
 0x256   :  { %v10365_v24 = vpop.f32.mrf.mxu1 }
 0x257   :  { %v10367_v63 = vpop.f32.mrf.mxu0 }
 0x258   :  { %v8066_v58 = vpop.f32.mrf.mxu1 }
 0x259   :  { %v10369_v37 = vpop.f32.mrf.mxu0  ;;  %v10372_v0 = vadd.f32 %v8066_v58, %v10293_v29 }
 0x25a   :  { %v10374_v48 = vpop.f32.mrf.mxu1 }
 0x25b   :  { %v10376_v30 = vpop.f32.mrf.mxu0 }
 0x25c   :  { %v8069_v15 = vpop.f32.mrf.mxu1 }
 0x25d   :  { %v10378_v39 = vpop.f32.mrf.mxu0  ;;  %v10380_v40 = vadd.f32 %v8069_v15, %v2602_v56 }
 0x25e   :  { %v10382_v4 = vpop.f32.mrf.mxu1 }
 0x25f   :  { %v10384_v8 = vpop.f32.mrf.mxu0 }
 0x260   :  { %v8072_v44 = vpop.f32.mrf.mxu1 }
 0x261   :  { %v10386_v45 = vpop.f32.mrf.mxu0  ;;  %v10388_v41 = vadd.f32 %v8072_v44, %v2612_v19 }
 0x262   :  { %v10390_v29 = vpop.f32.mrf.mxu1 }
 0x263   :  { %v10392_v42 = vpop.f32.mrf.mxu0 }
 0x264   :  { %11578 = vst [vmem:[#allocation26_spill] sm:$0xff] %v10392_v42  ;;  %v8075_v12 = vpop.f32.mrf.mxu1 }
 0x265   :  { %v10394_v31 = vpop.f32.mrf.mxu0  ;;  %v10396_v13 = vadd.f32 %v8075_v12, %v2622_v14 }
 0x266   :  { %11579 = vst [vmem:[#allocation45_spill] sm:$0xff] %v10394_v31  ;;  %v10398_v22 = vpop.f32.mrf.mxu1 }
 0x267   :  { %11580 = vst [vmem:[#allocation14_spill] sm:$0xff] %v10396_v13  ;;  %v10400_v56 = vpop.f32.mrf.mxu0 }
 0x268   :  { %11581 = vst [vmem:[#allocation13_spill] sm:$0xff] %v10400_v56  ;;  %v8078_v53 = vpop.f32.mrf.mxu1 }
 0x269   :  { %v10402_v18 = vpop.f32.mrf.mxu0  ;;  %v10404_v62 = vadd.f32 %v8078_v53, %v2632_v61 }
 0x26a   :  { %11582 = vst [vmem:[#allocation44_spill] sm:$0xff] %v10402_v18  ;;  %v10406_v43 = vpop.f32.mrf.mxu1 }
 0x26b   :  { %11583 = vst [vmem:[#allocation15_spill] sm:$0xff] %v10404_v62  ;;  %11584 = vst [vmem:[#allocation25_spill] sm:$0xff] %v10406_v43  ;;  %v10408_v3 = vpop.f32.mrf.mxu0 }
 0x26c   :  { %11585 = vst [vmem:[#allocation28_spill] sm:$0xff] %v10408_v3  ;;  %v8081_v9 = vpop.f32.mrf.mxu1 }
 0x26d   :  { %v10410_v19 = vpop.f32.mrf.mxu0  ;;  %v10412_v33 = vadd.f32 %v8081_v9, %v2642_v26 }
 0x26e   :  { %11586 = vst [vmem:[#allocation46_spill] sm:$0xff] %v10410_v19  ;;  %v10414_v16 = vpop.f32.mrf.mxu1 }
 0x26f   :  { %11587 = vst [vmem:[#allocation18_spill] sm:$0xff] %v10412_v33  ;;  %11588 = vst [vmem:[#allocation27_spill] sm:$0xff] %v10414_v16  ;;  %v10416_v14 = vpop.f32.mrf.mxu0 }
 0x270   :  { %11589 = vst [vmem:[#allocation30_spill] sm:$0xff] %v10416_v14  ;;  %v8124_v36 = vpop.f32.mrf.mxu1 }
 0x271   :  { %v10418_v32 = vpop.f32.mrf.mxu0 }
 0x272   :  { %v3225_v23 = vpop.f32.mrf.mxu1 }
 0x273   :  { %v10420_v38 = vpop.f32.mrf.mxu0 }
 0x274   :  { %v8127_v61 = vpop.f32.mrf.mxu1 }
 0x275   :  { %v10422_v47 = vpop.f32.mrf.mxu0 }
 0x276   :  { %v10424_v54 = vpop.f32.mrf.mxu1 }
 0x277   :  { %v10426_v58 = vpop.f32.mrf.mxu0 }
 0x278   :  { %v10428_v15 = vpop.f32.mrf.mxu1 }
 0x279   :  { %v10430_v26 = vpop.f32.mrf.mxu0 }
 0x27a   :  { %v10432_v44 = vpop.f32.mrf.mxu1 }
 0x27b   :  { %v10434_v12 = vpop.f32.mrf.mxu0 }
 0x27c   :  { %11590 = vst [vmem:[#allocation48_spill] sm:$0xff] %v10434_v12  ;;  %v10436_v53 = vpop.f32.mrf.mxu1 }
 0x27d   :  { %v10438_v9 = vpop.f32.mrf.mxu0 }
 0x27e   :  { %11591 = vst [vmem:[#allocation47_spill] sm:$0xff] %v10438_v9  ;;  %v10440_v46 = vpop.f32.mrf.mxu1 }
 0x27f   :  { %11592 = vst [vmem:[#allocation17_spill] sm:$0xff] %v10440_v46  ;;  %v10442_v28 = vpop.f32.mrf.mxu0 }
 0x280   :  { %11593 = vst [vmem:[#allocation16_spill] sm:$0xff] %v10442_v28  ;;  %v10444_v14 = vpop.f32.mrf.mxu1 }
 0x281   :  { %11594 = vst [vmem:[#allocation29_spill] sm:$0xff] %v10444_v14  ;;  %v10446_v19 = vpop.f32.mrf.mxu0 }
 0x282   :  { %11595 = vst [vmem:[#allocation32_spill] sm:$0xff] %v10446_v19  ;;  %v10448_v33 = vpop.f32.mrf.mxu1 }
 0x283   :  { %11596 = vst [vmem:[#allocation49_spill] sm:$0xff] %v10448_v33  ;;  %v10450_v16 = vpop.f32.mrf.mxu0 }
 0x284   :  { %11597 = vst [vmem:[#allocation19_spill] sm:$0xff] %v10450_v16  ;;  %v10452_v3 = vpop.f32.mrf.mxu1 }
 0x285   :  { %11598 = vst [vmem:[#allocation31_spill] sm:$0xff] %v10452_v3  ;;  %v10454_v18 = vpop.f32.mrf.mxu0 }
 0x286   :  { %11599 = vst [vmem:[#allocation34_spill] sm:$0xff] %v10454_v18  ;;  %v10456_v62 = vpop.f32.mrf.mxu1 }
 0x287   :  { %11600 = vst [vmem:[#allocation50_spill] sm:$0xff] %v10456_v62  ;;  %v10458_v43 = vpop.f32.mrf.mxu0 }
 0x288   :  { %11601 = vst [vmem:[#allocation22_spill] sm:$0xff] %v10458_v43  ;;  %v10460_v9 = vpop.f32.mrf.mxu1 }
 0x289   :  { %11602 = vst [vmem:[#allocation33_spill] sm:$0xff] %v10460_v9  ;;  %v10462_v56 = vpop.f32.mrf.mxu0 }
 0x28a   :  { %11603 = vst [vmem:[#allocation36_spill] sm:$0xff] %v10462_v56  ;;  %v10464_v28 = vpop.f32.mrf.mxu1 }
 0x28b   :  { %11604 = vst [vmem:[#allocation21_spill] sm:$0xff] %v10464_v28  ;;  %v10466_v14 = vpop.f32.mrf.mxu0 }
 0x28c   :  { %11605 = vst [vmem:[#allocation20_spill] sm:$0xff] %v10466_v14  ;;  %v10468_v19 = vpop.f32.mrf.mxu1 }
 0x28d   :  { %11606 = vst [vmem:[#allocation35_spill] sm:$0xff] %v10468_v19  ;;  %v10470_v33 = vpop.f32.mrf.mxu0 }
 0x28e   :  { %11607 = vst [vmem:[#allocation38_spill] sm:$0xff] %v10470_v33  ;;  %v10472_v16 = vpop.f32.mrf.mxu1 }
 0x28f   :  { %11608 = vst [vmem:[#allocation23_spill] sm:$0xff] %v10472_v16  ;;  %v10474_v3 = vpop.f32.mrf.mxu0 }
 0x290   :  { %11609 = vst [vmem:[#allocation37_spill] sm:$0xff] %v10474_v3  ;;  %v8188_v18 = vpop.f32.mrf.mxu1  ;;  %v2567_v3 = vadd.f32 %v10190_v27, %v10188_v49 }
 0x291   :  { %v8220_v62 = vpop.f32.mrf.mxu0 }
 0x292   :  { %v3676_v31 = vpop.f32.mrf.mxu1  ;;  %v2854_v42 = vadd.f32 %v10356_v55, %v2567_v3  ;;  %v2587_v55 = vadd.f32 %v10297_v50, %v10295_v57  ;;  %v2597_v57 = vadd.f32 %v10313_v35, %v10311_v17  ;;  %v3084_v50 = vadd.f32 %v10369_v37, %v10372_v0 }
 0x293   :  { %v10476_v43 = vpop.f32.mrf.mxu0  ;;  %v2617_v37 = vadd.f32 %v10329_v21, %v10327_v20 }
 0x294   :  { %v8191_v9 = vpop.f32.mrf.mxu1  ;;  %v3079_v49 = vadd.f32 %v10358_v34, %v2854_v42 }
 0x295   :  { %v10478_v56 = vpop.f32.mrf.mxu0 }
 0x296   :  { %v3686_v13 = vpop.f32.mrf.mxu1  ;;  %11610 = vst [vmem:[#allocation40_spill] sm:$0xff] %v10478_v56 }
 0x297   :  { %v10484_v19 = vpop.f32.mrf.mxu0 }
 0x298   :  { %v10480_v28 = vpop.f32.mrf.mxu1  ;;  %11612 = vst [vmem:[#allocation42_spill] sm:$0xff] %v10484_v19  ;;  %v3080_v19 = vadd.f32 %v10345_v5, %v10353_v51  ;;  %v2858_v5 = vadd.f32 %v10374_v48, %v2587_v55 }
 0x299   :  { %v10492_v46 = vpop.f32.mrf.mxu0 }
 0x29a   :  { %v10482_v14 = vpop.f32.mrf.mxu1  ;;  %11615 = vst [vmem:[#allocation41_spill] sm:$0xff] %v10492_v46  ;;  %v3305_v46 = vadd.f32 %v8124_v36, %v3080_v19  ;;  %v3309_v36 = vadd.f32 %v10428_v15, %v3084_v50  ;;  %v11619_v15 = vld [vmem:[#allocation17_spill] sm:$0xff] }
 0x29b   :  { %11611 = vst [vmem:[#allocation39_spill] sm:$0xff] %v10482_v14  ;;  %v2577_v14 = vadd.f32 %v10202_v52, %v10200_v6  ;;  %v3082_v6 = vadd.f32 %v10360_v10, %v10363_v59  ;;  %v3304_v52 = vadd.f32 %v3225_v23, %v3079_v49  ;;  %v10552_v23 = vadd.f32 %v10343_v2, %v10341_v7  ;;  %v10564_v7 = vld [vmem:[%s11481_s4] ss:$0 sm:$0xff]  ;;  %v11621_v49 = vld [vmem:[#allocation45_spill] sm:$0xff] }
 0x29c   :  { %v10486_v33 = vpop.f32.mrf.mxu1  ;;  %v3088_v2 = vadd.f32 %v10386_v45, %v10388_v41 }
 0x29d   :  { %11613 = vst [vmem:[#allocation10_spill] sm:$0xff] %v10486_v33  ;;  %v10503_v33 = vpop.f32.mrf.mxu0  ;;  %v2856_v27 = vadd.f32 %v10365_v24, %v2577_v14  ;;  %v3530_v24 = vadd.f32 %v10418_v32, %v3305_v46  ;;  %v3307_v42 = vadd.f32 %v8127_v61, %v3082_v6  ;;  %v3529_v10 = vadd.f32 %v10420_v38, %v3304_v52  ;;  %v11622_v55 = vld [vmem:[#allocation40_spill] sm:$0xff]  ;;  %v11624_v52 = vld [vmem:[#allocation47_spill] sm:$0xff] }
 0x29e   :  { %v10488_v16 = vpop.f32.mrf.mxu1  ;;  %v2607_v14 = vadd.f32 %v10325_v60, %v10323_v11  ;;  %v2860_v46 = vadd.f32 %v10382_v4, %v2597_v57  ;;  %v3086_v11 = vadd.f32 %v10378_v39, %v10380_v40 }
 0x29f   :  { %11614 = vst [vmem:[#allocation11_spill] sm:$0xff] %v10488_v16  ;;  %v10516_v51 = vpop.f32.mrf.mxu0  ;;  %v3081_v34 = vadd.f32 %v10367_v63, %v2856_v27  ;;  %v3756_v48 = vadd.f32 %v8188_v18, %v3530_v24  ;;  %v3083_v63 = vadd.f32 %v10376_v30, %v2858_v5  ;;  %v3532_v0 = vadd.f32 %v10422_v47, %v3307_v42 }
 0x2a0   :  { %v10494_v12 = vpop.f32.mrf.mxu1  ;;  %v3755_v32 = vadd.f32 %v3676_v31, %v3529_v10  ;;  %v2627_v18 = vadd.f32 %v10339_v25, %v10337_v1  ;;  %v2862_v60 = vadd.f32 %v10390_v29, %v2607_v14  ;;  %v3085_v38 = vadd.f32 %v10384_v8, %v2860_v46  ;;  %v11628_v46 = vld [vmem:[#allocation25_spill] sm:$0xff] }
 0x2a1   :  { %v3306_v59 = vadd.f32 %v10424_v54, %v3081_v34  ;;  %v10535_v17 = vpop.f32.mrf.mxu0  ;;  %v3308_v30 = vadd.f32 %v10432_v44, %v3083_v63  ;;  %v3981_v21 = vadd.f32 %v8220_v62, %v3756_v48  ;;  %v3758_v31 = vadd.f32 %v8191_v9, %v3532_v0  ;;  %v11618_v54 = vld [vmem:[#allocation48_spill] sm:$0xff]  ;;  %v11620_v9 = vld [vmem:[#allocation14_spill] sm:$0xff]  ;;  %v11625_v34 = vld [vmem:[#allocation29_spill] sm:$0xff] }
 0x2a2   :  { %v10497_v56 = vpop.f32.mrf.mxu1  ;;  %v2864_v1 = vadd.f32 %v10398_v22, %v2617_v37  ;;  %v3534_v25 = vadd.f32 %v10430_v26, %v3309_v36  ;;  %v3311_v39 = vadd.f32 %v10436_v53, %v3086_v11  ;;  %v3980_v62 = vadd.f32 %v10476_v43, %v3755_v32  ;;  %v11617_v22 = vld [vmem:[#allocation26_spill] sm:$0xff]  ;;  %v11623_v43 = vld [vmem:[#allocation13_spill] sm:$0xff]  ;;  %v11626_v42 = vld [vmem:[#allocation39_spill] sm:$0xff] }
 0x2a3   :  { %11616 = vst [vmem:[#allocation43_spill] sm:$0xff] %v10497_v56  ;;  %v3531_v20 = vadd.f32 %v10426_v58, %v3306_v59  ;;  %v10559_v40 = vpop.f32.mrf.mxu0  ;;  %v3087_v47 = vadd.f32 %v11617_v22, %v2862_v60  ;;  %v3533_v58 = vadd.f32 %v11618_v54, %v3308_v30  ;;  %v3310_v26 = vadd.f32 %v11619_v15, %v3085_v38  ;;  %v11629_v37 = vld [vmem:[#allocation16_spill] sm:$0xff]  ;;  %v11630_v32 = vld [vmem:[#allocation49_spill] sm:$0xff] }
 0x2a4   :  { %v10505_v16 = vpop.f32.mrf.mxu1  ;;  %v3760_v44 = vadd.f32 %v10480_v28, %v3534_v25  ;;  %v3090_v27 = vadd.f32 %v11621_v49, %v11620_v9  ;;  %v3983_v6 = vadd.f32 %v11622_v55, %v3758_v31  ;;  %v3536_v5 = vadd.f32 %v11624_v52, %v3311_v39  ;;  %v11627_v28 = vld [vmem:[#allocation42_spill] sm:$0xff]  ;;  %v11631_v60 = vld [vmem:[#allocation41_spill] sm:$0xff]  ;;  %v11633_v39 = vld [vmem:[#allocation15_spill] sm:$0xff] }
 0x2a5   :  { %v3757_v8 = vadd.f32 %v3686_v13, %v3531_v20  ;;  %v3089_v13 = vadd.f32 %v11623_v43, %v2864_v1  ;;  %v3313_v24 = vadd.f32 %v11625_v34, %v3088_v2  ;;  %v3759_v57 = vadd.f32 %v11626_v42, %v3533_v58  ;;  %v3941_v50 = vpop.f32.mrf.mxu0  ;;  %v11638_v9 = vld [vmem:[#allocation28_spill] sm:$0xff]  ;;  %v11639_v55 = vld [vmem:[#allocation19_spill] sm:$0xff] }
 0x2a6   :  { %v10511_v3 = vpop.f32.mrf.mxu1  ;;  %v2866_v36 = vadd.f32 %v11628_v46, %v2627_v18  ;;  %v3535_v0 = vadd.f32 %v11629_v37, %v3310_v26  ;;  %v3312_v11 = vadd.f32 %v11630_v32, %v3087_v47  ;;  %v3985_v30 = vadd.f32 %v11631_v60, %v3760_v44  ;;  %v11637_v58 = vld [vmem:[#allocation11_spill] sm:$0xff]  ;;  %v11645_v37 = vld [vmem:[#allocation18_spill] sm:$0xff]  ;;  %v11648_v60 = vld [vmem:[#allocation21_spill] sm:$0xff] }
 0x2a7   :  { %v3982_v59 = vadd.f32 %v11627_v28, %v3757_v8  ;;  %v11636_v8 = vld [vmem:[#allocation31_spill] sm:$0xff]  ;;  %v3984_v22 = vadd.f32 %v10503_v33, %v3759_v57  ;;  %v10595_v47 = vpop.f32.mrf.mxu0  ;;  %v11642_v57 = vld [vmem:[#allocation34_spill] sm:$0xff]  ;;  %v11643_v28 = vld [vmem:[#allocation33_spill] sm:$0xff] }
 0x2a8   :  { %v10518_v56 = vpop.f32.mrf.mxu1  ;;  %v3761_v15 = vadd.f32 %v11637_v58, %v3535_v0  ;;  %v3091_v49 = vadd.f32 %v11638_v9, %v2866_v36  ;;  %v11646_v0 = vld [vmem:[#allocation46_spill] sm:$0xff]  ;;  %v11652_v9 = vld [vmem:[#allocation20_spill] sm:$0xff] }
 0x2a9   :  { %v3094_v32 = vadd.f32 %v11646_v0, %v11645_v37 }
 0x2aa   :  { %v10526_v19 = vpop.f32.mrf.mxu1 }
 0x2ac   :  { %v10537_v35 = vpop.f32.mrf.mxu1 }
 0x2ae   :  { %v10548_v4 = vpop.f32.mrf.mxu1 }
 0x2b0   :  { %v8252_v29 = vpop.f32.mrf.mxu1 }
 0x2b1   :  { %v4206_v61 = vadd.f32 %v8252_v29, %v3981_v21  ;;  %v11632_v21 = vld [vmem:[#allocation10_spill] sm:$0xff]  ;;  %v11634_v29 = vld [vmem:[#allocation44_spill] sm:$0xff] }
 0x2b2   :  { %v4126_v53 = vpop.f32.mrf.mxu1  ;;  %v3762_v31 = vadd.f32 %v11632_v21, %v3536_v5  ;;  %v3092_v2 = vadd.f32 %v11634_v29, %v11633_v39  ;;  %v11650_v29 = vld [vmem:[#allocation36_spill] sm:$0xff] }
 0x2b3   :  { %v4229_v45 = vadd.f32 %v10564_v7, %v4206_v61  ;;  %v4205_v41 = vadd.f32 %v4126_v53, %v3980_v62  ;;  %v11635_v62 = vld [vmem:[#allocation32_spill] sm:$0xff]  ;;  %v3315_v61 = vadd.f32 %v11636_v8, %v3090_v27 }
 0x2b4   :  { %v8255_v10 = vpop.f32.mrf.mxu1  ;;  %v3538_v18 = vadd.f32 %v11635_v62, %v3313_v24  ;;  %v3987_v43 = vadd.f32 %v10516_v51, %v3762_v31  ;;  %v11641_v24 = vld [vmem:[#allocation27_spill] sm:$0xff] }
 0x2b5   :  { %v4245_v48 = vmax.f32 %v4229_v45, 0.0  ;;  %v4228_v14 = vadd.f32 %v10564_v7, %v4205_v41  ;;  %v4208_v63 = vadd.f32 %v8255_v10, %v3983_v6  ;;  %v3537_v6 = vadd.f32 %v11639_v55, %v3312_v11  ;;  %v11640_v45 = vld [vmem:[#allocation50_spill] sm:$0xff]  ;;  %v11651_v62 = vld [vmem:[#allocation35_spill] sm:$0xff] }
 0x2b6   :  { %v4136_v20 = vpop.f32.mrf.mxu1  ;;  %v3314_v41 = vadd.f32 %v11640_v45, %v3089_v13  ;;  %v3764_v27 = vadd.f32 %v10494_v12, %v3538_v18  ;;  %v2868_v42 = vadd.f32 %v11641_v24, %v10552_v23  ;;  %v3540_v10 = vadd.f32 %v11642_v57, %v3315_v61  ;;  %v11647_v23 = vld [vmem:[#allocation22_spill] sm:$0xff]  ;;  %v11653_v55 = vld [vmem:[#allocation23_spill] sm:$0xff] }
 0x2b7   :  { %4304 = vst.msk [vmem:[#allocation3 + $0x21] sm:$0xff] %vm4260_vm4, %v4245_v48  ;;  %v4244_v38 = vmax.f32 %v4228_v14, 0.0  ;;  %v4231_v1 = vadd.f32 %v10564_v7, %v4208_v63  ;;  %v4207_v25 = vadd.f32 %v4136_v20, %v3982_v59  ;;  %v3317_v59 = vadd.f32 %v11643_v28, %v3092_v2  ;;  %v11644_v48 = vld [vmem:[#allocation43_spill] sm:$0xff]  ;;  %v3951_v14 = vpop.f32.mrf.mxu0 }
 0x2b8   :  { %v8258_v54 = vpop.f32.mrf.mxu1  ;;  %v3763_v13 = vadd.f32 %v11644_v48, %v3537_v6  ;;  %v3986_v63 = vadd.f32 %v10535_v17, %v3761_v15  ;;  %v3539_v11 = vadd.f32 %v11647_v23, %v3314_v41  ;;  %v3989_v20 = vadd.f32 %v10559_v40, %v3764_v27 }
 0x2b9   :  { %4303 = vst.msk [vmem:[#allocation3 + $0x11] sm:$0xff] %vm4260_vm4, %v4244_v38  ;;  %v4247_v26 = vmax.f32 %v4231_v1, 0.0  ;;  %v4230_v44 = vadd.f32 %v10564_v7, %v4207_v25  ;;  %v4210_v53 = vadd.f32 %v8258_v54, %v3985_v30  ;;  %v3316_v30 = vadd.f32 %v11648_v60, %v3091_v49  ;;  %v11649_v25 = vld [vmem:[#allocation30_spill] sm:$0xff]  ;;  %v8238_v61 = vpop.f32.mrf.mxu0 }
 0x2ba   :  { %v4146_v33 = vpop.f32.mrf.mxu1  ;;  %v3766_v31 = vadd.f32 %v10505_v16, %v3540_v10  ;;  %v3093_v39 = vadd.f32 %v11649_v25, %v2868_v42  ;;  %v3542_v2 = vadd.f32 %v11650_v29, %v3317_v59  ;;  %v3319_v18 = vadd.f32 %v11651_v62, %v3094_v32  ;;  %v4341_v16 = vld [vmem:[%s11482_s5 + $0xb0] sm:$0xff] }
 0x2bb   :  { %4306 = vst.msk [vmem:[#allocation3 + $0x41] sm:$0xff] %vm4260_vm4, %v4247_v26  ;;  %v4246_v52 = vmax.f32 %v4230_v44, 0.0  ;;  %v4233_v5 = vadd.f32 %v10564_v7, %v4210_v53  ;;  %v4209_v34 = vadd.f32 %v4146_v33, %v3984_v22  ;;  %v3988_v8 = vadd.f32 %v3941_v50, %v3763_v13  ;;  %v3961_v57 = vpop.f32.mrf.mxu0 }
 0x2bc   :  { %v8261_v12 = vpop.f32.mrf.mxu1  ;;  %v3765_v58 = vadd.f32 %v10511_v3, %v3539_v11  ;;  %v4349_v3 = vld [vmem:[%s11482_s5 + $0xf0] sm:$0xff]  ;;  %v3541_v49 = vadd.f32 %v11652_v9, %v3316_v30  ;;  %v3318_v6 = vadd.f32 %v11653_v55, %v3093_v39  ;;  %v3768_v45 = vadd.f32 %v10518_v56, %v3542_v2  ;;  %v11656_v56 = vld [vmem:[#allocation38_spill] sm:$0xff]  ;;  %v4338_v9 = vld [vmem:[%s11482_s5 + $0x98] sm:$0xff] }
 0x2bd   :  { %4305 = vst.msk [vmem:[#allocation3 + $0x31] sm:$0xff] %vm4260_vm4, %v4246_v52  ;;  %v4249_v51 = vmax.f32 %v4233_v5, 0.0  ;;  %v4232_v46 = vadd.f32 %v10564_v7, %v4209_v34  ;;  %v4212_v36 = vadd.f32 %v8261_v12, %v3987_v43  ;;  %v3991_v27 = vadd.f32 %v10595_v47, %v3766_v31  ;;  %v11654_v5 = vld [vmem:[#allocation12_spill] sm:$0xff]  ;;  %v4340_v47 = vld [vmem:[%s11482_s5 + $0xa8] sm:$0xff]  ;;  %v8241_v0 = vpop.f32.mrf.mxu0 }
 0x2be   :  { %v4156_v21 = vpop.f32.mrf.mxu1  ;;  %v10640_v50 = vld [vmem:[#allocation3 + $0x21] sm:$0xff]  ;;  %v11655_v34 = vld [vmem:[#allocation24_spill] sm:$0xff]  ;;  %v3544_v24 = vadd.f32 %v11656_v56, %v3319_v18  ;;  %v3767_v42 = vadd.f32 %v10526_v19, %v3541_v49  ;;  %v3990_v48 = vadd.f32 %v3951_v14, %v3765_v58  ;;  %v3993_v37 = vadd.f32 %v8238_v61, %v3768_v45  ;;  %v4346_v56 = vld [vmem:[%s11482_s5 + $0xd8] sm:$0xff] }
 0x2bf   :  { %4308 = vst.msk [vmem:[#allocation3 + $0x61] sm:$0xff] %vm4260_vm4, %v4249_v51  ;;  %v4248_v17 = vmax.f32 %v4232_v46, 0.0  ;;  %v4235_v38 = vadd.f32 %v10564_v7, %v4212_v36  ;;  %v4211_v1 = vadd.f32 %v4156_v21, %v3986_v63  ;;  %v10642_v53 = vld [vmem:[#allocation3 + $0x20] sm:$0xff]  ;;  %v4348_v14 = vld [vmem:[%s11482_s5 + $0xe8] sm:$0xff]  ;;  %v11657_v46 = vld [vmem:[#allocation37_spill] sm:$0xff]  ;;  %v3971_v62 = vpop.f32.mrf.mxu0 }
 0x2c0   :  { %v8264_v22 = vpop.f32.mrf.mxu1  ;;  %v10626_v54 = vld [vmem:[#allocation3 + $0x11] sm:$0xff]  ;;  %v3543_v36 = vadd.f32 %v11657_v46, %v3318_v6  ;;  %v3770_v23 = vadd.f32 %v10537_v35, %v3544_v24  ;;  %v4415_v58 = vld [vmem:[#allocation3 + $0xa1] sm:$0xff] }
 0x2c1   :  { %v10628_v40 = vld [vmem:[#allocation3 + $0x10] sm:$0xff]  ;;  %4307 = vst.msk [vmem:[#allocation3 + $0x51] sm:$0xff] %vm4260_vm4, %v4248_v17  ;;  %v4251_v15 = vmax.f32 %v4235_v38, 0.0  ;;  %v4234_v26 = vadd.f32 %v10564_v7, %v4211_v1  ;;  %v4214_v44 = vadd.f32 %v8264_v22, %v3989_v20  ;;  %8291 = vmatmul.mubr.msk.f32.vlgmr.msra.gmra.mxu0 %vm4260_vm4, %v10626_v54  ;;  %v3992_v20 = vadd.f32 %v3961_v57, %v3767_v42  ;;  %v4339_v38 = vld [vmem:[%s11482_s5 + $0xa0] sm:$0xff]  ;;  %v4344_v46 = vld [vmem:[%s11482_s5 + $0xc8] sm:$0xff] }
 0x2c2   :  { %8331 = vmatmul.mubr.msk.f32.vlgmr.msra.gmra.mxu1 %vm4260_vm4, %v10628_v40  ;;  %v4166_v41 = vpop.f32.mrf.mxu1  ;;  %8293 = vmatprep.mubr.msk.f32.mxu0 %vm4260_vm4, %v10640_v50  ;;  %v10674_v19 = vld [vmem:[#allocation3 + $0x41] sm:$0xff]  ;;  %v3769_v35 = vadd.f32 %v10548_v4, %v3543_v36 }
 0x2c3   :  { %8333 = vmatprep.mubr.msk.f32.mxu1 %vm4260_vm4, %v10642_v53  ;;  %4310 = vst.msk [vmem:[#allocation3 + $0x81] sm:$0xff] %vm4260_vm4, %v4251_v15  ;;  %v4250_v33 = vmax.f32 %v4234_v26, 0.0  ;;  %v4237_v43 = vadd.f32 %v10564_v7, %v4214_v44  ;;  %v4213_v52 = vadd.f32 %v4166_v41, %v3988_v8  ;;  %8355 = vmatpush3.msra.mxu0 %v11654_v5  ;;  %v10676_v51 = vld [vmem:[#allocation3 + $0x40] sm:$0xff] }
 0x2c4   :  { %8395 = vmatpush3.msra.mxu1 %v11655_v34  ;;  %v8267_v10 = vpop.f32.mrf.mxu1  ;;  %v10661_v28 = vld [vmem:[#allocation3 + $0x31] sm:$0xff]  ;;  %8356 = vmatprep.subr.mxu0 %v4341_v16  ;;  %v4347_v4 = vld [vmem:[%s11482_s5 + $0xe0] sm:$0xff]  ;;  %v3995_v8 = vadd.f32 %v8241_v0, %v3770_v23  ;;  %v3994_v49 = vadd.f32 %v3971_v62, %v3769_v35  ;;  %v4356_v62 = vld [vmem:[%s11482_s5 + $0x128] sm:$0xff] }
 0x2c5   :  { %v10663_v59 = vld [vmem:[#allocation3 + $0x30] sm:$0xff]  ;;  %8396 = vmatprep.subr.mxu1 %v4349_v3  ;;  %4309 = vst.msk [vmem:[#allocation3 + $0x71] sm:$0xff] %vm4260_vm4, %v4250_v33  ;;  %v4253_v13 = vmax.f32 %v4237_v43, 0.0  ;;  %v4236_v12 = vadd.f32 %v10564_v7, %v4213_v52  ;;  %v4216_v63 = vadd.f32 %v8267_v10, %v3991_v27  ;;  %8294 = vmatmul.mubr.msk.f32.gmra.mxu0 %vm4260_vm4, %v10661_v28  ;;  %v4399_v15 = vld [vmem:[#allocation3 + $0xa0] sm:$0xff] }
 0x2c6   :  { %8334 = vmatmul.mubr.msk.f32.gmra.mxu1 %vm4260_vm4, %v10663_v59  ;;  %v4176_v32 = vpop.f32.mrf.mxu1  ;;  %8296 = vmatprep.mubr.msk.f32.mxu0 %vm4260_vm4, %v10674_v19  ;;  %v10703_v29 = vld [vmem:[#allocation3 + $0x61] sm:$0xff]  ;;  %v4337_v52 = vld [vmem:[%s11482_s5 + $0x90] sm:$0xff] }
 0x2c7   :  { %8336 = vmatprep.mubr.msk.f32.mxu1 %vm4260_vm4, %v10676_v51  ;;  %4312 = vst.msk [vmem:[#allocation3 + $0xc1] sm:$0xff] %vm4260_vm4, %v4253_v13  ;;  %v4252_v11 = vmax.f32 %v4236_v12, 0.0  ;;  %v4239_v60 = vadd.f32 %v10564_v7, %v4216_v63  ;;  %v4215_v30 = vadd.f32 %v4176_v32, %v3990_v48  ;;  %8357 = vmatpush3.msra.mxu0 %v4341_v16  ;;  %v10705_v2 = vld [vmem:[#allocation3 + $0x60] sm:$0xff]  ;;  %v4345_v12 = vld [vmem:[%s11482_s5 + $0xd0] sm:$0xff] }
 0x2c8   :  { %8397 = vmatpush3.msra.mxu1 %v4349_v3  ;;  %v8270_v21 = vpop.f32.mrf.mxu1  ;;  %v10689_v31 = vld [vmem:[#allocation3 + $0x51] sm:$0xff]  ;;  %8358 = vmatprep.subr.mxu0 %v4340_v47  ;;  %v4335_v0 = vld [vmem:[%s11482_s5 + $0x80] sm:$0xff] }
 0x2c9   :  { %v10691_v17 = vld [vmem:[#allocation3 + $0x50] sm:$0xff]  ;;  %8398 = vmatprep.subr.mxu1 %v4348_v14  ;;  %4311 = vst.msk [vmem:[#allocation3 + $0xb1] sm:$0xff] %vm4260_vm4, %v4252_v11  ;;  %v4255_v1 = vmax.f32 %v4239_v60, 0.0  ;;  %v4238_v25 = vadd.f32 %v10564_v7, %v4215_v30  ;;  %v4218_v39 = vadd.f32 %v8270_v21, %v3993_v37  ;;  %8297 = vmatmul.mubr.msk.f32.gmra.mxu0 %vm4260_vm4, %v10689_v31  ;;  %v4343_v11 = vld [vmem:[%s11482_s5 + $0xc0] sm:$0xff]  ;;  %v4358_v21 = vld [vmem:[%s11482_s5 + $0x138] sm:$0xff] }
 0x2ca   :  { %8337 = vmatmul.mubr.msk.f32.gmra.mxu1 %vm4260_vm4, %v10691_v17  ;;  %v4186_v18 = vpop.f32.mrf.mxu1  ;;  %8299 = vmatprep.mubr.msk.f32.mxu0 %vm4260_vm4, %v10703_v29  ;;  %v10823_v35 = vld [vmem:[#allocation3 + $0x12] sm:$0xff] }
 0x2cb   :  { %8339 = vmatprep.mubr.msk.f32.mxu1 %vm4260_vm4, %v10705_v2  ;;  %4314 = vst.msk [vmem:[#allocation3 + $0xe1] sm:$0xff] %vm4260_vm4, %v4255_v1  ;;  %v4254_v61 = vmax.f32 %v4238_v25, 0.0  ;;  %v4241_v22 = vadd.f32 %v10564_v7, %v4218_v39  ;;  %v4217_v16 = vadd.f32 %v4186_v18, %v3992_v20  ;;  %8359 = vmatpush3.msra.mxu0 %v4340_v47  ;;  %v4809_v20 = vld [vmem:[#allocation3 + $0x2] sm:$0xff]  ;;  %v4365_v25 = vld [vmem:[%s11482_s5 + $0x170] sm:$0xff] }
 0x2cc   :  { %8399 = vmatpush3.msra.mxu1 %v4348_v14  ;;  %v8273_v26 = vpop.f32.mrf.mxu1  ;;  %v10716_v44 = vld [vmem:[#allocation3 + $0x71] sm:$0xff]  ;;  %8360 = vmatprep.subr.mxu0 %v4339_v38  ;;  %v10829_v1 = vld [vmem:[#allocation3 + $0x22] sm:$0xff] }
 0x2cd   :  { %v10718_v3 = vld [vmem:[#allocation3 + $0x70] sm:$0xff]  ;;  %8400 = vmatprep.subr.mxu1 %v4347_v4  ;;  %4313 = vst.msk [vmem:[#allocation3 + $0xd1] sm:$0xff] %vm4260_vm4, %v4254_v61  ;;  %v4257_v55 = vmax.f32 %v4241_v22, 0.0  ;;  %v4240_v6 = vadd.f32 %v10564_v7, %v4217_v16  ;;  %v4220_v45 = vadd.f32 %v8273_v26, %v3995_v8  ;;  %8300 = vmatmul.mubr.msk.f32.gmra.mxu0 %vm4260_vm4, %v10716_v44  ;;  %v4364_v18 = vld [vmem:[%s11482_s5 + $0x168] sm:$0xff]  ;;  %v4355_v22 = vld [vmem:[%s11482_s5 + $0x120] sm:$0xff] }
 0x2ce   :  { %8340 = vmatmul.mubr.msk.f32.gmra.mxu1 %vm4260_vm4, %v10718_v3  ;;  %v4196_v41 = vpop.f32.mrf.mxu1  ;;  %8361 = vmatpush3.msra.mxu0 %v4339_v38  ;;  %v10749_v57 = vld [vmem:[#allocation3 + $0xc1] sm:$0xff]  ;;  %v4366_v38 = vld [vmem:[%s11482_s5 + $0x178] sm:$0xff] }
 0x2cf   :  { %8302 = vmatprep.mubr.msk.f32.mxu0 %vm4260_vm4, %v4415_v58  ;;  %4316 = vst.msk [vmem:[#allocation3 + $0x101] sm:$0xff] %vm4260_vm4, %v4257_v55  ;;  %v4256_v27 = vmax.f32 %v4240_v6, 0.0  ;;  %v4243_v33 = vadd.f32 %v10564_v7, %v4220_v45  ;;  %v4219_v43 = vadd.f32 %v4196_v41, %v3994_v49  ;;  %8342 = vmatprep.mubr.msk.f32.mxu1 %vm4260_vm4, %v4399_v15  ;;  %v10751_v10 = vld [vmem:[#allocation3 + $0xc0] sm:$0xff]  ;;  %v10841_v39 = vld [vmem:[#allocation3 + $0x32] sm:$0xff] }
 0x2d0   :  { %8362 = vmatprep.subr.mxu0 %v4338_v9  ;;  %v10736_v5 = vld [vmem:[#allocation3 + $0xb1] sm:$0xff]  ;;  %8401 = vmatpush3.msra.mxu1 %v4347_v4  ;;  %v10847_v4 = vld [vmem:[#allocation3 + $0x42] sm:$0xff] }
 0x2d1   :  { %v10738_v34 = vld [vmem:[#allocation3 + $0xb0] sm:$0xff]  ;;  %8363 = vmatpush3.msra.mxu0 %v4338_v9  ;;  %4315 = vst.msk [vmem:[#allocation3 + $0xf1] sm:$0xff] %vm4260_vm4, %v4256_v27  ;;  %v4259_v24 = vmax.f32 %v4243_v33, 0.0  ;;  %v4242_v42 = vadd.f32 %v10564_v7, %v4219_v43  ;;  %v4336_v7 = vld [vmem:[%s11482_s5 + $0x88] sm:$0xff]  ;;  %8402 = vmatprep.subr.mxu1 %v4346_v56  ;;  %v4363_v16 = vld [vmem:[%s11482_s5 + $0x160] sm:$0xff] }
 0x2d2   :  { %8303 = vmatmul.mubr.msk.f32.gmra.mxu0 %vm4260_vm4, %v10736_v5  ;;  %8343 = vmatmul.mubr.msk.f32.gmra.mxu1 %vm4260_vm4, %v10738_v34  ;;  %v10773_v63 = vld [vmem:[#allocation3 + $0xe1] sm:$0xff]  ;;  %v10859_v8 = vld [vmem:[#allocation3 + $0x52] sm:$0xff] }
 0x2d3   :  { %8305 = vmatprep.mubr.msk.f32.mxu0 %vm4260_vm4, %v10749_v57  ;;  %8345 = vmatprep.mubr.msk.f32.mxu1 %vm4260_vm4, %v10751_v10  ;;  %4318 = vst.msk [vmem:[#allocation3 + $0x121] sm:$0xff] %vm4260_vm4, %v4259_v24  ;;  %v4258_v47 = vmax.f32 %v4242_v42, 0.0  ;;  %v10775_v14 = vld [vmem:[#allocation3 + $0xe0] sm:$0xff]  ;;  %v10877_v15 = vld [vmem:[#allocation3 + $0x72] sm:$0xff]  ;;  %v4352_v27 = vld [vmem:[%s11482_s5 + $0x108] sm:$0xff] }
 0x2d4   :  { %8364 = vmatprep.subr.mxu0 %v4337_v52  ;;  %v10761_v48 = vld [vmem:[#allocation3 + $0xd1] sm:$0xff]  ;;  %8403 = vmatpush3.msra.mxu1 %v4346_v56  ;;  %v10865_v61 = vld [vmem:[#allocation3 + $0x62] sm:$0xff] }
 0x2d5   :  { %v10763_v13 = vld [vmem:[#allocation3 + $0xd0] sm:$0xff]  ;;  %8365 = vmatpush3.msra.mxu0 %v4337_v52  ;;  %4317 = vst.msk [vmem:[#allocation3 + $0x111] sm:$0xff] %vm4260_vm4, %v4258_v47  ;;  %8404 = vmatprep.subr.mxu1 %v4345_v12  ;;  %v4817_v58 = vld [vmem:[#allocation3 + $0xa2] sm:$0xff]  ;;  %v4354_v9 = vld [vmem:[%s11482_s5 + $0x118] sm:$0xff] }
 0x2d6   :  { %8306 = vmatmul.mubr.msk.f32.gmra.mxu0 %vm4260_vm4, %v10761_v48  ;;  %8346 = vmatmul.mubr.msk.f32.gmra.mxu1 %vm4260_vm4, %v10763_v13  ;;  %v10795_v32 = vld [vmem:[#allocation3 + $0x101] sm:$0xff]  ;;  %v10891_v49 = vld [vmem:[#allocation3 + $0xb2] sm:$0xff] }
 0x2d7   :  { %8308 = vmatprep.mubr.msk.f32.mxu0 %vm4260_vm4, %v10773_v63  ;;  %8348 = vmatprep.mubr.msk.f32.mxu1 %vm4260_vm4, %v10775_v14  ;;  %v10797_v23 = vld [vmem:[#allocation3 + $0x100] sm:$0xff]  ;;  %v4353_v55 = vld [vmem:[%s11482_s5 + $0x110] sm:$0xff]  ;;  %v4362_v6 = vld [vmem:[%s11482_s5 + $0x158] sm:$0xff] }
 0x2d8   :  { %8366 = vmatprep.subr.mxu0 %v4336_v7  ;;  %v10784_v36 = vld [vmem:[#allocation3 + $0xf1] sm:$0xff]  ;;  %8405 = vmatpush3.msra.mxu1 %v4345_v12  ;;  %v10879_v26 = vld [vmem:[#allocation3 + $0x80] sm:$0xff]  ;;  %v4360_v56 = vld [vmem:[%s11482_s5 + $0x148] sm:$0xff] }
 0x2d9   :  { %v10786_v37 = vld [vmem:[#allocation3 + $0xf0] sm:$0xff]  ;;  %8367 = vmatpush3.msra.mxu0 %v4336_v7  ;;  %8406 = vmatprep.subr.mxu1 %v4344_v46  ;;  %v10903_v45 = vld [vmem:[#allocation3 + $0xc2] sm:$0xff]  ;;  %v4374_v12 = vld [vmem:[%s11482_s5 + $0x1b8] sm:$0xff] }
 0x2da   :  { %8309 = vmatmul.mubr.msk.f32.gmra.mxu0 %vm4260_vm4, %v10784_v36  ;;  %8349 = vmatmul.mubr.msk.f32.gmra.mxu1 %vm4260_vm4, %v10786_v37  ;;  %v10909_v41 = vld [vmem:[#allocation3 + $0xd2] sm:$0xff]  ;;  %v10921_v43 = vld [vmem:[#allocation3 + $0xe2] sm:$0xff] }
 0x2db   :  { %8311 = vmatprep.mubr.msk.f32.mxu0 %vm4260_vm4, %v10795_v32  ;;  %8351 = vmatprep.mubr.msk.f32.mxu1 %vm4260_vm4, %v10797_v23  ;;  %v4361_v33 = vld [vmem:[%s11482_s5 + $0x150] sm:$0xff]  ;;  %v10939_v24 = vld [vmem:[#allocation3 + $0x102] sm:$0xff] }
 0x2dc   :  { %8368 = vmatprep.subr.mxu0 %v4335_v0  ;;  %v10806_v60 = vld [vmem:[#allocation3 + $0x111] sm:$0xff]  ;;  %8407 = vmatpush3.msra.mxu1 %v4344_v46  ;;  %v4359_v42 = vld [vmem:[%s11482_s5 + $0x140] sm:$0xff] }
 0x2dd   :  { %v10808_v30 = vld [vmem:[#allocation3 + $0x110] sm:$0xff]  ;;  %8369 = vmatpush3.msra.mxu0 %v4335_v0  ;;  %8408 = vmatprep.subr.mxu1 %v4343_v11  ;;  %v10950_v7 = vld [vmem:[#allocation3 + $0x120] sm:$0xff]  ;;  %v4382_v46 = vld [vmem:[%s11482_s5 + $0x1f8] sm:$0xff] }
 0x2de   :  { %8312 = vmatmul.mubr.msk.f32.gmra.mxu0 %vm4260_vm4, %v10806_v60  ;;  %8352 = vmatmul.mubr.msk.f32.gmra.mxu1 %vm4260_vm4, %v10808_v30  ;;  %v10927_v52 = vld [vmem:[#allocation3 + $0xf2] sm:$0xff] }
 0x2df   :  { %8410 = vmatprep.mubr.msk.f32.mxu1 %vm4260_vm4, %v10628_v40  ;;  %8370 = vmatprep.mubr.msk.f32.mxu0 %vm4260_vm4, %v4809_v20  ;;  %v4357_v40 = vld [vmem:[%s11482_s5 + $0x130] sm:$0xff]  ;;  %v4380_v20 = vld [vmem:[%s11482_s5 + $0x1e8] sm:$0xff] }
 0x2e0   :  { %8409 = vmatpush3.msra.mxu1 %v4343_v11  ;;  %8434 = vmatprep.subr.mxu0 %v4358_v21  ;;  %v10948_v47 = vld [vmem:[#allocation3 + $0x112] sm:$0xff]  ;;  %v4372_v11 = vld [vmem:[%s11482_s5 + $0x1a8] sm:$0xff] }
 0x2e1   :  { %8474 = vmatprep.subr.mxu1 %v4366_v38  ;;  %v4381_v0 = vld [vmem:[%s11482_s5 + $0x1f0] sm:$0xff] }
 0x2e2   :  { %8371 = vmatmul.mubr.msk.f32.vlgmr.msra.gmra.mxu0 %vm4260_vm4, %v10823_v35  ;;  %8411 = vmatmul.mubr.msk.f32.vlgmr.msra.gmra.mxu1 %vm4260_vm4, %v10642_v53 }
 0x2e3   :  { %8373 = vmatprep.mubr.msk.f32.mxu0 %vm4260_vm4, %v10829_v1  ;;  %8413 = vmatprep.mubr.msk.f32.mxu1 %vm4260_vm4, %v10663_v59 }
 0x2e4   :  { %8435 = vmatpush3.msra.mxu0 %v4358_v21  ;;  %8475 = vmatpush3.msra.mxu1 %v4366_v38  ;;  %v4371_v21 = vld [vmem:[%s11482_s5 + $0x1a0] sm:$0xff] }
 0x2e5   :  { %8436 = vmatprep.subr.mxu0 %v4357_v40  ;;  %8476 = vmatprep.subr.mxu1 %v4365_v25  ;;  %v11005_v38 = vld [vmem:[#allocation3 + $0x81] sm:$0xff] }
 0x2e6   :  { %8374 = vmatmul.mubr.msk.f32.gmra.mxu0 %vm4260_vm4, %v10841_v39  ;;  %8414 = vmatmul.mubr.msk.f32.gmra.mxu1 %vm4260_vm4, %v10676_v51 }
 0x2e7   :  { %8376 = vmatprep.mubr.msk.f32.mxu0 %vm4260_vm4, %v10847_v4  ;;  %8416 = vmatprep.mubr.msk.f32.mxu1 %vm4260_vm4, %v10691_v17 }
 0x2e8   :  { %8437 = vmatpush3.msra.mxu0 %v4357_v40  ;;  %8477 = vmatpush3.msra.mxu1 %v4365_v25  ;;  %v4379_v40 = vld [vmem:[%s11482_s5 + $0x1e0] sm:$0xff]  ;;  %v4370_v25 = vld [vmem:[%s11482_s5 + $0x198] sm:$0xff] }
 0x2e9   :  { %8438 = vmatprep.subr.mxu0 %v4356_v62  ;;  %8478 = vmatprep.subr.mxu1 %v4364_v18 }
 0x2ea   :  { %8377 = vmatmul.mubr.msk.f32.gmra.mxu0 %vm4260_vm4, %v10859_v8  ;;  %8417 = vmatmul.mubr.msk.f32.gmra.mxu1 %vm4260_vm4, %v10705_v2 }
 0x2eb   :  { %8379 = vmatprep.mubr.msk.f32.mxu0 %vm4260_vm4, %v10865_v61  ;;  %8419 = vmatprep.mubr.msk.f32.mxu1 %vm4260_vm4, %v10718_v3 }
 0x2ec   :  { %8439 = vmatpush3.msra.mxu0 %v4356_v62  ;;  %8479 = vmatpush3.msra.mxu1 %v4364_v18  ;;  %v4378_v62 = vld [vmem:[%s11482_s5 + $0x1d8] sm:$0xff]  ;;  %v4377_v18 = vld [vmem:[%s11482_s5 + $0x1d0] sm:$0xff] }
 0x2ed   :  { %8440 = vmatprep.subr.mxu0 %v4355_v22  ;;  %8480 = vmatprep.subr.mxu1 %v4363_v16 }
 0x2ee   :  { %8380 = vmatmul.mubr.msk.f32.gmra.mxu0 %vm4260_vm4, %v10877_v15  ;;  %8420 = vmatmul.mubr.msk.f32.gmra.mxu1 %vm4260_vm4, %v10879_v26 }
 0x2ef   :  { %8422 = vmatprep.mubr.msk.f32.mxu1 %vm4260_vm4, %v10738_v34  ;;  %8441 = vmatpush3.msra.mxu0 %v4355_v22  ;;  %v4351_v34 = vld [vmem:[%s11482_s5 + $0x100] sm:$0xff]  ;;  %v4368_v22 = vld [vmem:[%s11482_s5 + $0x188] sm:$0xff] }
 0x2f0   :  { %8382 = vmatprep.mubr.msk.f32.mxu0 %vm4260_vm4, %v4817_v58  ;;  %8442 = vmatprep.subr.mxu0 %v4354_v9  ;;  %v4367_v58 = vld [vmem:[%s11482_s5 + $0x180] sm:$0xff] }
 0x2f1   :  { %8443 = vmatpush3.msra.mxu0 %v4354_v9  ;;  %8481 = vmatpush3.msra.mxu1 %v4363_v16  ;;  %v4376_v16 = vld [vmem:[%s11482_s5 + $0x1c8] sm:$0xff] }
 0x2f2   :  { %8383 = vmatmul.mubr.msk.f32.gmra.mxu0 %vm4260_vm4, %v10891_v49  ;;  %8423 = vmatmul.mubr.msk.f32.gmra.mxu1 %vm4260_vm4, %v10751_v10  ;;  %v5274_v9 = vld [vmem:[#allocation3 + $0x121] sm:$0xff] }
 0x2f3   :  { %8385 = vmatprep.mubr.msk.f32.mxu0 %vm4260_vm4, %v10903_v45  ;;  %8425 = vmatprep.mubr.msk.f32.mxu1 %vm4260_vm4, %v10763_v13 }
 0x2f4   :  { %8444 = vmatprep.subr.mxu0 %v4353_v55  ;;  %8482 = vmatprep.subr.mxu1 %v4362_v6 }
 0x2f5   :  { %8445 = vmatpush3.msra.mxu0 %v4353_v55  ;;  %8483 = vmatpush3.msra.mxu1 %v4362_v6  ;;  %v4375_v55 = vld [vmem:[%s11482_s5 + $0x1c0] sm:$0xff]  ;;  %v4390_v6 = vld [vmem:[%s11482_s5 + $0x238] sm:$0xff] }
 0x2f6   :  { %8386 = vmatmul.mubr.msk.f32.gmra.mxu0 %vm4260_vm4, %v10909_v41  ;;  %8426 = vmatmul.mubr.msk.f32.gmra.mxu1 %vm4260_vm4, %v10775_v14 }
 0x2f7   :  { %8388 = vmatprep.mubr.msk.f32.mxu0 %vm4260_vm4, %v10921_v43  ;;  %8428 = vmatprep.mubr.msk.f32.mxu1 %vm4260_vm4, %v10786_v37 }
 0x2f8   :  { %8446 = vmatprep.subr.mxu0 %v4352_v27  ;;  %8484 = vmatprep.subr.mxu1 %v4361_v33 }
 0x2f9   :  { %8447 = vmatpush3.msra.mxu0 %v4352_v27  ;;  %8485 = vmatpush3.msra.mxu1 %v4361_v33  ;;  %v4389_v27 = vld [vmem:[%s11482_s5 + $0x230] sm:$0xff] }
 0x2fa   :  { %8389 = vmatmul.mubr.msk.f32.gmra.mxu0 %vm4260_vm4, %v10927_v52  ;;  %8429 = vmatmul.mubr.msk.f32.gmra.mxu1 %vm4260_vm4, %v10797_v23  ;;  %v6426_v33 = vld [vmem:[#allocation6 + $0x10] sm:$0xff] }
 0x2fb   :  { %8391 = vmatprep.mubr.msk.f32.mxu0 %vm4260_vm4, %v10939_v24  ;;  %8431 = vmatprep.mubr.msk.f32.mxu1 %vm4260_vm4, %v10808_v30 }
 0x2fc   :  { %8448 = vmatprep.subr.mxu0 %v4351_v34  ;;  %8486 = vmatprep.subr.mxu1 %v4360_v56 }
 0x2fd   :  { %8449 = vmatpush3.msra.mxu0 %v4351_v34  ;;  %8487 = vmatpush3.msra.mxu1 %v4360_v56  ;;  %v6425_v56 = vld [vmem:[#allocation6 + $0x8] sm:$0xff] }
 0x2fe   :  { %8392 = vmatmul.mubr.msk.f32.gmra.mxu0 %vm4260_vm4, %v10948_v47  ;;  %8432 = vmatmul.mubr.msk.f32.gmra.mxu1 %vm4260_vm4, %v10950_v7 }
 0x2ff   :  { %8450 = vmatprep.mubr.msk.f32.mxu0 %vm4260_vm4, %v10626_v54  ;;  %8490 = vmatprep.mubr.msk.f32.mxu1 %vm4260_vm4, %v10823_v35  ;;  %v4373_v54 = vld [vmem:[%s11482_s5 + $0x1b0] sm:$0xff]  ;;  %v11007_v35 = vld [vmem:[#allocation3 + $0x82] sm:$0xff] }
 0x300   :  { %8488 = vmatprep.subr.mxu1 %v4359_v42  ;;  %8514 = vmatprep.subr.mxu0 %v4374_v12 }
 0x301   :  { %8489 = vmatpush3.msra.mxu1 %v4359_v42 }
 0x302   :  { %8451 = vmatmul.mubr.msk.f32.vlgmr.msra.gmra.mxu0 %vm4260_vm4, %v10640_v50  ;;  %8491 = vmatmul.mubr.msk.f32.vlgmr.msra.gmra.mxu1 %vm4260_vm4, %v10829_v1 }
 0x303   :  { %8453 = vmatprep.mubr.msk.f32.mxu0 %vm4260_vm4, %v10661_v28  ;;  %8493 = vmatprep.mubr.msk.f32.mxu1 %vm4260_vm4, %v10841_v39 }
 0x304   :  { %8515 = vmatpush3.msra.mxu0 %v4374_v12  ;;  %8554 = vmatprep.subr.mxu1 %v4382_v46 }
 0x305   :  { %8516 = vmatprep.subr.mxu0 %v4373_v54  ;;  %8555 = vmatpush3.msra.mxu1 %v4382_v46 }
 0x306   :  { %8454 = vmatmul.mubr.msk.f32.gmra.mxu0 %vm4260_vm4, %v10674_v19  ;;  %8494 = vmatmul.mubr.msk.f32.gmra.mxu1 %vm4260_vm4, %v10847_v4 }
 0x307   :  { %8456 = vmatprep.mubr.msk.f32.mxu0 %vm4260_vm4, %v10689_v31  ;;  %8496 = vmatprep.mubr.msk.f32.mxu1 %vm4260_vm4, %v10859_v8 }
 0x308   :  { %8517 = vmatpush3.msra.mxu0 %v4373_v54  ;;  %8556 = vmatprep.subr.mxu1 %v4381_v0 }
 0x309   :  { %8518 = vmatprep.subr.mxu0 %v4372_v11  ;;  %8557 = vmatpush3.msra.mxu1 %v4381_v0 }
 0x30a   :  { %8457 = vmatmul.mubr.msk.f32.gmra.mxu0 %vm4260_vm4, %v10703_v29  ;;  %8497 = vmatmul.mubr.msk.f32.gmra.mxu1 %vm4260_vm4, %v10865_v61 }
 0x30b   :  { %8459 = vmatprep.mubr.msk.f32.mxu0 %vm4260_vm4, %v10716_v44  ;;  %8499 = vmatprep.mubr.msk.f32.mxu1 %vm4260_vm4, %v10877_v15 }
 0x30c   :  { %8519 = vmatpush3.msra.mxu0 %v4372_v11  ;;  %8558 = vmatprep.subr.mxu1 %v4380_v20 }
 0x30d   :  { %8520 = vmatprep.subr.mxu0 %v4371_v21  ;;  %8559 = vmatpush3.msra.mxu1 %v4380_v20 }
 0x30e   :  { %8460 = vmatmul.mubr.msk.f32.gmra.mxu0 %vm4260_vm4, %v11005_v38  ;;  %8500 = vmatmul.mubr.msk.f32.gmra.mxu1 %vm4260_vm4, %v11007_v35 }
 0x30f   :  { %8462 = vmatprep.mubr.msk.f32.mxu0 %vm4260_vm4, %v10736_v5  ;;  %8502 = vmatprep.mubr.msk.f32.mxu1 %vm4260_vm4, %v10891_v49  ;;  %v4369_v5 = vld [vmem:[%s11482_s5 + $0x190] sm:$0xff]  ;;  %v11065_v49 = vld [vmem:[#allocation3 + $0x122] sm:$0xff] }
 0x310   :  { %8521 = vmatpush3.msra.mxu0 %v4371_v21  ;;  %8560 = vmatprep.subr.mxu1 %v4379_v40 }
 0x311   :  { %8522 = vmatprep.subr.mxu0 %v4370_v25  ;;  %8561 = vmatpush3.msra.mxu1 %v4379_v40 }
 0x312   :  { %8463 = vmatmul.mubr.msk.f32.gmra.mxu0 %vm4260_vm4, %v10749_v57  ;;  %8503 = vmatmul.mubr.msk.f32.gmra.mxu1 %vm4260_vm4, %v10903_v45 }
 0x313   :  { %8465 = vmatprep.mubr.msk.f32.mxu0 %vm4260_vm4, %v10761_v48  ;;  %8505 = vmatprep.mubr.msk.f32.mxu1 %vm4260_vm4, %v10909_v41 }
 0x314   :  { %8523 = vmatpush3.msra.mxu0 %v4370_v25  ;;  %8562 = vmatprep.subr.mxu1 %v4378_v62 }
 0x315   :  { %8524 = vmatprep.subr.mxu0 %v4369_v5  ;;  %8563 = vmatpush3.msra.mxu1 %v4378_v62 }
 0x316   :  { %8466 = vmatmul.mubr.msk.f32.gmra.mxu0 %vm4260_vm4, %v10773_v63  ;;  %8506 = vmatmul.mubr.msk.f32.gmra.mxu1 %vm4260_vm4, %v10921_v43 }
 0x317   :  { %8468 = vmatprep.mubr.msk.f32.mxu0 %vm4260_vm4, %v10784_v36  ;;  %8508 = vmatprep.mubr.msk.f32.mxu1 %vm4260_vm4, %v10927_v52 }
 0x318   :  { %8525 = vmatpush3.msra.mxu0 %v4369_v5  ;;  %8564 = vmatprep.subr.mxu1 %v4377_v18 }
 0x319   :  { %8526 = vmatprep.subr.mxu0 %v4368_v22  ;;  %8565 = vmatpush3.msra.mxu1 %v4377_v18 }
 0x31a   :  { %8469 = vmatmul.mubr.msk.f32.gmra.mxu0 %vm4260_vm4, %v10795_v32  ;;  %8509 = vmatmul.mubr.msk.f32.gmra.mxu1 %vm4260_vm4, %v10939_v24 }
 0x31b   :  { %8471 = vmatprep.mubr.msk.f32.mxu0 %vm4260_vm4, %v10806_v60  ;;  %8511 = vmatprep.mubr.msk.f32.mxu1 %vm4260_vm4, %v10948_v47 }
 0x31c   :  { %8527 = vmatpush3.msra.mxu0 %v4368_v22  ;;  %8566 = vmatprep.subr.mxu1 %v4376_v16 }
 0x31d   :  { %8528 = vmatprep.subr.mxu0 %v4367_v58  ;;  %8567 = vmatpush3.msra.mxu1 %v4376_v16 }
 0x31e   :  { %8472 = vmatmul.mubr.msk.f32.gmra.mxu0 %vm4260_vm4, %v5274_v9  ;;  %8512 = vmatmul.mubr.msk.f32.gmra.mxu1 %vm4260_vm4, %v11065_v49 }
 0x31f   :  { %8529 = vmatpush3.msra.mxu0 %v4367_v58  ;;  %8530 = vmatprep.mubr.msk.f32.mxu0 %vm4260_vm4, %v10642_v53  ;;  %v4387_v53 = vld [vmem:[%s11482_s5 + $0x220] sm:$0xff] }
 0x320   :  { %8570 = vmatprep.mubr.msk.f32.mxu1 %vm4260_vm4, %v10640_v50  ;;  %8568 = vmatprep.subr.mxu1 %v4375_v55  ;;  %v4388_v50 = vld [vmem:[%s11482_s5 + $0x228] sm:$0xff] }
 0x321   :  { %8569 = vmatpush3.msra.mxu1 %v4375_v55  ;;  %8594 = vmatprep.subr.mxu0 %v4390_v6 }
 0x322   :  { %8531 = vmatmul.mubr.msk.f32.vlgmr.msra.gmra.mxu0 %vm4260_vm4, %v10663_v59  ;;  %8571 = vmatmul.mubr.msk.f32.vlgmr.msra.gmra.mxu1 %vm4260_vm4, %v10661_v28  ;;  %v5717_v28 = vld [vmem:[#allocation3 + $0x90] sm:$0xff] }
 0x323   :  { %8533 = vmatprep.mubr.msk.f32.mxu0 %vm4260_vm4, %v10676_v51  ;;  %8573 = vmatprep.mubr.msk.f32.mxu1 %vm4260_vm4, %v10674_v19  ;;  %v5942_v59 = vld [vmem:[#allocation3 + $0x91] sm:$0xff] }
 0x324   :  { %8595 = vmatpush3.msra.mxu0 %v4390_v6  ;;  %v4386_v19 = vld [vmem:[%s11482_s5 + $0x218] sm:$0xff]  ;;  %v4385_v51 = vld [vmem:[%s11482_s5 + $0x210] sm:$0xff] }
 0x325   :  { %8596 = vmatprep.subr.mxu0 %v4389_v27 }
 0x326   :  { %8534 = vmatmul.mubr.msk.f32.gmra.mxu0 %vm4260_vm4, %v10691_v17  ;;  %8574 = vmatmul.mubr.msk.f32.gmra.mxu1 %vm4260_vm4, %v10689_v31  ;;  %v4384_v31 = vld [vmem:[%s11482_s5 + $0x208] sm:$0xff]  ;;  %v4383_v17 = vld [vmem:[%s11482_s5 + $0x200] sm:$0xff] }
 0x327   :  { %8536 = vmatprep.mubr.msk.f32.mxu0 %vm4260_vm4, %v10705_v2  ;;  %8576 = vmatprep.mubr.msk.f32.mxu1 %vm4260_vm4, %v10703_v29  ;;  %v5725_v29 = vld [vmem:[#allocation3 + $0x130] sm:$0xff] }
 0x328   :  { %8597 = vmatpush3.msra.mxu0 %v4389_v27  ;;  %v5950_v2 = vld [vmem:[#allocation3 + $0x131] sm:$0xff] }
 0x329   :  { %8598 = vmatprep.subr.mxu0 %v4388_v50 }
 0x32a   :  { %8537 = vmatmul.mubr.msk.f32.gmra.mxu0 %vm4260_vm4, %v10718_v3  ;;  %8577 = vmatmul.mubr.msk.f32.gmra.mxu1 %vm4260_vm4, %v10716_v44  ;;  %v6167_v44 = vld [vmem:[#allocation3 + $0x92] sm:$0xff] }
 0x32b   :  { %8539 = vmatprep.mubr.msk.f32.mxu0 %vm4260_vm4, %v10879_v26  ;;  %8579 = vmatprep.mubr.msk.f32.mxu1 %vm4260_vm4, %v11005_v38  ;;  %v6175_v3 = vld [vmem:[#allocation3 + $0x132] sm:$0xff] }
 0x32c   :  { %8599 = vmatpush3.msra.mxu0 %v4388_v50 }
 0x32d   :  { %8600 = vmatprep.subr.mxu0 %v4387_v53 }
 0x32e   :  { %8540 = vmatmul.mubr.msk.f32.gmra.mxu0 %vm4260_vm4, %v5717_v28  ;;  %8580 = vmatmul.mubr.msk.f32.gmra.mxu1 %vm4260_vm4, %v5942_v59 }
 0x32f   :  { %8542 = vmatprep.mubr.msk.f32.mxu0 %vm4260_vm4, %v10751_v10  ;;  %8582 = vmatprep.mubr.msk.f32.mxu1 %vm4260_vm4, %v10749_v57  ;;  %v6439_v57 = vld [vmem:[#allocation6 + $0x78] sm:$0xff]  ;;  %v6438_v10 = vld [vmem:[#allocation6 + $0x70] sm:$0xff] }
 0x330   :  { %8601 = vmatpush3.msra.mxu0 %v4387_v53  ;;  %8634 = vmatprep.subr.mxu1 %v6439_v57 }
 0x331   :  { %8602 = vmatprep.subr.mxu0 %v4386_v19  ;;  %8635 = vmatpush3.msra.mxu1 %v6439_v57 }
 0x332   :  { %8543 = vmatmul.mubr.msk.f32.gmra.mxu0 %vm4260_vm4, %v10763_v13  ;;  %8583 = vmatmul.mubr.msk.f32.gmra.mxu1 %vm4260_vm4, %v10761_v48  ;;  %v6437_v48 = vld [vmem:[#allocation6 + $0x68] sm:$0xff]  ;;  %v6436_v13 = vld [vmem:[#allocation6 + $0x60] sm:$0xff] }
 0x333   :  { %8545 = vmatprep.mubr.msk.f32.mxu0 %vm4260_vm4, %v10775_v14  ;;  %8585 = vmatprep.mubr.msk.f32.mxu1 %vm4260_vm4, %v10773_v63  ;;  %v6435_v63 = vld [vmem:[#allocation6 + $0x58] sm:$0xff]  ;;  %v6434_v14 = vld [vmem:[#allocation6 + $0x50] sm:$0xff] }
 0x334   :  { %8603 = vmatpush3.msra.mxu0 %v4386_v19  ;;  %8636 = vmatprep.subr.mxu1 %v6438_v10 }
 0x335   :  { %8604 = vmatprep.subr.mxu0 %v4385_v51  ;;  %8637 = vmatpush3.msra.mxu1 %v6438_v10 }
 0x336   :  { %8546 = vmatmul.mubr.msk.f32.gmra.mxu0 %vm4260_vm4, %v10786_v37  ;;  %8586 = vmatmul.mubr.msk.f32.gmra.mxu1 %vm4260_vm4, %v10784_v36  ;;  %v6433_v36 = vld [vmem:[#allocation6 + $0x48] sm:$0xff]  ;;  %v6432_v37 = vld [vmem:[#allocation6 + $0x40] sm:$0xff] }
 0x337   :  { %8548 = vmatprep.mubr.msk.f32.mxu0 %vm4260_vm4, %v10797_v23  ;;  %8588 = vmatprep.mubr.msk.f32.mxu1 %vm4260_vm4, %v10795_v32  ;;  %v6431_v32 = vld [vmem:[#allocation6 + $0x38] sm:$0xff]  ;;  %v6430_v23 = vld [vmem:[#allocation6 + $0x30] sm:$0xff] }
 0x338   :  { %8605 = vmatpush3.msra.mxu0 %v4385_v51  ;;  %8638 = vmatprep.subr.mxu1 %v6437_v48 }
 0x339   :  { %8606 = vmatprep.subr.mxu0 %v4384_v31  ;;  %8639 = vmatpush3.msra.mxu1 %v6437_v48 }
 0x33a   :  { %8549 = vmatmul.mubr.msk.f32.gmra.mxu0 %vm4260_vm4, %v10808_v30  ;;  %8589 = vmatmul.mubr.msk.f32.gmra.mxu1 %vm4260_vm4, %v10806_v60  ;;  %v6429_v60 = vld [vmem:[#allocation6 + $0x28] sm:$0xff] }
 0x33b   :  { %8551 = vmatprep.mubr.msk.f32.mxu0 %vm4260_vm4, %v10950_v7  ;;  %8591 = vmatprep.mubr.msk.f32.mxu1 %vm4260_vm4, %v5274_v9  ;;  %v6424_v7 = vld [vmem:[#allocation6] sm:$0xff] }
 0x33c   :  { %8607 = vmatpush3.msra.mxu0 %v4384_v31  ;;  %8640 = vmatprep.subr.mxu1 %v6436_v13 }
 0x33d   :  { %8608 = vmatprep.subr.mxu0 %v4383_v17  ;;  %8641 = vmatpush3.msra.mxu1 %v6436_v13 }
 0x33e   :  { %8552 = vmatmul.mubr.msk.f32.gmra.mxu0 %vm4260_vm4, %v5725_v29  ;;  %8592 = vmatmul.mubr.msk.f32.gmra.mxu1 %vm4260_vm4, %v5950_v2 }
 0x33f   :  { %8609 = vmatpush3.msra.mxu0 %v4383_v17  ;;  %8610 = vmatprep.mubr.msk.f32.mxu0 %vm4260_vm4, %v10829_v1 }
 0x340   :  { %8642 = vmatprep.subr.mxu1 %v6435_v63 }
 0x341   :  { %8643 = vmatpush3.msra.mxu1 %v6435_v63 }
 0x342   :  { %8611 = vmatmul.mubr.msk.f32.vlgmr.msra.gmra.mxu0 %vm4260_vm4, %v10841_v39  ;;  %8644 = vmatprep.subr.mxu1 %v6434_v14  ;;  %v6428_v39 = vld [vmem:[#allocation6 + $0x20] sm:$0xff] }
 0x343   :  { %8613 = vmatprep.mubr.msk.f32.mxu0 %vm4260_vm4, %v10847_v4  ;;  %8645 = vmatpush3.msra.mxu1 %v6434_v14 }
 0x344   :  { %8646 = vmatprep.subr.mxu1 %v6433_v36 }
 0x345   :  { %8647 = vmatpush3.msra.mxu1 %v6433_v36 }
 0x346   :  { %8614 = vmatmul.mubr.msk.f32.gmra.mxu0 %vm4260_vm4, %v10859_v8  ;;  %8648 = vmatprep.subr.mxu1 %v6432_v37 }
 0x347   :  { %8616 = vmatprep.mubr.msk.f32.mxu0 %vm4260_vm4, %v10865_v61  ;;  %8649 = vmatpush3.msra.mxu1 %v6432_v37 }
 0x348   :  { %8650 = vmatprep.subr.mxu1 %v6431_v32 }
 0x349   :  { %8651 = vmatpush3.msra.mxu1 %v6431_v32 }
 0x34a   :  { %8617 = vmatmul.mubr.msk.f32.gmra.mxu0 %vm4260_vm4, %v10877_v15  ;;  %8652 = vmatprep.subr.mxu1 %v6430_v23  ;;  %v6427_v15 = vld [vmem:[#allocation6 + $0x18] sm:$0xff] }
 0x34b   :  { %8619 = vmatprep.mubr.msk.f32.mxu0 %vm4260_vm4, %v11007_v35  ;;  %8653 = vmatpush3.msra.mxu1 %v6430_v23 }
 0x34c   :  { %8654 = vmatprep.subr.mxu1 %v6429_v60 }
 0x34d   :  { %8655 = vmatpush3.msra.mxu1 %v6429_v60 }
 0x34e   :  { %8620 = vmatmul.mubr.msk.f32.gmra.mxu0 %vm4260_vm4, %v6167_v44  ;;  %8656 = vmatprep.subr.mxu1 %v6428_v39 }
 0x34f   :  { %8622 = vmatprep.mubr.msk.f32.mxu0 %vm4260_vm4, %v10903_v45  ;;  %8657 = vmatpush3.msra.mxu1 %v6428_v39 }
 0x350   :  { %8658 = vmatprep.subr.mxu1 %v6427_v15 }
 0x351   :  { %8659 = vmatpush3.msra.mxu1 %v6427_v15 }
 0x352   :  { %8623 = vmatmul.mubr.msk.f32.gmra.mxu0 %vm4260_vm4, %v10909_v41  ;;  %8660 = vmatprep.subr.mxu1 %v6426_v33 }
 0x353   :  { %8625 = vmatprep.mubr.msk.f32.mxu0 %vm4260_vm4, %v10921_v43  ;;  %8661 = vmatpush3.msra.mxu1 %v6426_v33 }
 0x354   :  { %8662 = vmatprep.subr.mxu1 %v6425_v56 }
 0x355   :  { %8663 = vmatpush3.msra.mxu1 %v6425_v56 }
 0x356   :  { %8626 = vmatmul.mubr.msk.f32.gmra.mxu0 %vm4260_vm4, %v10927_v52  ;;  %8664 = vmatprep.subr.mxu1 %v6424_v7 }
 0x357   :  { %8628 = vmatprep.mubr.msk.f32.mxu0 %vm4260_vm4, %v10939_v24  ;;  %8665 = vmatpush3.msra.mxu1 %v6424_v7 }
 0x35a   :  { %8629 = vmatmul.mubr.msk.f32.gmra.mxu0 %vm4260_vm4, %v10948_v47 }
 0x35b   :  { %8631 = vmatprep.mubr.msk.f32.mxu0 %vm4260_vm4, %v11065_v49 }
 0x35e   :  { %8632 = vmatmul.mubr.msk.f32.gmra.mxu0 %vm4260_vm4, %v6175_v3 }
 0x381   :  { %v8292_v30 = vpop.f32.mrf.mxu0 }
 0x382   :  { %v8332_v1 = vpop.f32.mrf.mxu1 }
 0x383   :  { %v4736_v4 = vadd.f32 %v8332_v1, %v8292_v30  ;;  %v4537_v8 = vpop.f32.mrf.mxu0 }
 0x384   :  { %v4730_v61 = vpop.f32.mrf.mxu1 }
 0x385   :  { %v4731_v26 = vadd.f32 %v4730_v61, %v4537_v8  ;;  %v8295_v45 = vpop.f32.mrf.mxu0 }
 0x386   :  { %v8335_v41 = vpop.f32.mrf.mxu1 }
 0x387   :  { %v4746_v43 = vadd.f32 %v8335_v41, %v8295_v45  ;;  %v4547_v52 = vpop.f32.mrf.mxu0 }
 0x388   :  { %v4740_v34 = vpop.f32.mrf.mxu1 }
 0x389   :  { %v4741_v24 = vadd.f32 %v4740_v34, %v4547_v52  ;;  %v8298_v42 = vpop.f32.mrf.mxu0 }
 0x38a   :  { %v8338_v47 = vpop.f32.mrf.mxu1 }
 0x38b   :  { %v4756_v12 = vadd.f32 %v8338_v47, %v8298_v42  ;;  %v4557_v46 = vpop.f32.mrf.mxu0 }
 0x38c   :  { %v4750_v54 = vpop.f32.mrf.mxu1 }
 0x38d   :  { %v4751_v0 = vadd.f32 %v4750_v54, %v4557_v46  ;;  %v8301_v11 = vpop.f32.mrf.mxu0 }
 0x38e   :  { %v8341_v20 = vpop.f32.mrf.mxu1 }
 0x38f   :  { %v4766_v21 = vadd.f32 %v8341_v20, %v8301_v11  ;;  %v4567_v38 = vpop.f32.mrf.mxu0 }
 0x390   :  { %v4760_v35 = vpop.f32.mrf.mxu1 }
 0x391   :  { %v4761_v40 = vadd.f32 %v4760_v35, %v4567_v38 }
 0x392   :  { %v8304_v25 = vpop.f32.mrf.mxu0  ;;  %v8344_v62 = vpop.f32.mrf.mxu1 }
 0x393   :  { %v4776_v5 = vadd.f32 %v8344_v62, %v8304_v25 }
 0x394   :  { %v4577_v18 = vpop.f32.mrf.mxu0  ;;  %v4770_v22 = vpop.f32.mrf.mxu1 }
 0x395   :  { %v4771_v16 = vadd.f32 %v4770_v22, %v4577_v18 }
 0x396   :  { %v8307_v58 = vpop.f32.mrf.mxu0  ;;  %v8347_v9 = vpop.f32.mrf.mxu1 }
 0x397   :  { %v4786_v49 = vadd.f32 %v8347_v9, %v8307_v58 }
 0x398   :  { %v4587_v55 = vpop.f32.mrf.mxu0  ;;  %v4780_v6 = vpop.f32.mrf.mxu1 }
 0x399   :  { %v4781_v27 = vadd.f32 %v4780_v6, %v4587_v55 }
 0x39a   :  { %v8310_v50 = vpop.f32.mrf.mxu0  ;;  %v8350_v53 = vpop.f32.mrf.mxu1 }
 0x39b   :  { %v4796_v28 = vadd.f32 %v8350_v53, %v8310_v50 }
 0x39c   :  { %v4597_v59 = vpop.f32.mrf.mxu0  ;;  %v4790_v19 = vpop.f32.mrf.mxu1 }
 0x39d   :  { %v4791_v51 = vadd.f32 %v4790_v19, %v4597_v59 }
 0x39e   :  { %v8313_v31 = vpop.f32.mrf.mxu0  ;;  %v8353_v17 = vpop.f32.mrf.mxu1 }
 0x39f   :  { %v4806_v29 = vadd.f32 %v8353_v17, %v8313_v31 }
 0x3a0   :  { %v4607_v2 = vpop.f32.mrf.mxu0  ;;  %v4800_v44 = vpop.f32.mrf.mxu1 }
 0x3a1   :  { %v4801_v3 = vadd.f32 %v4800_v44, %v4607_v2 }
 0x3a2   :  { %v8372_v57 = vpop.f32.mrf.mxu0  ;;  %v11186_v10 = vpop.f32.mrf.mxu1 }
 0x3a3   :  { %v11188_v48 = vadd.f32 %v8372_v57, %v4736_v4 }
 0x3a4   :  { %v4939_v13 = vpop.f32.mrf.mxu0  ;;  %v11190_v63 = vpop.f32.mrf.mxu1 }
 0x3a5   :  { %v11192_v14 = vadd.f32 %v4939_v13, %v4731_v26 }
 0x3a6   :  { %v8375_v36 = vpop.f32.mrf.mxu0  ;;  %v11194_v37 = vpop.f32.mrf.mxu1 }
 0x3a7   :  { %v11196_v32 = vadd.f32 %v8375_v36, %v4746_v43 }
 0x3a8   :  { %v4949_v23 = vpop.f32.mrf.mxu0  ;;  %v11198_v60 = vpop.f32.mrf.mxu1 }
 0x3a9   :  { %v11200_v30 = vadd.f32 %v4949_v23, %v4741_v24 }
 0x3aa   :  { %v8378_v1 = vpop.f32.mrf.mxu0  ;;  %v11202_v39 = vpop.f32.mrf.mxu1 }
 0x3ab   :  { %v11204_v4 = vadd.f32 %v8378_v1, %v4756_v12 }
 0x3ac   :  { %v4959_v8 = vpop.f32.mrf.mxu0  ;;  %v11206_v61 = vpop.f32.mrf.mxu1 }
 0x3ad   :  { %v11208_v15 = vadd.f32 %v4959_v8, %v4751_v0 }
 0x3ae   :  { %v8381_v26 = vpop.f32.mrf.mxu0  ;;  %v11210_v45 = vpop.f32.mrf.mxu1 }
 0x3af   :  { %v11212_v41 = vadd.f32 %v8381_v26, %v4766_v21 }
 0x3b0   :  { %v4969_v33 = vpop.f32.mrf.mxu0  ;;  %v11214_v43 = vpop.f32.mrf.mxu1 }
 0x3b1   :  { %v11216_v52 = vadd.f32 %v4969_v33, %v4761_v40 }
 0x3b2   :  { %v8384_v34 = vpop.f32.mrf.mxu0  ;;  %v11218_v56 = vpop.f32.mrf.mxu1 }
 0x3b3   :  { %v11220_v24 = vadd.f32 %v8384_v34, %v4776_v5 }
 0x3b4   :  { %v4979_v42 = vpop.f32.mrf.mxu0  ;;  %v11222_v47 = vpop.f32.mrf.mxu1 }
 0x3b5   :  { %v11224_v7 = vadd.f32 %v4979_v42, %v4771_v16 }
 0x3b6   :  { %v8387_v12 = vpop.f32.mrf.mxu0  ;;  %v11226_v46 = vpop.f32.mrf.mxu1 }
 0x3b7   :  { %v11228_v54 = vadd.f32 %v8387_v12, %v4786_v49 }
 0x3b8   :  { %v4989_v0 = vpop.f32.mrf.mxu0  ;;  %v11230_v11 = vpop.f32.mrf.mxu1 }
 0x3b9   :  { %v11232_v20 = vadd.f32 %v4989_v0, %v4781_v27 }
 0x3ba   :  { %v8390_v21 = vpop.f32.mrf.mxu0  ;;  %v11234_v38 = vpop.f32.mrf.mxu1 }
 0x3bb   :  { %11658 = vst [vmem:[#allocation26_spill] sm:$0xff] %v11234_v38  ;;  %v11236_v35 = vadd.f32 %v8390_v21, %v4796_v28  ;;  %v5243_v38 = vadd.f32 %v11190_v63, %v11192_v14  ;;  %v5248_v63 = vadd.f32 %v11202_v39, %v11204_v4 }
 0x3bc   :  { %v4999_v40 = vpop.f32.mrf.mxu0  ;;  %v11238_v25 = vpop.f32.mrf.mxu1 }
 0x3bd   :  { %11659 = vst [vmem:[#allocation48_spill] sm:$0xff] %v11236_v35  ;;  %11660 = vst [vmem:[#allocation17_spill] sm:$0xff] %v11238_v25  ;;  %v11240_v62 = vadd.f32 %v4999_v40, %v4791_v51 }
 0x3be   :  { %v8393_v5 = vpop.f32.mrf.mxu0  ;;  %v11242_v18 = vpop.f32.mrf.mxu1 }
 0x3bf   :  { %11661 = vst [vmem:[#allocation14_spill] sm:$0xff] %v11240_v62  ;;  %11662 = vst [vmem:[#allocation45_spill] sm:$0xff] %v11242_v18  ;;  %v11244_v22 = vadd.f32 %v8393_v5, %v4806_v29 }
 0x3c0   :  { %v5009_v16 = vpop.f32.mrf.mxu0  ;;  %v11246_v58 = vpop.f32.mrf.mxu1 }
 0x3c1   :  { %11663 = vst [vmem:[#allocation40_spill] sm:$0xff] %v11244_v22  ;;  %11664 = vst [vmem:[#allocation13_spill] sm:$0xff] %v11246_v58  ;;  %v11248_v9 = vadd.f32 %v5009_v16, %v4801_v3 }
 0x3c2   :  { %v8452_v49 = vpop.f32.mrf.mxu0  ;;  %v8492_v55 = vpop.f32.mrf.mxu1 }
 0x3c3   :  { %11665 = vst [vmem:[#allocation47_spill] sm:$0xff] %v11248_v9 }
 0x3c4   :  { %v5389_v6 = vpop.f32.mrf.mxu0  ;;  %v5614_v27 = vpop.f32.mrf.mxu1 }
 0x3c6   :  { %v8455_v50 = vpop.f32.mrf.mxu0  ;;  %v11250_v53 = vpop.f32.mrf.mxu1 }
 0x3c8   :  { %v5399_v28 = vpop.f32.mrf.mxu0  ;;  %v11252_v59 = vpop.f32.mrf.mxu1 }
 0x3ca   :  { %v8458_v19 = vpop.f32.mrf.mxu0  ;;  %v11254_v51 = vpop.f32.mrf.mxu1 }
 0x3cc   :  { %v11256_v31 = vpop.f32.mrf.mxu0  ;;  %v11258_v17 = vpop.f32.mrf.mxu1 }
 0x3ce   :  { %v11260_v29 = vpop.f32.mrf.mxu0  ;;  %v11262_v2 = vpop.f32.mrf.mxu1 }
 0x3d0   :  { %v11264_v44 = vpop.f32.mrf.mxu0  ;;  %v11266_v3 = vpop.f32.mrf.mxu1 }
 0x3d2   :  { %v11268_v57 = vpop.f32.mrf.mxu0  ;;  %v11270_v13 = vpop.f32.mrf.mxu1 }
 0x3d3   :  { %11666 = vst [vmem:[#allocation29_spill] sm:$0xff] %v11270_v13  ;;  %v5468_v13 = vadd.f32 %v5389_v6, %v5243_v38 }
 0x3d4   :  { %v11272_v36 = vpop.f32.mrf.mxu0  ;;  %v11274_v23 = vpop.f32.mrf.mxu1 }
 0x3d5   :  { %11667 = vst [vmem:[#allocation39_spill] sm:$0xff] %v11274_v23  ;;  %v5693_v14 = vadd.f32 %v5614_v27, %v5468_v13  ;;  %v5249_v27 = vadd.f32 %v11214_v43, %v11216_v52 }
 0x3d6   :  { %v11276_v1 = vpop.f32.mrf.mxu0  ;;  %v11278_v8 = vpop.f32.mrf.mxu1 }
 0x3d7   :  { %11668 = vst [vmem:[#allocation42_spill] sm:$0xff] %v11276_v1  ;;  %11669 = vst [vmem:[#allocation25_spill] sm:$0xff] %v11278_v8  ;;  %v5474_v43 = vadd.f32 %v11264_v44, %v5249_v27 }
 0x3d8   :  { %v11280_v26 = vpop.f32.mrf.mxu0  ;;  %v11282_v33 = vpop.f32.mrf.mxu1 }
 0x3d9   :  { %11670 = vst [vmem:[#allocation16_spill] sm:$0xff] %v11280_v26  ;;  %11671 = vst [vmem:[#allocation49_spill] sm:$0xff] %v11282_v33 }
 0x3da   :  { %v11284_v34 = vpop.f32.mrf.mxu0  ;;  %v11286_v42 = vpop.f32.mrf.mxu1 }
 0x3db   :  { %11672 = vst [vmem:[#allocation41_spill] sm:$0xff] %v11284_v34  ;;  %11673 = vst [vmem:[#allocation10_spill] sm:$0xff] %v11286_v42 }
 0x3dc   :  { %v11288_v12 = vpop.f32.mrf.mxu0  ;;  %v11290_v0 = vpop.f32.mrf.mxu1 }
 0x3dd   :  { %11674 = vst [vmem:[#allocation15_spill] sm:$0xff] %v11288_v12  ;;  %11675 = vst [vmem:[#allocation44_spill] sm:$0xff] %v11290_v0 }
 0x3de   :  { %v11292_v21 = vpop.f32.mrf.mxu0  ;;  %v11294_v40 = vpop.f32.mrf.mxu1 }
 0x3df   :  { %11676 = vst [vmem:[#allocation32_spill] sm:$0xff] %v11292_v21  ;;  %11677 = vst [vmem:[#allocation31_spill] sm:$0xff] %v11294_v40 }
 0x3e0   :  { %v11296_v5 = vpop.f32.mrf.mxu0  ;;  %v11298_v16 = vpop.f32.mrf.mxu1 }
 0x3e1   :  { %11678 = vst [vmem:[#allocation11_spill] sm:$0xff] %v11296_v5  ;;  %11679 = vst [vmem:[#allocation28_spill] sm:$0xff] %v11298_v16  ;;  %v5244_v16 = vadd.f32 %v11186_v10, %v11188_v48  ;;  %v5245_v10 = vadd.f32 %v11198_v60, %v11200_v30  ;;  %v5473_v60 = vadd.f32 %v8458_v19, %v5248_v63  ;;  %v11687_v63 = vld [vmem:[#allocation42_spill] sm:$0xff] }
 0x3e2   :  { %v8532_v58 = vpop.f32.mrf.mxu0  ;;  %v8572_v9 = vpop.f32.mrf.mxu1 }
 0x3e3   :  { %v5469_v35 = vadd.f32 %v8452_v49, %v5244_v16  ;;  %v5470_v49 = vadd.f32 %v5399_v28, %v5245_v10  ;;  %v11686_v10 = vld [vmem:[#allocation29_spill] sm:$0xff] }
 0x3e4   :  { %v5840_v18 = vpop.f32.mrf.mxu0  ;;  %v6065_v33 = vpop.f32.mrf.mxu1 }
 0x3e5   :  { %v5694_v48 = vadd.f32 %v8492_v55, %v5469_v35  ;;  %v5919_v30 = vadd.f32 %v5840_v18, %v5693_v14  ;;  %v5250_v35 = vadd.f32 %v11210_v45, %v11212_v41  ;;  %v5695_v39 = vadd.f32 %v11252_v59, %v5470_v49 }
 0x3e6   :  { %v8535_v22 = vpop.f32.mrf.mxu0  ;;  %v8575_v8 = vpop.f32.mrf.mxu1  ;;  %v5698_v18 = vadd.f32 %v11254_v51, %v5473_v60  ;;  %v5251_v51 = vadd.f32 %v11222_v47, %v11224_v7  ;;  %v5253_v47 = vadd.f32 %v11230_v11, %v11232_v20  ;;  %v5699_v7 = vadd.f32 %v11266_v3, %v5474_v43 }
 0x3e7   :  { %v5920_v16 = vadd.f32 %v8532_v58, %v5694_v48 }
 0x3e8   :  { %v5850_v34 = vpop.f32.mrf.mxu0  ;;  %v6075_v12 = vpop.f32.mrf.mxu1 }
 0x3e9   :  { %v6145_v58 = vadd.f32 %v8572_v9, %v5920_v16  ;;  %v5921_v45 = vadd.f32 %v5850_v34, %v5695_v39 }
 0x3ea   :  { %v8538_v42 = vpop.f32.mrf.mxu0  ;;  %v11304_v21 = vpop.f32.mrf.mxu1 }
 0x3eb   :  { %v5924_v59 = vadd.f32 %v8538_v42, %v5698_v18 }
 0x3ec   :  { %v5860_v26 = vpop.f32.mrf.mxu0  ;;  %v11312_v25 = vpop.f32.mrf.mxu1 }
 0x3ed   :  { %11683 = vst [vmem:[#allocation34_spill] sm:$0xff] %v11312_v25  ;;  %v6149_v42 = vadd.f32 %v11304_v21, %v5924_v59 }
 0x3ee   :  { %v11300_v23 = vpop.f32.mrf.mxu0 }
 0x3f0   :  { %v11302_v0 = vpop.f32.mrf.mxu0 }
 0x3f1   :  { %11680 = vst [vmem:[#allocation19_spill] sm:$0xff] %v11302_v0  ;;  %v5246_v0 = vadd.f32 %v11194_v37, %v11196_v32  ;;  %v5247_v32 = vadd.f32 %v11206_v61, %v11208_v15  ;;  %v5475_v61 = vadd.f32 %v11260_v29, %v5250_v35  ;;  %v11693_v35 = vld [vmem:[#allocation17_spill] sm:$0xff] }
 0x3f2   :  { %v11306_v40 = vpop.f32.mrf.mxu0 }
 0x3f3   :  { %11681 = vst [vmem:[#allocation50_spill] sm:$0xff] %v11306_v40  ;;  %v11322_v40 = vpop.f32.mrf.mxu1  ;;  %v5471_v25 = vadd.f32 %v8455_v50, %v5246_v0  ;;  %v5472_v4 = vadd.f32 %v11256_v31, %v5247_v32  ;;  %v6144_v50 = vadd.f32 %v6065_v33, %v5919_v30  ;;  %v5700_v31 = vadd.f32 %v11262_v2, %v5475_v61  ;;  %v11692_v30 = vld [vmem:[#allocation14_spill] sm:$0xff] }
 0x3f4   :  { %v11308_v5 = vpop.f32.mrf.mxu0  ;;  %v5476_v2 = vadd.f32 %v11272_v36, %v5251_v51  ;;  %v11688_v20 = vld [vmem:[#allocation34_spill] sm:$0xff]  ;;  %v5255_v39 = vadd.f32 %v11693_v35, %v11692_v30  ;;  %v11711_v30 = vld [vmem:[#allocation11_spill] sm:$0xff] }
 0x3f5   :  { %11682 = vst [vmem:[#allocation27_spill] sm:$0xff] %v11308_v5  ;;  %v5696_v38 = vadd.f32 %v11250_v53, %v5471_v25  ;;  %v11354_v53 = vld [vmem:[%s11483_s6] ss:$0 sm:$0xff]  ;;  %v5697_v9 = vadd.f32 %v11258_v17, %v5472_v4  ;;  %v5926_v0 = vadd.f32 %v11300_v23, %v5700_v31  ;;  %v11690_v23 = vld [vmem:[#allocation48_spill] sm:$0xff]  ;;  %v11694_v4 = vld [vmem:[#allocation39_spill] sm:$0xff] }
 0x3f6   :  { %v11314_v62 = vpop.f32.mrf.mxu0 }
 0x3f7   :  { %11684 = vst [vmem:[#allocation33_spill] sm:$0xff] %v11314_v62  ;;  %v5922_v6 = vadd.f32 %v8535_v22, %v5696_v38  ;;  %v5252_v22 = vadd.f32 %v11218_v56, %v11220_v24  ;;  %v6146_v24 = vadd.f32 %v6075_v12, %v5921_v45  ;;  %v5923_v44 = vadd.f32 %v5860_v26, %v5697_v9  ;;  %v11691_v38 = vld [vmem:[#allocation26_spill] sm:$0xff] }
 0x3f8   :  { %v11318_v1 = vpop.f32.mrf.mxu0  ;;  %v11689_v16 = vld [vmem:[#allocation19_spill] sm:$0xff]  ;;  %v5256_v60 = vadd.f32 %v11691_v38, %v11690_v23  ;;  %v11710_v38 = vld [vmem:[#allocation44_spill] sm:$0xff] }
 0x3f9   :  { %11685 = vst [vmem:[#allocation43_spill] sm:$0xff] %v11318_v1  ;;  %v11332_v1 = vpop.f32.mrf.mxu1  ;;  %v6147_v28 = vadd.f32 %v8575_v8, %v5922_v6  ;;  %v5477_v29 = vadd.f32 %v11268_v57, %v5252_v22  ;;  %v5254_v8 = vadd.f32 %v11226_v46, %v11228_v54  ;;  %v6148_v3 = vadd.f32 %v11688_v20, %v5923_v44  ;;  %v11695_v6 = vld [vmem:[#allocation16_spill] sm:$0xff]  ;;  %v11697_v22 = vld [vmem:[#allocation25_spill] sm:$0xff] }
 0x3fa   :  { %v11324_v5 = vpop.f32.mrf.mxu0  ;;  %v5925_v36 = vadd.f32 %v11689_v16, %v5699_v7  ;;  %v5478_v27 = vadd.f32 %v11695_v6, %v5253_v47  ;;  %v11696_v18 = vld [vmem:[#allocation50_spill] sm:$0xff]  ;;  %v11701_v44 = vld [vmem:[#allocation45_spill] sm:$0xff] }
 0x3fb   :  { %v11348_v15 = vpop.f32.mrf.mxu1  ;;  %v5702_v48 = vadd.f32 %v11686_v10, %v5477_v29  ;;  %v5479_v14 = vadd.f32 %v11687_v63, %v5254_v8  ;;  %v11703_v8 = vld [vmem:[#allocation13_spill] sm:$0xff]  ;;  %v11707_v63 = vld [vmem:[#allocation10_spill] sm:$0xff] }
 0x3fc   :  { %v11328_v62 = vpop.f32.mrf.mxu0  ;;  %v6150_v31 = vadd.f32 %v11332_v1, %v5925_v36  ;;  %v11699_v29 = vld [vmem:[#allocation27_spill] sm:$0xff]  ;;  %v11704_v7 = vld [vmem:[#allocation49_spill] sm:$0xff] }
 0x3fd   :  { %v11364_v13 = vpop.f32.mrf.mxu1  ;;  %v5704_v43 = vadd.f32 %v11697_v22, %v5479_v14 }
 0x3fe   :  { %v11334_v37 = vpop.f32.mrf.mxu0 }
 0x3ff   :  { %v8587_v49 = vpop.f32.mrf.mxu1 }
 0x400   :  { %v11341_v55 = vpop.f32.mrf.mxu0 }
 0x402   :  { %v8612_v25 = vpop.f32.mrf.mxu0 }
 0x403   :  { %v6370_v41 = vadd.f32 %v8612_v25, %v6145_v58  ;;  %v5701_v58 = vadd.f32 %v11694_v4, %v5476_v2  ;;  %v6151_v25 = vadd.f32 %v11322_v40, %v5926_v0  ;;  %v5703_v2 = vadd.f32 %v11704_v7, %v5478_v27 }
 0x404   :  { %v6290_v52 = vpop.f32.mrf.mxu0 }
 0x405   :  { %v6369_v19 = vadd.f32 %v6290_v52, %v6144_v50  ;;  %v6393_v33 = vadd.f32 %v11354_v53, %v6370_v41  ;;  %v5928_v50 = vadd.f32 %v11696_v18, %v5702_v48  ;;  %v11698_v52 = vld [vmem:[#allocation41_spill] sm:$0xff] }
 0x406   :  { %v8615_v56 = vpop.f32.mrf.mxu0  ;;  %v5481_v9 = vadd.f32 %v11698_v52, %v5256_v60 }
 0x407   :  { %v6392_v34 = vadd.f32 %v11354_v53, %v6369_v19  ;;  %v6372_v17 = vadd.f32 %v8615_v56, %v6147_v28  ;;  %v6409_v46 = vmax.f32 %v6393_v33, 0.0  ;;  %v6115_v28 = vpop.f32.mrf.mxu1  ;;  %v5927_v33 = vadd.f32 %v11699_v29, %v5701_v58 }
 0x408   :  { %v6300_v57 = vpop.f32.mrf.mxu0  ;;  %v6153_v1 = vadd.f32 %v11348_v15, %v5928_v50  ;;  %v5706_v14 = vadd.f32 %v11707_v63, %v5481_v9  ;;  %v11713_v9 = vld [vmem:[#allocation28_spill] sm:$0xff] }
 0x409   :  { %v6408_v12 = vmax.f32 %v6392_v34, 0.0  ;;  %v6371_v26 = vadd.f32 %v6300_v57, %v6146_v24  ;;  %v6395_v54 = vadd.f32 %v11354_v53, %v6372_v17  ;;  %v11700_v24 = vld [vmem:[#allocation40_spill] sm:$0xff]  ;;  %v11702_v17 = vld [vmem:[#allocation47_spill] sm:$0xff]  ;;  %v6152_v36 = vadd.f32 %v11364_v13, %v5927_v33 }
 0x40a   :  { %v8618_v11 = vpop.f32.mrf.mxu0  ;;  %v5258_v34 = vadd.f32 %v11701_v44, %v11700_v24  ;;  %v5257_v47 = vadd.f32 %v11703_v8, %v11702_v17  ;;  %v11705_v57 = vld [vmem:[#allocation15_spill] sm:$0xff]  ;;  %v5932_v58 = vadd.f32 %v11324_v5, %v5706_v14 }
 0x40b   :  { %v6394_v32 = vadd.f32 %v11354_v53, %v6371_v26  ;;  %v6374_v21 = vadd.f32 %v8618_v11, %v6149_v42  ;;  %8666 = vmatprep.mubr.f32.mxu1 %v6408_v12  ;;  %v6411_v59 = vmax.f32 %v6395_v54, 0.0  ;;  %v5480_v42 = vadd.f32 %v11705_v57, %v5255_v39  ;;  %v11706_v12 = vld [vmem:[#allocation33_spill] sm:$0xff]  ;;  %v8590_v11 = vpop.f32.mrf.mxu1 }
 0x40c   :  { %v6310_v61 = vpop.f32.mrf.mxu0  ;;  %8667 = vmatmul.mubr.f32.vlgmr.msra.gmra.mxu1 %v6409_v46  ;;  %v5930_v26 = vadd.f32 %v11706_v12, %v5704_v43  ;;  %v11708_v46 = vld [vmem:[#allocation32_spill] sm:$0xff]  ;;  %v5482_v35 = vadd.f32 %v11711_v30, %v5257_v47 }
 0x40d   :  { %v6410_v45 = vmax.f32 %v6394_v32, 0.0  ;;  %v6373_v41 = vadd.f32 %v6310_v61, %v6148_v3  ;;  %v6397_v19 = vadd.f32 %v11354_v53, %v6374_v21  ;;  %v5483_v54 = vadd.f32 %v11708_v46, %v5258_v34  ;;  %v11709_v32 = vld [vmem:[#allocation43_spill] sm:$0xff]  ;;  %v6125_v13 = vpop.f32.mrf.mxu1 }
 0x40e   :  { %v8621_v51 = vpop.f32.mrf.mxu0  ;;  %v5929_v21 = vadd.f32 %v11709_v32, %v5703_v2  ;;  %v5705_v60 = vadd.f32 %v11710_v38, %v5480_v42  ;;  %v6155_v4 = vadd.f32 %v8587_v49, %v5930_v26  ;;  %v11712_v61 = vld [vmem:[#allocation31_spill] sm:$0xff]  ;;  %v5707_v49 = vadd.f32 %v11713_v9, %v5482_v35 }
 0x40f   :  { %v6396_v56 = vadd.f32 %v11354_v53, %v6373_v41  ;;  %v6376_v40 = vadd.f32 %v8621_v51, %v6151_v25  ;;  %8669 = vmatprep.mubr.f32.mxu1 %v6410_v45  ;;  %v6413_v20 = vmax.f32 %v6397_v19, 0.0  ;;  %v5708_v25 = vadd.f32 %v11712_v61, %v5483_v54  ;;  %v7170_v54 = vld [vmem:[%s11485_s8] ss:$0 sm:$0xff] }
 0x410   :  { %v6320_v0 = vpop.f32.mrf.mxu0  ;;  %8670 = vmatmul.mubr.f32.gmra.mxu1 %v6411_v59  ;;  %v6154_v41 = vadd.f32 %v6115_v28, %v5929_v21  ;;  %v5931_v22 = vadd.f32 %v11328_v62, %v5705_v60  ;;  %v8593_v59 = vpop.f32.mrf.mxu1  ;;  %v6157_v19 = vadd.f32 %v8590_v11, %v5932_v58  ;;  %v5933_v62 = vadd.f32 %v11341_v55, %v5707_v49 }
 0x411   :  { %v6412_v10 = vmax.f32 %v6396_v56, 0.0  ;;  %v6375_v48 = vadd.f32 %v6320_v0, %v6150_v31  ;;  %v6399_v3 = vadd.f32 %v11354_v53, %v6376_v40  ;;  %v5934_v51 = vadd.f32 %v11334_v37, %v5708_v25 }
 0x412   :  { %v8624_v16 = vpop.f32.mrf.mxu0  ;;  %v6156_v40 = vadd.f32 %v6125_v13, %v5931_v22  ;;  %v6135_v34 = vpop.f32.mrf.mxu1 }
 0x413   :  { %v6398_v23 = vadd.f32 %v11354_v53, %v6375_v48  ;;  %v6378_v15 = vadd.f32 %v8624_v16, %v6153_v1  ;;  %8672 = vmatprep.mubr.f32.mxu1 %v6412_v10  ;;  %v6415_v18 = vmax.f32 %v6399_v3, 0.0  ;;  %v6159_v8 = vadd.f32 %v8593_v59, %v5934_v51 }
 0x414   :  { %v6330_v39 = vpop.f32.mrf.mxu0  ;;  %8673 = vmatmul.mubr.f32.gmra.mxu1 %v6413_v20  ;;  %v6158_v42 = vadd.f32 %v6135_v34, %v5933_v62 }
 0x415   :  { %v6414_v6 = vmax.f32 %v6398_v23, 0.0  ;;  %v6377_v27 = vadd.f32 %v6330_v39, %v6152_v36  ;;  %v6401_v50 = vadd.f32 %v11354_v53, %v6378_v15 }
 0x416   :  { %v8627_v45 = vpop.f32.mrf.mxu0 }
 0x417   :  { %v6400_v43 = vadd.f32 %v11354_v53, %v6377_v27  ;;  %v6380_v52 = vadd.f32 %v8627_v45, %v6155_v4  ;;  %8675 = vmatprep.mubr.f32.mxu1 %v6414_v6  ;;  %v6417_v33 = vmax.f32 %v6401_v50, 0.0 }
 0x418   :  { %v6340_v5 = vpop.f32.mrf.mxu0  ;;  %8676 = vmatmul.mubr.f32.gmra.mxu1 %v6415_v18 }
 0x419   :  { %v6416_v31 = vmax.f32 %v6400_v43, 0.0  ;;  %v6379_v29 = vadd.f32 %v6340_v5, %v6154_v41  ;;  %v6403_v56 = vadd.f32 %v11354_v53, %v6380_v52 }
 0x41a   :  { %v8630_v28 = vpop.f32.mrf.mxu0 }
 0x41b   :  { %v6402_v24 = vadd.f32 %v11354_v53, %v6379_v29  ;;  %v6382_v44 = vadd.f32 %v8630_v28, %v6157_v19  ;;  %8678 = vmatprep.mubr.f32.mxu1 %v6416_v31  ;;  %v6419_v37 = vmax.f32 %v6403_v56, 0.0 }
 0x41c   :  { %v6350_v17 = vpop.f32.mrf.mxu0  ;;  %8679 = vmatmul.mubr.f32.gmra.mxu1 %v6417_v33 }
 0x41d   :  { %v6418_v47 = vmax.f32 %v6402_v24, 0.0  ;;  %v6381_v7 = vadd.f32 %v6350_v17, %v6156_v40  ;;  %v6405_v2 = vadd.f32 %v11354_v53, %v6382_v44 }
 0x41e   :  { %v8633_v57 = vpop.f32.mrf.mxu0 }
 0x41f   :  { %v6404_v0 = vadd.f32 %v11354_v53, %v6381_v7  ;;  %v6384_v1 = vadd.f32 %v8633_v57, %v6159_v8  ;;  %8681 = vmatprep.mubr.f32.mxu1 %v6418_v47  ;;  %v6421_v10 = vmax.f32 %v6405_v2, 0.0 }
 0x420   :  { %v6360_v55 = vpop.f32.mrf.mxu0  ;;  %8682 = vmatmul.mubr.f32.gmra.mxu1 %v6419_v37 }
 0x421   :  { %v6420_v12 = vmax.f32 %v6404_v0, 0.0  ;;  %v6383_v26 = vadd.f32 %v6360_v55, %v6158_v42  ;;  %v6407_v48 = vadd.f32 %v11354_v53, %v6384_v1 }
 0x423   :  { %v6406_v63 = vadd.f32 %v11354_v53, %v6383_v26  ;;  %8684 = vmatprep.mubr.f32.mxu1 %v6420_v12  ;;  %v6423_v46 = vmax.f32 %v6407_v48, 0.0 }
 0x424   :  { %8685 = vmatmul.mubr.f32.gmra.mxu1 %v6421_v10 }
 0x425   :  { %v6422_v14 = vmax.f32 %v6406_v63, 0.0 }
 0x427   :  { %8687 = vmatprep.mubr.f32.mxu1 %v6422_v14 }
 0x428   :  { %8688 = vmatmul.mubr.f32.gmra.mxu1 %v6423_v46 }
 0x4cc   :  { %v8668_v11 = vpop.f32.mrf.mxu1 }
 0x4cd   :  { %v6519_v20 = vadd.f32 %v8668_v11, %v7170_v54 }
 0x4ce   :  { %v6513_v3 = vpop.f32.mrf.mxu1 }
 0x4cf   :  { %v6593_v16 = vmax.f32 %v6519_v20, 0.0  ;;  %v6514_v36 = vadd.f32 %v7170_v54, %v6513_v3 }
 0x4d0   :  { %v8671_v32 = vpop.f32.mrf.mxu1 }
 0x4d1   :  { %6609 = vst [vmem:[%s11486_s9 + $0x8] sm:$0xff] %v6593_v16  ;;  %v6592_v53 = vmax.f32 %v6514_v36, 0.0  ;;  %v6529_v21 = vadd.f32 %v8671_v32, %v7170_v54 }
 0x4d2   :  { %v6523_v23 = vpop.f32.mrf.mxu1 }
 0x4d3   :  { %6608 = vst [vmem:[%s11486_s9] sm:$0xff] %v6592_v53  ;;  %v6595_v15 = vmax.f32 %v6529_v21, 0.0  ;;  %v6524_v38 = vadd.f32 %v7170_v54, %v6523_v23 }
 0x4d4   :  { %v8674_v60 = vpop.f32.mrf.mxu1 }
 0x4d5   :  { %6611 = vst [vmem:[%s11486_s9 + $0x18] sm:$0xff] %v6595_v15  ;;  %v6594_v30 = vmax.f32 %v6524_v38, 0.0  ;;  %v6539_v35 = vadd.f32 %v8674_v60, %v7170_v54 }
 0x4d6   :  { %v6533_v39 = vpop.f32.mrf.mxu1 }
 0x4d7   :  { %6610 = vst [vmem:[%s11486_s9 + $0x10] sm:$0xff] %v6594_v30  ;;  %v6597_v4 = vmax.f32 %v6539_v35, 0.0  ;;  %v6534_v58 = vadd.f32 %v7170_v54, %v6533_v39 }
 0x4d8   :  { %v8677_v6 = vpop.f32.mrf.mxu1 }
 0x4d9   :  { %6613 = vst [vmem:[%s11486_s9 + $0x28] sm:$0xff] %v6597_v4  ;;  %v6596_v27 = vmax.f32 %v6534_v58, 0.0  ;;  %v6549_v61 = vadd.f32 %v8677_v6, %v7170_v54 }
 0x4da   :  { %v6543_v25 = vpop.f32.mrf.mxu1 }
 0x4db   :  { %6612 = vst [vmem:[%s11486_s9 + $0x20] sm:$0xff] %v6596_v27  ;;  %v6599_v13 = vmax.f32 %v6549_v61, 0.0  ;;  %v6544_v18 = vadd.f32 %v7170_v54, %v6543_v25 }
 0x4dc   :  { %v8680_v50 = vpop.f32.mrf.mxu1 }
 0x4dd   :  { %6615 = vst [vmem:[%s11486_s9 + $0x38] sm:$0xff] %v6599_v13  ;;  %v6598_v45 = vmax.f32 %v6544_v18, 0.0  ;;  %v6559_v41 = vadd.f32 %v8680_v50, %v7170_v54 }
 0x4de   :  { %v6553_v22 = vpop.f32.mrf.mxu1 }
 0x4df   :  { %6614 = vst [vmem:[%s11486_s9 + $0x30] sm:$0xff] %v6598_v45  ;;  %v6601_v43 = vmax.f32 %v6559_v41, 0.0  ;;  %v6554_v52 = vadd.f32 %v7170_v54, %v6553_v22 }
 0x4e0   :  { %v8683_v9 = vpop.f32.mrf.mxu1 }
 0x4e1   :  { %6617 = vst [vmem:[%s11486_s9 + $0x48] sm:$0xff] %v6601_v43  ;;  %v6600_v49 = vmax.f32 %v6554_v52, 0.0  ;;  %v6569_v59 = vadd.f32 %v8683_v9, %v7170_v54 }
 0x4e2   :  { %v6563_v5 = vpop.f32.mrf.mxu1 }
 0x4e3   :  { %6616 = vst [vmem:[%s11486_s9 + $0x40] sm:$0xff] %v6600_v49  ;;  %v6603_v19 = vmax.f32 %v6569_v59, 0.0  ;;  %v6564_v51 = vadd.f32 %v7170_v54, %v6563_v5 }
 0x4e4   :  { %v8686_v31 = vpop.f32.mrf.mxu1 }
 0x4e5   :  { %6619 = vst [vmem:[%s11486_s9 + $0x58] sm:$0xff] %v6603_v19  ;;  %v6602_v29 = vmax.f32 %v6564_v51, 0.0  ;;  %v6579_v33 = vadd.f32 %v8686_v31, %v7170_v54 }
 0x4e6   :  { %v6573_v56 = vpop.f32.mrf.mxu1 }
 0x4e7   :  { %6618 = vst [vmem:[%s11486_s9 + $0x50] sm:$0xff] %v6602_v29  ;;  %v6605_v28 = vmax.f32 %v6579_v33, 0.0  ;;  %v6574_v40 = vadd.f32 %v7170_v54, %v6573_v56 }
 0x4e8   :  { %v8689_v62 = vpop.f32.mrf.mxu1 }
 0x4e9   :  { %6621 = vst [vmem:[%s11486_s9 + $0x68] sm:$0xff] %v6605_v28  ;;  %v6604_v24 = vmax.f32 %v6574_v40, 0.0  ;;  %v6589_v44 = vadd.f32 %v8689_v62, %v7170_v54 }
 0x4ea   :  { %v6583_v34 = vpop.f32.mrf.mxu1 }
 0x4eb   :  { %6620 = vst [vmem:[%s11486_s9 + $0x60] sm:$0xff] %v6604_v24  ;;  %v6607_v17 = vmax.f32 %v6589_v44, 0.0  ;;  %v6584_v8 = vadd.f32 %v7170_v54, %v6583_v34 }
 0x4ed   :  { %6623 = vst [vmem:[%s11486_s9 + $0x78] sm:$0xff] %v6607_v17  ;;  %v6606_v47 = vmax.f32 %v6584_v8, 0.0 }
 0x4ef   :  { %6622 = vst [vmem:[%s11486_s9 + $0x70] sm:$0xff] %v6606_v47 }
 0x4f0   :  { %6628 = vsyncpa [#allocation5], 1 }
 0x4f1   :  { %6629 = vsyncpa [#allocation7], 1 }

</bundles_post_ra>
